<compile_context>
chip_gen: v7x
topology: tpu7x:2x2x1
jax: 0.10.0
libtpu: 0.0.40
codegen_flags: <defaults>
</compile_context>

<pallas_src>
import numpy as np
import jax
import jax.numpy as jnp
from jax.experimental import pallas as pl
from jax.experimental.pallas import tpu as pltpu


def _round_up(x, m):
    return ((x + m - 1) // m) * m


def _normalize_idx(idx, D):
    idx = [idx] if isinstance(idx, int) else list(idx)
    return [i if i >= 0 else D + i for i in idx]


def make_general_mlp(D=8, W=256, input_ch=3, input_ch_view=0, input_ch_time=0,
                     view_layer_idx=0, time_layer_idx=0, output_ch=3, skips=(4,)):
    """Returns (init_params, pallas_forward, jax_reference) matching the torch module."""
    view_idx = _normalize_idx(view_layer_idx, D)
    time_idx = _normalize_idx(time_layer_idx, D)
    skips = list(skips)
    assert D >= 2
    assert all(i < D - 1 for i in time_idx)
    assert all(i < D - 1 for i in view_idx)
    assert all(i < D - 1 for i in skips)

    total_in = input_ch + input_ch_view + input_ch_time

    # Per-layer (in, out) dims, exactly as in the PyTorch __init__.
    layer_dims = []
    for i in range(D):
        cin = input_ch if i == 0 else W
        if i in skips:
            cin += input_ch
        if i in view_idx:
            cin += input_ch_view
        if i in time_idx:
            cin += input_ch_time
        cout = output_ch if i == D - 1 else W
        layer_dims.append((cin, cout))

    # ------------------------------------------------------------------ params
    def init_params(key):
        params = []
        for (cin, cout) in layer_dims:
            key, kw, kb = jax.random.split(key, 3)
            bound = 1.0 / np.sqrt(cin)
            w = jax.random.uniform(kw, (cin, cout), jnp.float32, -bound, bound)
            b = jax.random.uniform(kb, (cout,), jnp.float32, -bound, bound)
            params.append((w, b))   # y = x @ w + b (torch Linear, weight transposed)
        return params

    # --------------------------------------------------------------- reference
    def reference(x, params):
        """Plain-JAX mirror of the PyTorch forward."""
        pts = x[:, :input_ch]
        views = x[:, input_ch:input_ch + input_ch_view]
        times = x[:, input_ch + input_ch_view:total_in]
        h = pts
        for i in range(D - 1):
            if i in skips:
                h = jnp.concatenate([h, pts], axis=-1)
            if i in view_idx:
                h = jnp.concatenate([h, views], axis=-1)
            if i in time_idx:
                h = jnp.concatenate([h, times], axis=-1)
            w, b = params[i]
            h = jax.nn.relu(h @ w + b)
        w, b = params[D - 1]
        return h @ w + b

    # ------------------------------------------------- weight slab construction
    # S       : uniform padded width of every layer output / weight column block
    # out_pad : lane-dense width of the kernel output slab
    S = _round_up(max(W, output_ch), 128)
    out_pad = _round_up(output_ch, 128)

    def pack_params(params):
        """Split/scatter torch weights (row order = torch.cat([h, pts, views, times]))
        into three padded slabs.  Raw-input ('extra') pieces are scattered into a
        (total_in, S) matrix so the kernel multiplies the un-split x tile once."""
        wh_list, wx_list, b_rows = [], [], []
        extra_slot = {}
        for i in range(D):
            w, b = params[i]
            cout = w.shape[1]
            off = 0
            h_dim = input_ch if i == 0 else W
            w_h = w[off:off + h_dim]
            off += h_dim

            wx = jnp.zeros((total_in, cout), jnp.float32)
            has_extra = False
            if i == 0:                                  # layer 0: h == pts -> fold into wx
                wx = wx.at[0:input_ch].add(w_h)
                has_extra = True
            if i in skips:
                piece = w[off:off + input_ch]
                off += input_ch
                wx = wx.at[0:input_ch].add(piece)       # .add: pts may appear twice (skip@0)
                has_extra = True
            if i in view_idx:
                piece = w[off:off + input_ch_view]
                off += input_ch_view
                if input_ch_view > 0:
                    wx = wx.at[input_ch:input_ch + input_ch_view].add(piece)
                    has_extra = True
            if i in time_idx:
                piece = w[off:off + input_ch_time]
                off += input_ch_time
                if input_ch_time > 0:
                    wx = wx.at[input_ch + input_ch_view:total_in].add(piece)
                    has_extra = True
            assert off == w.shape[0], (i, off, w.shape)

            if i > 0:
                wh_pad = jnp.zeros((S, S), jnp.float32).at[:W, :cout].set(w_h)
                wh_list.append(wh_pad)
            if has_extra:
                extra_slot[i] = len(wx_list)
                wx_list.append(jnp.zeros((total_in, S), jnp.float32).at[:, :cout].set(wx))
            b_rows.append(jnp.zeros((S,), jnp.float32).at[:cout].set(b))

        wh_slab = jnp.stack(wh_list, axis=0)            # (D-1, S, S)
        wx_slab = jnp.stack(wx_list, axis=0)            # (n_extra, total_in, S)
        b_slab = jnp.stack(b_rows, axis=0)              # (D, S)
        return wh_slab, wx_slab, b_slab, extra_slot

    # ------------------------------------------------------------ pallas forward
    def forward(x, params, tm_max=2048):
        N = x.shape[0]
        assert x.shape[1] == total_in

        wh_slab, wx_slab, b_slab, extra_slot = pack_params(params)

        # Row tile: large enough to amortize per-step overhead, capped so that
        # grid_n >= 2 (keeps both v7x TensorCores busy), rows multiple of 8.
        tm = min(tm_max, max(8, _round_up(pl.cdiv(N, 2), 8)))
        grid_n = pl.cdiv(N, tm)
        n_pad = grid_n * tm
        x_pad = x if n_pad == N else jnp.pad(x, ((0, n_pad - N), (0, 0)))

        def kernel(x_ref, wh_ref, wx_ref, b_ref, out_ref):
            h = None
            for i in range(D):                          # static unroll over layers
                if i == 0:
                    # single fused dot over the whole raw input (pts/views/times)
                    z = jnp.dot(x_ref[...], wx_ref[extra_slot[0]],
                                preferred_element_type=jnp.float32)
                else:
                    z = jnp.dot(h, wh_ref[i - 1],
                                preferred_element_type=jnp.float32)
                    if i in extra_slot:                 # skip / view / time injection
                        z = z + jnp.dot(x_ref[...], wx_ref[extra_slot[i]],
                                        preferred_element_type=jnp.float32)
                z = z + b_ref[pl.ds(i, 1), :]
                if i < D - 1:
                    h = jnp.maximum(z, 0.0)             # relu, f32 activations
                else:
                    # lane-dense (tm, out_pad) store; real channels sliced outside
                    out_ref[...] = z[:, :out_pad].astype(out_ref.dtype)

        # Explicit scoped-VMEM budget: double-buffered x/out tiles, resident
        # weight slabs (x2 for safety), plus activation headroom.
        est = (2 * tm * total_in * 4
               + 2 * tm * out_pad * 4
               + 2 * 4 * int(wh_slab.size + wx_slab.size + b_slab.size)
               + 4 * tm * S * 4)
        vmem_limit = int(min(56 * 2**20, max(32 * 2**20, 2 * est)))

        out = pl.pallas_call(
            kernel,
            out_shape=jax.ShapeDtypeStruct((n_pad, out_pad), x.dtype),
            grid=(grid_n,),
            in_specs=[
                pl.BlockSpec((tm, total_in), lambda i: (i, 0)),
                pl.BlockSpec(wh_slab.shape, lambda i: (0, 0, 0)),   # resident
                pl.BlockSpec(wx_slab.shape, lambda i: (0, 0, 0)),   # resident
                pl.BlockSpec(b_slab.shape, lambda i: (0, 0)),       # resident
            ],
            out_specs=pl.BlockSpec((tm, out_pad), lambda i: (i, 0)),
            compiler_params=pltpu.CompilerParams(
                dimension_semantics=("parallel",),
                vmem_limit_bytes=vmem_limit),
        )(x_pad, wh_slab, wx_slab, b_slab)
        return out[:N, :output_ch]

    return init_params, forward, reference


if __name__ == "__main__":
    # Classic NeRF-style config (PE'd points + views + time), module-default W=256.
    D, W = 8, 256
    INPUT_CH, INPUT_CH_VIEW, INPUT_CH_TIME = 63, 27, 9
    OUTPUT_CH = 4
    SKIPS = [4]
    VIEW_LAYER_IDX = -2   # -> layer 6 (late view injection)
    TIME_LAYER_IDX = 0    # -> layer 0

    init_params, forward, reference = make_general_mlp(
        D=D, W=W, input_ch=INPUT_CH, input_ch_view=INPUT_CH_VIEW,
        input_ch_time=INPUT_CH_TIME, view_layer_idx=VIEW_LAYER_IDX,
        time_layer_idx=TIME_LAYER_IDX, output_ch=OUTPUT_CH, skips=SKIPS)

    key = jax.random.PRNGKey(0)
    key, kp, kx = jax.random.split(key, 3)
    params = init_params(kp)

    N = 500   # deliberately NOT a multiple of the row tile -> exercises cdiv + padding
    x = jax.random.normal(kx, (N, INPUT_CH + INPUT_CH_VIEW + INPUT_CH_TIME),
                          dtype=jnp.float32)

    y = forward(x, params)
    y = jax.block_until_ready(y)

    y_ref = reference(x, params)
    assert y.shape == (N, OUTPUT_CH), (y.shape, OUTPUT_CH)
    # Tolerance accounts for default-precision MXU matmuls (single bf16 pass on
    # f32 inputs) in both kernel and reference; precision=HIGHEST would 3x MXU
    # passes and is deliberately not used.
    np.testing.assert_allclose(np.asarray(y), np.asarray(y_ref),
                               rtol=2e-2, atol=2e-2)

    print("KERNEL_OK")
</pallas_src>

<mosaic_0001>
module attributes {stable_mosaic.version = 11 : i64} {
  func.func @kernel(%arg0: i32, %arg1: memref<256x99xf32, #tpu.memory_space<vmem>>, %arg2: memref<7x256x256xf32, #tpu.memory_space<vmem>>, %arg3: memref<3x99x256xf32, #tpu.memory_space<vmem>>, %arg4: memref<8x256xf32, #tpu.memory_space<vmem>>, %arg5: memref<256x128xf32, #tpu.memory_space<vmem>>) attributes {dimension_semantics = [#tpu.dimension_semantics<parallel>], iteration_bounds = array<i64: 2>, scalar_prefetch = 0 : i64, scratch_operands = 0 : i64, tpu.core_type = #tpu.core_type<tc>, window_params = [{transform_indices = @transform_0, window_bounds = array<i64: 256, 99>}, {pipeline_mode = #tpu.pipeline_mode<synchronous>, transform_indices = @transform_1, window_bounds = array<i64: 7, 256, 256>}, {pipeline_mode = #tpu.pipeline_mode<synchronous>, transform_indices = @transform_2, window_bounds = array<i64: 3, 99, 256>}, {pipeline_mode = #tpu.pipeline_mode<synchronous>, transform_indices = @transform_3, window_bounds = array<i64: 8, 256>}, {transform_indices = @transform_4, window_bounds = array<i64: 256, 128>}]} {
    %c0 = arith.constant 0 : index
    %c0_0 = arith.constant 0 : index
    %0 = vector.load %arg1[%c0, %c0_0] : memref<256x99xf32, #tpu.memory_space<vmem>>, vector<256x99xf32>
    %c0_1 = arith.constant 0 : index
    %c0_2 = arith.constant 0 : index
    %c0_3 = arith.constant 0 : index
    %1 = vector.load %arg3[%c0_1, %c0_2, %c0_3] : memref<3x99x256xf32, #tpu.memory_space<vmem>>, vector<1x99x256xf32>
    %2 = vector.shape_cast %1 : vector<1x99x256xf32> to vector<99x256xf32>
    %cst = arith.constant dense<0.000000e+00> : vector<256x256xf32>
    %3 = tpu.matmul %0, %2, %cst {dimension_numbers = #tpu.dot_dimension_numbers<[1], [0], [0], [1], [0, 0, 1, 1], [], []>} : vector<256x99xf32>, vector<99x256xf32>, vector<256x256xf32> -> vector<256x256xf32>
    %c0_4 = arith.constant 0 : index
    %c0_5 = arith.constant 0 : index
    %4 = vector.load %arg4[%c0_4, %c0_5] : memref<8x256xf32, #tpu.memory_space<vmem>>, vector<1x256xf32>
    %5 = vector.broadcast %4 : vector<1x256xf32> to vector<256x256xf32>
    %6 = arith.addf %3, %5 : vector<256x256xf32>
    %cst_6 = arith.constant 0.000000e+00 : f32
    %7 = vector.broadcast %cst_6 : f32 to vector<256x256xf32>
    %8 = arith.maximumf %6, %7 : vector<256x256xf32>
    %c0_7 = arith.constant 0 : index
    %c0_8 = arith.constant 0 : index
    %c0_9 = arith.constant 0 : index
    %9 = vector.load %arg2[%c0_7, %c0_8, %c0_9] : memref<7x256x256xf32, #tpu.memory_space<vmem>>, vector<1x256x256xf32>
    %10 = vector.shape_cast %9 : vector<1x256x256xf32> to vector<256x256xf32>
    %cst_10 = arith.constant dense<0.000000e+00> : vector<256x256xf32>
    %11 = tpu.matmul %8, %10, %cst_10 {dimension_numbers = #tpu.dot_dimension_numbers<[1], [0], [0], [1], [0, 0, 1, 1], [], []>} : vector<256x256xf32>, vector<256x256xf32>, vector<256x256xf32> -> vector<256x256xf32>
    %c1 = arith.constant 1 : index
    %c0_11 = arith.constant 0 : index
    %12 = vector.load %arg4[%c1, %c0_11] : memref<8x256xf32, #tpu.memory_space<vmem>>, vector<1x256xf32>
    %13 = vector.broadcast %12 : vector<1x256xf32> to vector<256x256xf32>
    %14 = arith.addf %11, %13 : vector<256x256xf32>
    %cst_12 = arith.constant 0.000000e+00 : f32
    %15 = vector.broadcast %cst_12 : f32 to vector<256x256xf32>
    %16 = arith.maximumf %14, %15 : vector<256x256xf32>
    %c1_13 = arith.constant 1 : index
    %c0_14 = arith.constant 0 : index
    %c0_15 = arith.constant 0 : index
    %17 = vector.load %arg2[%c1_13, %c0_14, %c0_15] : memref<7x256x256xf32, #tpu.memory_space<vmem>>, vector<1x256x256xf32>
    %18 = vector.shape_cast %17 : vector<1x256x256xf32> to vector<256x256xf32>
    %cst_16 = arith.constant dense<0.000000e+00> : vector<256x256xf32>
    %19 = tpu.matmul %16, %18, %cst_16 {dimension_numbers = #tpu.dot_dimension_numbers<[1], [0], [0], [1], [0, 0, 1, 1], [], []>} : vector<256x256xf32>, vector<256x256xf32>, vector<256x256xf32> -> vector<256x256xf32>
    %c2 = arith.constant 2 : index
    %c0_17 = arith.constant 0 : index
    %20 = vector.load %arg4[%c2, %c0_17] : memref<8x256xf32, #tpu.memory_space<vmem>>, vector<1x256xf32>
    %21 = vector.broadcast %20 : vector<1x256xf32> to vector<256x256xf32>
    %22 = arith.addf %19, %21 : vector<256x256xf32>
    %cst_18 = arith.constant 0.000000e+00 : f32
    %23 = vector.broadcast %cst_18 : f32 to vector<256x256xf32>
    %24 = arith.maximumf %22, %23 : vector<256x256xf32>
    %c2_19 = arith.constant 2 : index
    %c0_20 = arith.constant 0 : index
    %c0_21 = arith.constant 0 : index
    %25 = vector.load %arg2[%c2_19, %c0_20, %c0_21] : memref<7x256x256xf32, #tpu.memory_space<vmem>>, vector<1x256x256xf32>
    %26 = vector.shape_cast %25 : vector<1x256x256xf32> to vector<256x256xf32>
    %cst_22 = arith.constant dense<0.000000e+00> : vector<256x256xf32>
    %27 = tpu.matmul %24, %26, %cst_22 {dimension_numbers = #tpu.dot_dimension_numbers<[1], [0], [0], [1], [0, 0, 1, 1], [], []>} : vector<256x256xf32>, vector<256x256xf32>, vector<256x256xf32> -> vector<256x256xf32>
    %c3 = arith.constant 3 : index
    %c0_23 = arith.constant 0 : index
    %28 = vector.load %arg4[%c3, %c0_23] : memref<8x256xf32, #tpu.memory_space<vmem>>, vector<1x256xf32>
    %29 = vector.broadcast %28 : vector<1x256xf32> to vector<256x256xf32>
    %30 = arith.addf %27, %29 : vector<256x256xf32>
    %cst_24 = arith.constant 0.000000e+00 : f32
    %31 = vector.broadcast %cst_24 : f32 to vector<256x256xf32>
    %32 = arith.maximumf %30, %31 : vector<256x256xf32>
    %c3_25 = arith.constant 3 : index
    %c0_26 = arith.constant 0 : index
    %c0_27 = arith.constant 0 : index
    %33 = vector.load %arg2[%c3_25, %c0_26, %c0_27] : memref<7x256x256xf32, #tpu.memory_space<vmem>>, vector<1x256x256xf32>
    %34 = vector.shape_cast %33 : vector<1x256x256xf32> to vector<256x256xf32>
    %cst_28 = arith.constant dense<0.000000e+00> : vector<256x256xf32>
    %35 = tpu.matmul %32, %34, %cst_28 {dimension_numbers = #tpu.dot_dimension_numbers<[1], [0], [0], [1], [0, 0, 1, 1], [], []>} : vector<256x256xf32>, vector<256x256xf32>, vector<256x256xf32> -> vector<256x256xf32>
    %c0_29 = arith.constant 0 : index
    %c0_30 = arith.constant 0 : index
    %36 = vector.load %arg1[%c0_29, %c0_30] : memref<256x99xf32, #tpu.memory_space<vmem>>, vector<256x99xf32>
    %c1_31 = arith.constant 1 : index
    %c0_32 = arith.constant 0 : index
    %c0_33 = arith.constant 0 : index
    %37 = vector.load %arg3[%c1_31, %c0_32, %c0_33] : memref<3x99x256xf32, #tpu.memory_space<vmem>>, vector<1x99x256xf32>
    %38 = vector.shape_cast %37 : vector<1x99x256xf32> to vector<99x256xf32>
    %cst_34 = arith.constant dense<0.000000e+00> : vector<256x256xf32>
    %39 = tpu.matmul %36, %38, %cst_34 {dimension_numbers = #tpu.dot_dimension_numbers<[1], [0], [0], [1], [0, 0, 1, 1], [], []>} : vector<256x99xf32>, vector<99x256xf32>, vector<256x256xf32> -> vector<256x256xf32>
    %40 = arith.addf %35, %39 : vector<256x256xf32>
    %c4 = arith.constant 4 : index
    %c0_35 = arith.constant 0 : index
    %41 = vector.load %arg4[%c4, %c0_35] : memref<8x256xf32, #tpu.memory_space<vmem>>, vector<1x256xf32>
    %42 = vector.broadcast %41 : vector<1x256xf32> to vector<256x256xf32>
    %43 = arith.addf %40, %42 : vector<256x256xf32>
    %cst_36 = arith.constant 0.000000e+00 : f32
    %44 = vector.broadcast %cst_36 : f32 to vector<256x256xf32>
    %45 = arith.maximumf %43, %44 : vector<256x256xf32>
    %c4_37 = arith.constant 4 : index
    %c0_38 = arith.constant 0 : index
    %c0_39 = arith.constant 0 : index
    %46 = vector.load %arg2[%c4_37, %c0_38, %c0_39] : memref<7x256x256xf32, #tpu.memory_space<vmem>>, vector<1x256x256xf32>
    %47 = vector.shape_cast %46 : vector<1x256x256xf32> to vector<256x256xf32>
    %cst_40 = arith.constant dense<0.000000e+00> : vector<256x256xf32>
    %48 = tpu.matmul %45, %47, %cst_40 {dimension_numbers = #tpu.dot_dimension_numbers<[1], [0], [0], [1], [0, 0, 1, 1], [], []>} : vector<256x256xf32>, vector<256x256xf32>, vector<256x256xf32> -> vector<256x256xf32>
    %c5 = arith.constant 5 : index
    %c0_41 = arith.constant 0 : index
    %49 = vector.load %arg4[%c5, %c0_41] : memref<8x256xf32, #tpu.memory_space<vmem>>, vector<1x256xf32>
    %50 = vector.broadcast %49 : vector<1x256xf32> to vector<256x256xf32>
    %51 = arith.addf %48, %50 : vector<256x256xf32>
    %cst_42 = arith.constant 0.000000e+00 : f32
    %52 = vector.broadcast %cst_42 : f32 to vector<256x256xf32>
    %53 = arith.maximumf %51, %52 : vector<256x256xf32>
    %c5_43 = arith.constant 5 : index
    %c0_44 = arith.constant 0 : index
    %c0_45 = arith.constant 0 : index
    %54 = vector.load %arg2[%c5_43, %c0_44, %c0_45] : memref<7x256x256xf32, #tpu.memory_space<vmem>>, vector<1x256x256xf32>
    %55 = vector.shape_cast %54 : vector<1x256x256xf32> to vector<256x256xf32>
    %cst_46 = arith.constant dense<0.000000e+00> : vector<256x256xf32>
    %56 = tpu.matmul %53, %55, %cst_46 {dimension_numbers = #tpu.dot_dimension_numbers<[1], [0], [0], [1], [0, 0, 1, 1], [], []>} : vector<256x256xf32>, vector<256x256xf32>, vector<256x256xf32> -> vector<256x256xf32>
    %c0_47 = arith.constant 0 : index
    %c0_48 = arith.constant 0 : index
    %57 = vector.load %arg1[%c0_47, %c0_48] : memref<256x99xf32, #tpu.memory_space<vmem>>, vector<256x99xf32>
    %c2_49 = arith.constant 2 : index
    %c0_50 = arith.constant 0 : index
    %c0_51 = arith.constant 0 : index
    %58 = vector.load %arg3[%c2_49, %c0_50, %c0_51] : memref<3x99x256xf32, #tpu.memory_space<vmem>>, vector<1x99x256xf32>
    %59 = vector.shape_cast %58 : vector<1x99x256xf32> to vector<99x256xf32>
    %cst_52 = arith.constant dense<0.000000e+00> : vector<256x256xf32>
    %60 = tpu.matmul %57, %59, %cst_52 {dimension_numbers = #tpu.dot_dimension_numbers<[1], [0], [0], [1], [0, 0, 1, 1], [], []>} : vector<256x99xf32>, vector<99x256xf32>, vector<256x256xf32> -> vector<256x256xf32>
    %61 = arith.addf %56, %60 : vector<256x256xf32>
    %c6 = arith.constant 6 : index
    %c0_53 = arith.constant 0 : index
    %62 = vector.load %arg4[%c6, %c0_53] : memref<8x256xf32, #tpu.memory_space<vmem>>, vector<1x256xf32>
    %63 = vector.broadcast %62 : vector<1x256xf32> to vector<256x256xf32>
    %64 = arith.addf %61, %63 : vector<256x256xf32>
    %cst_54 = arith.constant 0.000000e+00 : f32
    %65 = vector.broadcast %cst_54 : f32 to vector<256x256xf32>
    %66 = arith.maximumf %64, %65 : vector<256x256xf32>
    %c6_55 = arith.constant 6 : index
    %c0_56 = arith.constant 0 : index
    %c0_57 = arith.constant 0 : index
    %67 = vector.load %arg2[%c6_55, %c0_56, %c0_57] : memref<7x256x256xf32, #tpu.memory_space<vmem>>, vector<1x256x256xf32>
    %68 = vector.shape_cast %67 : vector<1x256x256xf32> to vector<256x256xf32>
    %cst_58 = arith.constant dense<0.000000e+00> : vector<256x256xf32>
    %69 = tpu.matmul %66, %68, %cst_58 {dimension_numbers = #tpu.dot_dimension_numbers<[1], [0], [0], [1], [0, 0, 1, 1], [], []>} : vector<256x256xf32>, vector<256x256xf32>, vector<256x256xf32> -> vector<256x256xf32>
    %c7 = arith.constant 7 : index
    %c0_59 = arith.constant 0 : index
    %70 = vector.load %arg4[%c7, %c0_59] : memref<8x256xf32, #tpu.memory_space<vmem>>, vector<1x256xf32>
    %71 = vector.broadcast %70 : vector<1x256xf32> to vector<256x256xf32>
    %72 = arith.addf %69, %71 : vector<256x256xf32>
    %73 = vector.extract_strided_slice %72 {offsets = [0, 0], sizes = [256, 128], strides = [1, 1]} : vector<256x256xf32> to vector<256x128xf32>
    %c0_60 = arith.constant 0 : index
    %c0_61 = arith.constant 0 : index
    %74 = vector.load %arg5[%c0_60, %c0_61] : memref<256x128xf32, #tpu.memory_space<vmem>>, vector<256x128xf32>
    tpu.vector_store %arg5[%c0_60, %c0_61], %73 {strides = array<i32>} : memref<256x128xf32, #tpu.memory_space<vmem>>, vector<256x128xf32>,
    return
  }
  func.func @transform_0(%arg0: i32) -> (i32, i32) {
    %c0_i32 = arith.constant 0 : i32
    %c0_i32_0 = arith.constant 0 : i32
    return %arg0, %c0_i32 : i32, i32
  }
  func.func @transform_1(%arg0: i32) -> (i32, i32, i32) {
    %c0_i32 = arith.constant 0 : i32
    %c0_i32_0 = arith.constant 0 : i32
    %c0_i32_1 = arith.constant 0 : i32
    %c0_i32_2 = arith.constant 0 : i32
    return %c0_i32, %c0_i32_0, %c0_i32_1 : i32, i32, i32
  }
  func.func @transform_2(%arg0: i32) -> (i32, i32, i32) {
    %c0_i32 = arith.constant 0 : i32
    %c0_i32_0 = arith.constant 0 : i32
    %c0_i32_1 = arith.constant 0 : i32
    %c0_i32_2 = arith.constant 0 : i32
    return %c0_i32, %c0_i32_0, %c0_i32_1 : i32, i32, i32
  }
  func.func @transform_3(%arg0: i32) -> (i32, i32) {
    %c0_i32 = arith.constant 0 : i32
    %c0_i32_0 = arith.constant 0 : i32
    %c0_i32_1 = arith.constant 0 : i32
    return %c0_i32, %c0_i32_0 : i32, i32
  }
  func.func @transform_4(%arg0: i32) -> (i32, i32) {
    %c0_i32 = arith.constant 0 : i32
    %c0_i32_0 = arith.constant 0 : i32
    return %arg0, %c0_i32 : i32, i32
  }
}

</mosaic_0001>

<bundles_post_ra>
// kernel: tpu_custom_call.1
= control target key start
LH: loop header
LB: loop body
LE: loop exit
PB: predicated region body
PF: predicated region fallthrough
CT: control target
= control target key end

     0   :  { %9 = vsyncpa [#allocation3], 0  ;;  %s6609_s0 = inlined_call_operand.vmem [shape: f32[512,99], index: 0, kind: input, shape index: {}]   ;;  %s6610_s1 = inlined_call_operand.hbm [shape: f32[7,256,256], index: 1, kind: input, shape index: {}]   ;;  %s6611_s2 = inlined_call_operand.hbm [shape: f32[3,99,256], index: 2, kind: input, shape index: {}]   ;;  %s6612_s3 = inlined_call_operand.hbm [shape: f32[8,256], index: 3, kind: input, shape index: {}]   ;;  %s6613_s4 = inlined_call_operand.hbm [shape: f32[512,128], index: 4, kind: output, shape index: {}]  }
   0x1   :  { %10 = vsyncpa [#allocation6], 0 }
   0x2   :  { %11 = vsyncpa [#allocation4], 0 }
   0x3   :  { %13 = vsyncpa [#allocation4 + $0x1], 0  ;;  %s5372_s15 = smov 0   ;;  %s5374_s16 = smov 0  }
   0x4   :  { %s5376_s17 = smov 0   ;;  %s5378_s18 = smov 0  }
   0x5 LB: > { %s5393_s19 = sadd.s32 4294967295, %s5336_s18   ;;  %s4274_s20 = sadd.s32 4294967294, %s5336_s18   ;;  %s5336_s18 = sphi %s5378_s18, %s6632_s18   ;;  %s5332_s17 = sphi %s5376_s17, %s6631_s17   ;;  %s5328_s16 = sphi %s5374_s16, %s6630_s16   ;;  %s5324_s15 = sphi %s5372_s15, %s6629_s15  }
   0x6   : > { %s5397_s21 = sadd.s32 1, %s5336_s18   ;;  %s115_s22 = sadd.s32 1, %s5332_s17 }
   0x7   : > { %s112_s23 = ssub.s32 %s5336_s18, %s5397_s21  ;;  %p125_p0 = scmp.ne.s32.totalorder %s5332_s17, %s5328_s16 }
   0x8   : > { %p113_p1 = scmp.eq.s32.totalorder %s112_s23, 0  ;;  %p126_p2 = scmp.eq.s32.totalorder %s5393_s19, 1 }
   0x9   : > { %p131_p3 = scmp.ne.s32.totalorder %s5328_s16, %s5324_s15  ;;  %p132_p4 = scmp.eq.s32.totalorder %s4274_s20, 1 }
   0xa   : > { %s5408_s24 = scalar_select %p113_p1, %s5332_s17, %s115_s22  }
   0xb   : > { %p5410_p5 = por %p126_p2, %p125_p0  ;;  %p5414_p6 = por %p132_p4, %p131_p3 }
   0xc   : > { %p4275_p7 = scmp.ge.s32.totalorder %s5336_s18, 1  ;;  %p139_p8 = scmp.lt.s32.totalorder %s5336_s18, 3 }
   0xd   : > { %s6617_s25 = scalar_select %p5410_p5, 1, 0 }
   0xe   : > { %s6618_s26 = scalar_select %p5414_p6, 1, 0 }
   0xf   : > { %p6614_p9 = scmp.eq.s32.totalorder %s5393_s19, 0  ;;  %p5421_p10 = pnand %p4275_p7, %p139_p8 }
  0x10   : > { %s5338_s28 = smov [#allocation5]   ;;  %s5339_s5 = smov [#allocation2]  }
  0x11   : > { %s6619_s27 = scalar_select %p5421_p10, 1, 0 }
  0x12   : > { %p5057_p11 = pneg %p5421_p10  ;;  %s164_s29 = sshll.u32 %s5338_s28, 4  ;;  %s5427_s29 = int_to_ptr.vmem [resolvable:$true] %s164_s29 }
  0x13   : > { %s151_s6 = sshll.u32 %s5339_s5, 4  ;;  %s5340_s7 = smov [#allocation7]   ;;  %s5435_s6 = int_to_ptr.vmem [resolvable:$true] %s151_s6 }
  0x14   : > { %p5431_p12 = pnand %p6614_p9, %p5057_p11  ;;  %s5437_s8 = sshll.u32 %s5340_s7, 4  ;;  %s179_s8 = int_to_ptr.vmem [resolvable:$true] %s5437_s8 }
  0x15   : > { %s5182_s11 = scalar_lea.hbm %s6611_s2, 9984 }
  0x16   : > { %p5183_p13 = scmp.ne.s32.totalorder %s6611_s2, %s5182_s11  ;;  %p5447_p0 = pneg %p5431_p12 }
  0x17   : > { %p5189_p3 = scmp.lt.u32.totalorder %s5182_s11, %s6611_s2 }
  0x18   : > { %p5185_p1 = pnand %p5447_p0, %p5183_p13 }
  0x1a   : > { %p5186_p2 = pneg %p5185_p1 }
  0x1c   : > { %p5191_p4 = pnand %p5189_p3, %p5186_p2 }
  0x1e   : > { %5194 = shalt.err (!%p5191_p4)
}
  0x1f   : > { %s5195_s23 = scalar_lea.vmem %s5427_s29, 9984  ;;  %p5203_p9 = scmp.lt.s32.totalorder %s5427_s29, %s5427_s29 }
  0x20   : > { %p5196_p7 = scmp.ne.s32.totalorder %s5427_s29, %s5195_s23  ;;  %p5204_p6 = scmp.lt.s32.totalorder %s5195_s23, %s5195_s23 }
  0x22   : > { %p5198_p8 = pnand %p5196_p7, %p5447_p0  ;;  %p5205_p13 = por %p5204_p6, %p5203_p9 }
  0x24   : > { %p5199_p11 = pneg %p5198_p8 }
  0x26   : > { %p5206_p1 = pnand %p5205_p13, %p5199_p11 }
  0x28   : > { %5209 = shalt.err (!%p5206_p1)
}
  0x29   : > { %s5341_s28 = smov 256   ;;  %s5342_s5 = smov 16  }
  0x2a   : > { %5063 = dma.hbm_to_vmem [thread:$0]  (!%p5431_p12), %s6611_s2, 9984, %s5427_s29, [#allocation6], %s5341_s28, %s5341_s28, %s5342_s5  }
  0x2b   : > { %s5210_s12 = scalar_lea.hbm %s6610_s1, 57344 }
  0x2c   : > { %p5211_p6 = scmp.ne.s32.totalorder %s6610_s1, %s5210_s12  ;;  %p5217_p3 = scmp.lt.u32.totalorder %s5210_s12, %s6610_s1 }
  0x2e   : > { %p5213_p9 = pnand %p5211_p6, %p5447_p0 }
  0x30   : > { %p5214_p2 = pneg %p5213_p9 }
  0x32   : > { %p5219_p4 = pnand %p5217_p3, %p5214_p2 }
  0x34   : > { %5222 = shalt.err (!%p5219_p4)
}
  0x35   : > { %s5223_s29 = scalar_lea.vmem %s5435_s6, 57344  ;;  %p5231_p13 = scmp.lt.s32.totalorder %s5435_s6, %s5435_s6 }
  0x36   : > { %p5224_p7 = scmp.ne.s32.totalorder %s5435_s6, %s5223_s29  ;;  %p5232_p1 = scmp.lt.s32.totalorder %s5223_s29, %s5223_s29 }
  0x38   : > { %p5226_p8 = pnand %p5224_p7, %p5447_p0  ;;  %p5233_p6 = por %p5232_p1, %p5231_p13 }
  0x3a   : > { %p5227_p11 = pneg %p5226_p8 }
  0x3c   : > { %p5234_p9 = pnand %p5233_p6, %p5227_p11 }
  0x3e   : > { %5237 = shalt.err (!%p5234_p9)
}
  0x3f   : > { %5060 = dma.hbm_to_vmem [thread:$0]  (!%p5431_p12), %s6610_s1, 57344, %s5435_s6, [#allocation3], %s5341_s28, %s5341_s28, %s5342_s5  }
  0x40   : > { %s5238_s12 = scalar_lea.hbm %s6612_s3, 256 }
  0x41   : > { %p5239_p2 = scmp.ne.s32.totalorder %s6612_s3, %s5238_s12  ;;  %p5245_p7 = scmp.lt.u32.totalorder %s5238_s12, %s6612_s3 }
  0x43   : > { %p5241_p3 = pnand %p5239_p2, %p5447_p0 }
  0x45   : > { %p5242_p4 = pneg %p5241_p3 }
  0x47   : > { %p5247_p8 = pnand %p5245_p7, %p5242_p4 }
  0x49   : > { %5250 = shalt.err (!%p5247_p8)
}
  0x4a   : > { %s5251_s29 = scalar_lea.vmem %s179_s8, 256  ;;  %p5259_p6 = scmp.lt.s32.totalorder %s179_s8, %s179_s8 }
  0x4b   : > { %p5252_p11 = scmp.ne.s32.totalorder %s179_s8, %s5251_s29  ;;  %p5260_p9 = scmp.lt.s32.totalorder %s5251_s29, %s5251_s29 }
  0x4d   : > { %p5254_p13 = pnand %p5252_p11, %p5447_p0  ;;  %p5261_p5 = por %p5260_p9, %p5259_p6 }
  0x4f   : > { %p5255_p1 = pneg %p5254_p13 }
  0x51   : > { %p5262_p10 = pnand %p5261_p5, %p5255_p1 }
  0x53   : > { %5265 = shalt.err (!%p5262_p10)
}
  0x54   : > { %5066 = dma.hbm_to_vmem [thread:$0]  (!%p5431_p12), %s6612_s3, 256, %s179_s8, [#allocation6]  }
  0x55   : > { %p6622_p2 = scmp.ne.s32.totalorder %s6619_s27, 0 }
  0x56   : > { %p6623_p3 = scmp.eq.s32.totalorder (!%p6622_p2), %s5393_s19, 0 }
  0x57   : > { %200 = sbr.rel (%p6622_p2) target bundleno = 2045 (0x7fd), region = 36 }
  0x5e   : > { %5311 = dma.done.wait (%p6623_p3), [#allocation3], 57344   ;;  %p6624_p0 = pmov %p6623_p3 }
  0x60   : > { %5313 = vsyncadd (%p6624_p0), [#allocation3], 4294909952  ;;  %p6625_p4 = pmov %p6624_p0 }
  0x61   : > { %p6626_p5 = pmov %p6624_p0 }
  0x62   : > { %5315 = dma.done.wait (%p6625_p4), [#allocation6], 10240  }
  0x63   : > { %5317 = vsyncadd (%p6626_p5), [#allocation6], 4294957056  ;;  %v5343_v0 = vmov 0.0   ;;  %v274_v1 = vld [vmem:[#allocation5 + $0x8] sm:$0xff]  ;;  %v276_v2 = vld [vmem:[#allocation5 + $0x18] sm:$0xff]  ;;  %s4285_s27 = sshll.u32 %s5393_s19, 5 }
  0x64   : > { %479 = vmatprep.mubr.f32.mxu0 %v5343_v0  ;;  %v273_v3 = vld [vmem:[#allocation5] sm:$0xff]  ;;  %v4395_v4 = vpack.c.bf16 %v276_v2, %v274_v1  ;;  %v275_v5 = vld [vmem:[#allocation5 + $0x10] sm:$0xff]  ;;  %v278_v6 = vld [vmem:[#allocation5 + $0x28] sm:$0xff]  ;;  %p235_p10 = scmp.lt.s32.totalorder %s4285_s27, 63  ;;  %vm408_vm0 = vcmask 1042432   ;;  %vm311_vm1 = vcmask 809984  }
  0x65   : > { %v280_v7 = vld [vmem:[#allocation5 + $0x38] sm:$0xff]  ;;  %v4397_v8 = vpack.c.bf16 %v275_v5, %v273_v3  ;;  %v277_v10 = vld [vmem:[#allocation5 + $0x20] sm:$0xff]  ;;  %v279_v11 = vld [vmem:[#allocation5 + $0x30] sm:$0xff]  ;;  %s231_s7 = sand.u32 1, %s5328_s16   ;;  %s4394_s11 = sshll.u32 %s5393_s19, 12 }
  0x66   : > { %v4399_v9 = vpack.c.bf16 %v280_v7, %v278_v6  ;;  %v282_v12 = vld [vmem:[#allocation5 + $0x48] sm:$0xff]  ;;  %4396 = vmatprep.subr.bf16.mxu0 %v4395_v4  ;;  %v284_v13 = vld [vmem:[#allocation5 + $0x58] sm:$0xff]  ;;  %v4401_v14 = vpack.c.bf16 %v279_v11, %v277_v10  ;;  %v281_v16 = vld [vmem:[#allocation5 + $0x40] sm:$0xff]  ;;  %s6634_s27 = smov (!%p235_p10, %s4285_s27), 63  ;;  %s4284_s9 = sshll.u32 %s231_s7, 8 }
  0x67   : > { %4398 = vmatpush1.bf16.msra.mxu0 %v4397_v8  ;;  %v4403_v15 = vpack.c.bf16 %v284_v13, %v282_v12  ;;  %v283_v17 = vld [vmem:[#allocation5 + $0x50] sm:$0xff]  ;;  %v286_v18 = vld [vmem:[#allocation5 + $0x68] sm:$0xff]  ;;  %v288_v19 = vld [vmem:[#allocation5 + $0x78] sm:$0xff]  ;;  %s4286_s30 = sshll.u32 %s6634_s27, 3  ;;  %s6492_s10 = scalar_lea.vmem [#allocation8], %s4284_s9 }
  0x68   : > { %4400 = vmatprep.subr.bf16.mxu0 %v4399_v9  ;;  %v4405_v20 = vpack.c.bf16 %v283_v17, %v281_v16  ;;  %v4407_v21 = vpack.c.bf16 %v288_v19, %v286_v18  ;;  %v285_v22 = vld [vmem:[#allocation5 + $0x60] sm:$0xff]  ;;  %v287_v23 = vld [vmem:[#allocation5 + $0x70] sm:$0xff]  ;;  %v290_v24 = vld [vmem:[#allocation5 + $0x88] sm:$0xff]  ;;  %s5525_s5 = scalar_lea.vmem %s6609_s0, %s4286_s30  ;;  %s4181_s12 = sshll.u32 %s6492_s10, 4  ;;  %s6562_s12 = int_to_ptr.vmem [resolvable:$true] %s4181_s12 }
  0x69   : > { %v292_v25 = vld [vmem:[#allocation5 + $0x98] sm:$0xff]  ;;  %v4409_v26 = vpack.c.bf16 %v287_v23, %v285_v22  ;;  %v289_v28 = vld [vmem:[#allocation5 + $0x80] sm:$0xff]  ;;  %v291_v29 = vld [vmem:[#allocation5 + $0x90] sm:$0xff]  ;;  %s6560_s22 = scalar_lea.hbm %s6613_s4, %s4394_s11  ;;  %s6568_s23 = scalar_lea.sflag [#allocation4], %s231_s7 }
  0x6a   : > { %v4411_v27 = vpack.c.bf16 %v292_v25, %v290_v24  ;;  %v294_v30 = vld [vmem:[#allocation5 + $0xa8] sm:$0xff]  ;;  %v296_v31 = vld [vmem:[#allocation5 + $0xb8] sm:$0xff]  ;;  %v4413_v32 = vpack.c.bf16 %v291_v29, %v289_v28  ;;  %v293_v34 = vld [vmem:[#allocation5 + $0xa0] sm:$0xff]  ;;  %s5266_s19 = scalar_lea.vmem %s6562_s12, 4096  ;;  %p6627_p7 = scmp.ne.s32.totalorder %s6617_s25, 0 }
  0x6b   : > { %4402 = vmatpush1.bf16.msra.mxu0 %v4401_v14  ;;  %v4415_v33 = vpack.c.bf16 %v296_v31, %v294_v30  ;;  %v295_v35 = vld [vmem:[#allocation5 + $0xb0] sm:$0xff]  ;;  %v298_v37 = vld [vmem:[#allocation5 + $0xc8] sm:$0x7]  ;;  %v297_v38 = vld [vmem:[#allocation5 + $0xc0] sm:$0x7]  ;;  %p5267_p12 = scmp.ne.s32.totalorder %s6562_s12, %s5266_s19  ;;  %s5344_s29 = smov [#allocation8]  }
  0x6c   : > { %4404 = vmatprep.subr.bf16.mxu0 %v4403_v15  ;;  %v4417_v36 = vpack.c.bf16 %v295_v35, %v293_v34  ;;  %v241_v39 = vld [vmem:[%s5525_s5] sm:$0xff]  ;;  %v737_v40 = vld [vmem:[#allocation2 + $0x8] sm:$0xff]  ;;  %v739_v41 = vld [vmem:[#allocation2 + $0x18] sm:$0xff]  ;;  %s5270_s6 = sshll.u32 %s5344_s29, 4  ;;  %s5271_s6 = int_to_ptr.vmem [resolvable:$false] %s5270_s6 }
  0x6d   : > { %v736_v42 = vld [vmem:[#allocation2] sm:$0xff]  ;;  %v4419_v43 = vpack.c.bf16 %v739_v41, %v737_v40  ;;  %v738_v44 = vld [vmem:[#allocation2 + $0x10] sm:$0xff]  ;;  %v741_v45 = vld [vmem:[#allocation2 + $0x28] sm:$0xff]  ;;  %p5268_p8 = pnand %p5267_p12, %p6627_p7  ;;  %s5272_s28 = scalar_lea.vmem %s5271_s6, 8192 }
  0x6e   : > { %v743_v46 = vld [vmem:[#allocation2 + $0x38] sm:$0xff]  ;;  %v4421_v47 = vpack.c.bf16 %v738_v44, %v736_v42  ;;  %v740_v49 = vld [vmem:[#allocation2 + $0x20] sm:$0xff]  ;;  %v742_v50 = vld [vmem:[#allocation2 + $0x30] sm:$0xff]  ;;  %p5273_p13 = scmp.lt.s32.totalorder %s6562_s12, %s5271_s6  ;;  %p5274_p1 = scmp.lt.s32.totalorder %s5272_s28, %s5266_s19 }
  0x6f   : > { %4406 = vmatpush1.bf16.msra.mxu0 %v4405_v20  ;;  %v4423_v48 = vpack.c.bf16 %v743_v46, %v741_v45  ;;  %v745_v51 = vld [vmem:[#allocation2 + $0x48] sm:$0xff]  ;;  %4420 = vmatprep.subr.bf16.mxu1 %v4419_v43  ;;  %v747_v52 = vld [vmem:[#allocation2 + $0x58] sm:$0xff]  ;;  %v4425_v53 = vpack.c.bf16 %v742_v50, %v740_v49  ;;  %v744_v56 = vld [vmem:[#allocation2 + $0x40] sm:$0xff]  ;;  %p5269_p11 = pneg %p5268_p8 }
  0x70   : > { %4408 = vmatprep.subr.bf16.mxu0 %v4407_v21  ;;  %4422 = vmatpush1.bf16.msra.mxu1 %v4421_v47  ;;  %v242_v54 = vld [vmem:[%s5525_s5 + $0x8] sm:$0xff]  ;;  %v4427_v55 = vpack.c.bf16 %v747_v52, %v745_v51  ;;  %v746_v57 = vld [vmem:[#allocation2 + $0x50] sm:$0xff]  ;;  %v751_v59 = vld [vmem:[#allocation2 + $0x78] sm:$0xff]  ;;  %p5275_p6 = por %p5274_p1, %p5273_p13 }
  0x71   : > { %4424 = vmatprep.subr.bf16.mxu1 %v4423_v48  ;;  %v749_v58 = vld [vmem:[#allocation2 + $0x68] sm:$0xff]  ;;  %v4429_v60 = vpack.c.bf16 %v746_v57, %v744_v56  ;;  %v243_v61 = vld [vmem:[%s5525_s5 + $0x10] sm:$0xff]  ;;  %v748_v63 = vld [vmem:[#allocation2 + $0x60] sm:$0xff] }
  0x72   : > { %v4431_v62 = vpack.c.bf16 %v751_v59, %v749_v58  ;;  %v750_v1 = vld [vmem:[#allocation2 + $0x70] sm:$0xff]  ;;  %v753_v2 = vld [vmem:[#allocation2 + $0x88] sm:$0xff]  ;;  %v755_v3 = vld [vmem:[#allocation2 + $0x98] sm:$0xff]  ;;  %p5276_p9 = pnand %p5275_p6, %p5269_p11 }
  0x73   : > { %4410 = vmatpush1.bf16.msra.mxu0 %v4409_v26  ;;  %v4433_v4 = vpack.c.bf16 %v750_v1, %v748_v63  ;;  %v244_v5 = vld [vmem:[%s5525_s5 + $0x18] sm:$0xff]  ;;  %v4435_v6 = vpack.c.bf16 %v755_v3, %v753_v2  ;;  %v752_v7 = vld [vmem:[#allocation2 + $0x80] sm:$0xff]  ;;  %v754_v8 = vld [vmem:[#allocation2 + $0x90] sm:$0xff] }
  0x74   : > { %4412 = vmatprep.subr.bf16.mxu0 %v4411_v27  ;;  %4426 = vmatpush1.bf16.msra.mxu1 %v4425_v53  ;;  %v757_v9 = vld [vmem:[#allocation2 + $0xa8] sm:$0xff]  ;;  %v759_v10 = vld [vmem:[#allocation2 + $0xb8] sm:$0xff]  ;;  %v4437_v11 = vpack.c.bf16 %v754_v8, %v752_v7  ;;  %v245_v12 = vld [vmem:[%s5525_s5 + $0x20] sm:$0xff] }
  0x75   : > { %4428 = vmatprep.subr.bf16.mxu1 %v4427_v55  ;;  %v4439_v13 = vpack.c.bf16 %v759_v10, %v757_v9  ;;  %v756_v14 = vld [vmem:[#allocation2 + $0xa0] sm:$0xff]  ;;  %v758_v15 = vld [vmem:[#allocation2 + $0xb0] sm:$0xff]  ;;  %v761_v16 = vld [vmem:[#allocation2 + $0xc8] sm:$0xff] }
  0x76   : > { %v763_v17 = vld [vmem:[#allocation2 + $0xd8] sm:$0xff]  ;;  %v4441_v18 = vpack.c.bf16 %v758_v15, %v756_v14  ;;  %v246_v19 = vld [vmem:[%s5525_s5 + $0x28] sm:$0xff]  ;;  %v760_v21 = vld [vmem:[#allocation2 + $0xc0] sm:$0xff] }
  0x77   : > { %4414 = vmatpush1.bf16.msra.mxu0 %v4413_v32  ;;  %v4443_v20 = vpack.c.bf16 %v763_v17, %v761_v16  ;;  %v762_v22 = vld [vmem:[#allocation2 + $0xd0] sm:$0xff]  ;;  %v765_v23 = vld [vmem:[#allocation2 + $0xe8] sm:$0xff]  ;;  %v767_v24 = vld [vmem:[#allocation2 + $0xf8] sm:$0xff] }
  0x78   : > { %4416 = vmatprep.subr.bf16.mxu0 %v4415_v33  ;;  %4430 = vmatpush1.bf16.msra.mxu1 %v4429_v60  ;;  %v4445_v25 = vpack.c.bf16 %v762_v22, %v760_v21  ;;  %v247_v26 = vld [vmem:[%s5525_s5 + $0x30] sm:$0xff]  ;;  %v4447_v27 = vpack.c.bf16 %v767_v24, %v765_v23  ;;  %v764_v28 = vld [vmem:[#allocation2 + $0xe0] sm:$0xff]  ;;  %v769_v30 = vld [vmem:[#allocation2 + $0x108] sm:$0xff] }
  0x79   : > { %4432 = vmatprep.subr.bf16.mxu1 %v4431_v62  ;;  %v766_v29 = vld [vmem:[#allocation2 + $0xf0] sm:$0xff]  ;;  %v771_v31 = vld [vmem:[#allocation2 + $0x118] sm:$0xff]  ;;  %v768_v35 = vld [vmem:[#allocation2 + $0x100] sm:$0xff] }
  0x7a   : > { %v4449_v32 = vpack.c.bf16 %v766_v29, %v764_v28  ;;  %v248_v33 = vld [vmem:[%s5525_s5 + $0x38] sm:$0xff]  ;;  %v4451_v34 = vpack.c.bf16 %v771_v31, %v769_v30  ;;  %v249_v40 = vld [vmem:[%s5525_s5 + $0x40] sm:$0xff]  ;;  %v774_v43 = vld [vmem:[#allocation2 + $0x130] sm:$0xff] }
  0x7b   : > { %4418 = vmatpush1.bf16.msra.mxu0 %v4417_v36  ;;  %v770_v36 = vld [vmem:[#allocation2 + $0x110] sm:$0xff]  ;;  %v772_v42 = vld [vmem:[#allocation2 + $0x120] sm:$0xff]  ;;  %v777_v44 = vld [vmem:[#allocation2 + $0x148] sm:$0xff] }
  0x7c   : > { %4287 = vmatprep.subr.msk.mxu0 %vm408_vm0, %v298_v37  ;;  %4434 = vmatpush1.bf16.msra.mxu1 %v4433_v4  ;;  %v773_v37 = vld [vmem:[#allocation2 + $0x128] sm:$0xff]  ;;  %v779_v45 = vld [vmem:[#allocation2 + $0x158] sm:$0xff]  ;;  %v4457_v46 = vpack.c.bf16 %v774_v43, %v772_v42  ;;  %v776_v49 = vld [vmem:[#allocation2 + $0x140] sm:$0xff] }
  0x7d   : > { %4436 = vmatprep.subr.bf16.mxu1 %v4435_v6  ;;  %v250_v47 = vld [vmem:[%s5525_s5 + $0x48] sm:$0xff]  ;;  %v4459_v48 = vpack.c.bf16 %v779_v45, %v777_v44  ;;  %v778_v50 = vld [vmem:[#allocation2 + $0x150] sm:$0xff]  ;;  %v783_v52 = vld [vmem:[#allocation2 + $0x178] sm:$0xff] }
  0x7e   : > { %v781_v51 = vld [vmem:[#allocation2 + $0x168] sm:$0xff]  ;;  %v4461_v53 = vpack.c.bf16 %v778_v50, %v776_v49  ;;  %v780_v56 = vld [vmem:[#allocation2 + $0x160] sm:$0xff]  ;;  %v782_v57 = vld [vmem:[#allocation2 + $0x170] sm:$0xff] }
  0x7f   : > { %4288 = vmatpush1.msk.msra.mxu0 %vm408_vm0, %v297_v38  ;;  %v775_v38 = vld [vmem:[#allocation2 + $0x138] sm:$0xff]  ;;  %v4463_v55 = vpack.c.bf16 %v783_v52, %v781_v51  ;;  %v785_v58 = vld [vmem:[#allocation2 + $0x188] sm:$0xff]  ;;  %v4465_v60 = vpack.c.bf16 %v782_v57, %v780_v56  ;;  %v784_v63 = vld [vmem:[#allocation2 + $0x180] sm:$0xff] }
  0x80   : > { %4289 = vmatmul.mubr.msk.f32.vlgmr.msra.gmra.mrb[0].mxu0 %vm311_vm1, %v241_v39  ;;  %4438 = vmatpush1.bf16.msra.mxu1 %v4437_v11  ;;  %v4453_v39 = vpack.c.bf16 %v770_v36, %v768_v35  ;;  %v4455_v41 = vpack.c.bf16 %v775_v38, %v773_v37  ;;  %v787_v59 = vld [vmem:[#allocation2 + $0x198] sm:$0xff]  ;;  %v786_v1 = vld [vmem:[#allocation2 + $0x190] sm:$0xff]  ;;  %v789_v2 = vld [vmem:[#allocation2 + $0x1a8] sm:$0xff] }
  0x81   : > { %485 = vmatprep.mubr.f32.mxu0 %v5343_v0  ;;  %4440 = vmatprep.subr.bf16.mxu1 %v4439_v13  ;;  %v4467_v62 = vpack.c.bf16 %v787_v59, %v785_v58  ;;  %v791_v3 = vld [vmem:[#allocation2 + $0x1b8] sm:$0xff]  ;;  %v4469_v4 = vpack.c.bf16 %v786_v1, %v784_v63  ;;  %v788_v7 = vld [vmem:[#allocation2 + $0x1a0] sm:$0xff]  ;;  %v790_v8 = vld [vmem:[#allocation2 + $0x1b0] sm:$0xff] }
  0x82   : > { %v4471_v6 = vpack.c.bf16 %v791_v3, %v789_v2  ;;  %v793_v9 = vld [vmem:[#allocation2 + $0x1c8] sm:$0xff]  ;;  %v795_v10 = vld [vmem:[#allocation2 + $0x1d8] sm:$0xff]  ;;  %v4473_v11 = vpack.c.bf16 %v790_v8, %v788_v7  ;;  %v255_v14 = vld [vmem:[%s5525_s5 + $0x70] sm:$0xff] }
  0x83   : > { %v4475_v13 = vpack.c.bf16 %v795_v10, %v793_v9  ;;  %v256_v15 = vld [vmem:[%s5525_s5 + $0x78] sm:$0xff]  ;;  %v257_v16 = vld [vmem:[%s5525_s5 + $0x80] sm:$0xff]  ;;  %v258_v17 = vld [vmem:[%s5525_s5 + $0x88] sm:$0xff] }
  0x84   : > { %4290 = vmatmul.mubr.msk.f32.gmra.mrb[2].mxu0 %vm311_vm1, %v242_v54  ;;  %4442 = vmatpush1.bf16.msra.mxu1 %v4441_v18  ;;  %v251_v54 = vld [vmem:[%s5525_s5 + $0x50] sm:$0xff]  ;;  %v792_v21 = vld [vmem:[#allocation2 + $0x1c0] sm:$0xff]  ;;  %v262_v23 = vld [vmem:[%s5525_s5 + $0xa8] sm:$0xff] }
  0x85   : > { %491 = vmatprep.mubr.f32.mxu0 %v5343_v0  ;;  %4444 = vmatprep.subr.bf16.mxu1 %v4443_v20  ;;  %v259_v18 = vld [vmem:[%s5525_s5 + $0x90] sm:$0xff]  ;;  %v261_v20 = vld [vmem:[%s5525_s5 + $0xa0] sm:$0xff]  ;;  %v268_v36 = vld [vmem:[%s5525_s5 + $0xd8] sm:$0xff] }
  0x86   : > { %v794_v22 = vld [vmem:[#allocation2 + $0x1d0] sm:$0xff]  ;;  %v796_v28 = vld [vmem:[#allocation2 + $0x1e0] sm:$0xff]  ;;  %v270_v38 = vld [vmem:[%s5525_s5 + $0xe8] sm:$0xff] }
  0x87   : > { %v4477_v24 = vpack.c.bf16 %v794_v22, %v792_v21  ;;  %v798_v29 = vld [vmem:[#allocation2 + $0x1f0] sm:$0xff]  ;;  %v269_v37 = vld [vmem:[%s5525_s5 + $0xe0] sm:$0xff]  ;;  %v1138_v42 = vld [vmem:[#allocation2 + $0x218] sm:$0xff] }
  0x88   : > { %4291 = vmatmul.mubr.msk.f32.gmra.mrb[4].mxu0 %vm311_vm1, %v243_v61  ;;  %4446 = vmatpush1.bf16.msra.mxu1 %v4445_v25  ;;  %v252_v61 = vld [vmem:[%s5525_s5 + $0x58] sm:$0xff]  ;;  %v797_v25 = vld [vmem:[#allocation2 + $0x1e8] sm:$0xff]  ;;  %v263_v30 = vld [vmem:[%s5525_s5 + $0xb0] sm:$0xff]  ;;  %v4481_v31 = vpack.c.bf16 %v798_v29, %v796_v28 }
  0x89   : > { %497 = vmatprep.mubr.f32.mxu0 %v5343_v0  ;;  %4448 = vmatprep.subr.bf16.mxu1 %v4447_v27  ;;  %v267_v35 = vld [vmem:[%s5525_s5 + $0xd0] sm:$0xff]  ;;  %v1135_v44 = vld [vmem:[#allocation2 + $0x200] sm:$0xff]  ;;  %v1148_v1 = vld [vmem:[#allocation2 + $0x268] sm:$0xff] }
  0x8a   : > { %v1137_v45 = vld [vmem:[#allocation2 + $0x210] sm:$0xff]  ;;  %v1139_v50 = vld [vmem:[#allocation2 + $0x220] sm:$0xff]  ;;  %v1150_v2 = vld [vmem:[#allocation2 + $0x278] sm:$0xff] }
  0x8b   : > { %v1141_v51 = vld [vmem:[#allocation2 + $0x230] sm:$0xff]  ;;  %v1143_v57 = vld [vmem:[#allocation2 + $0x240] sm:$0xff]  ;;  %v4495_v3 = vpack.c.bf16 %v1150_v2, %v1148_v1  ;;  %v1152_v10 = vld [vmem:[#allocation2 + $0x288] sm:$0xff] }
  0x8c   : > { %4292 = vmatmul.mubr.msk.f32.gmra.mrb[6].mxu0 %vm311_vm1, %v244_v5  ;;  %4450 = vmatpush1.bf16.msra.mxu1 %v4449_v32  ;;  %v253_v5 = vld [vmem:[%s5525_s5 + $0x60] sm:$0xff]  ;;  %v264_v32 = vld [vmem:[%s5525_s5 + $0xb8] sm:$0xff]  ;;  %v4489_v52 = vpack.c.bf16 %v1141_v51, %v1139_v50  ;;  %v1145_v58 = vld [vmem:[#allocation2 + $0x250] sm:$0xff] }
  0x8d   : > { %503 = vmatprep.mubr.f32.mxu0 %v5343_v0  ;;  %4452 = vmatprep.subr.bf16.mxu1 %v4451_v34  ;;  %v266_v34 = vld [vmem:[%s5525_s5 + $0xc8] sm:$0xff]  ;;  %v1155_v21 = vld [vmem:[#allocation2 + $0x2a0] sm:$0xff] }
  0x90   : > { %4293 = vmatmul.mubr.msk.f32.gmra.mrb[8].mxu0 %vm311_vm1, %v245_v12  ;;  %4454 = vmatpush1.bf16.msra.mxu1 %v4453_v39  ;;  %v254_v12 = vld [vmem:[%s5525_s5 + $0x68] sm:$0xff]  ;;  %v271_v39 = vld [vmem:[%s5525_s5 + $0xf0] sm:$0xff] }
  0x91   : > { %509 = vmatprep.mubr.f32.mxu0 %v5343_v0  ;;  %4456 = vmatprep.subr.bf16.mxu1 %v4455_v41  ;;  %v1136_v41 = vld [vmem:[#allocation2 + $0x208] sm:$0xff] }
  0x92   : > { %v4483_v43 = vpack.c.bf16 %v1138_v42, %v1136_v41 }
  0x94   : > { %4294 = vmatmul.mubr.msk.f32.gmra.mrb[10].mxu0 %vm311_vm1, %v246_v19  ;;  %4458 = vmatpush1.bf16.msra.mxu1 %v4457_v46  ;;  %v260_v19 = vld [vmem:[%s5525_s5 + $0x98] sm:$0xff]  ;;  %v4485_v46 = vpack.c.bf16 %v1137_v45, %v1135_v44  ;;  %v1163_v45 = vld [vmem:[#allocation2 + $0x2e0] sm:$0xff] }
  0x95   : > { %515 = vmatprep.mubr.f32.mxu0 %v5343_v0  ;;  %4460 = vmatprep.subr.bf16.mxu1 %v4459_v48  ;;  %v1142_v48 = vld [vmem:[#allocation2 + $0x238] sm:$0xff] }
  0x96   : > { %4484 = vmatprep.subr.bf16.mxu0 %v4483_v43 }
  0x97   : > { %4486 = vmatpush1.bf16.msra.mxu0 %v4485_v46  ;;  %v1165_v46 = vld [vmem:[#allocation2 + $0x2f0] sm:$0xff] }
  0x98   : > { %4295 = vmatmul.mubr.msk.f32.gmra.mrb[12].mxu0 %vm311_vm1, %v247_v26  ;;  %4462 = vmatpush1.bf16.msra.mxu1 %v4461_v53  ;;  %v799_v26 = vld [vmem:[#allocation2 + $0x1f8] sm:$0xff]  ;;  %v301_v53 = vlaneseq }
  0x99   : > { %521 = vmatprep.mubr.f32.mxu0 %v5343_v0  ;;  %4464 = vmatprep.subr.bf16.mxu1 %v4463_v55  ;;  %v4479_v27 = vpack.c.bf16 %v799_v26, %v797_v25  ;;  %v1146_v55 = vld [vmem:[#allocation2 + $0x258] sm:$0xff]  ;;  %v1157_v25 = vld [vmem:[#allocation2 + $0x2b0] sm:$0xff]  ;;  %v1160_v26 = vld [vmem:[#allocation2 + $0x2c8] sm:$0xff] }
  0x9a   : > { %v302_v59 = vshrl.u32 %v301_v53, 7 }
  0x9c   : > { %4296 = vmatmul.mubr.msk.f32.gmra.mrb[14].mxu0 %vm311_vm1, %v248_v33  ;;  %4466 = vmatpush1.bf16.msra.mxu1 %v4465_v60  ;;  %v265_v33 = vld [vmem:[%s5525_s5 + $0xc0] sm:$0xff]  ;;  %v4493_v60 = vpack.c.bf16 %v1145_v58, %v1143_v57  ;;  %v5626_v63 = vsub.s32 1, %v302_v59  ;;  %v1169_v58 = vld [vmem:[#allocation2 + $0x310] sm:$0xff] }
  0x9d   : > { %527 = vmatprep.mubr.f32.mxu0 %v5343_v0  ;;  %4468 = vmatprep.subr.bf16.mxu1 %v4467_v62  ;;  %v299_v62 = vld [vmem:[#allocation7] ss:$8 sm:$0x3]  ;;  %v1167_v57 = vld [vmem:[#allocation2 + $0x300] sm:$0xff] }
  0x9e   : > { %v5632_v8 = vrot.slane %v299_v62, %v5626_v63 }
  0xa0   : > { %4297 = vmatmul.mubr.msk.f32.gmra.mrb[16].mxu0 %vm311_vm1, %v249_v40  ;;  %4470 = vmatpush1.bf16.msra.mxu1 %v4469_v4  ;;  %v272_v40 = vld [vmem:[%s5525_s5 + $0xf8] sm:$0xff]  ;;  %v1147_v4 = vld [vmem:[#allocation2 + $0x260] sm:$0xff] }
  0xa1   : > { %533 = vmatprep.mubr.f32.mxu0 %v5343_v0  ;;  %4472 = vmatprep.subr.bf16.mxu1 %v4471_v6 }
  0xa4   : > { %4298 = vmatmul.mubr.msk.f32.gmra.mrb[18].mxu0 %vm311_vm1, %v250_v47  ;;  %4474 = vmatpush1.bf16.msra.mxu1 %v4473_v11  ;;  %v1140_v47 = vld [vmem:[#allocation2 + $0x228] sm:$0xff]  ;;  %v1154_v11 = vld [vmem:[#allocation2 + $0x298] sm:$0xff] }
  0xa5   : > { %539 = vmatprep.mubr.f32.mxu0 %v5343_v0  ;;  %4476 = vmatprep.subr.bf16.mxu1 %v4475_v13  ;;  %v4487_v49 = vpack.c.bf16 %v1142_v48, %v1140_v47  ;;  %v1168_v48 = vld [vmem:[#allocation2 + $0x308] sm:$0xff] }
  0xa7   : > { %4488 = vmatprep.subr.bf16.mxu0 %v4487_v49  ;;  %v1170_v49 = vld [vmem:[#allocation2 + $0x318] sm:$0xff] }
  0xa8   : > { %4299 = vmatmul.mubr.msk.f32.gmra.mrb[20].mxu0 %vm311_vm1, %v251_v54  ;;  %4478 = vmatpush1.bf16.msra.mxu1 %v4477_v24  ;;  %v1144_v54 = vld [vmem:[#allocation2 + $0x248] sm:$0xff] }
  0xa9   : > { %545 = vmatprep.mubr.f32.mxu0 %v5343_v0  ;;  %4480 = vmatprep.subr.bf16.mxu1 %v4479_v27  ;;  %v4491_v56 = vpack.c.bf16 %v1146_v55, %v1144_v54  ;;  %v1162_v27 = vld [vmem:[#allocation2 + $0x2d8] sm:$0xff] }
  0xaa   : > { %4490 = vmatpush1.bf16.msra.mxu0 %v4489_v52  ;;  %v4513_v52 = vpack.c.bf16 %v1165_v46, %v1163_v45  ;;  %v1183_v46 = vld [vmem:[#allocation2 + $0x380] sm:$0xff] }
  0xab   : > { %4492 = vmatprep.subr.bf16.mxu0 %v4491_v56  ;;  %v4515_v56 = vpack.c.bf16 %v1170_v49, %v1168_v48  ;;  %v1188_v49 = vld [vmem:[#allocation2 + $0x3a8] sm:$0xff] }
  0xac   : > { %4300 = vmatmul.mubr.msk.f32.gmra.mrb[22].mxu0 %vm311_vm1, %v252_v61  ;;  %4482 = vmatpush1.bf16.msra.mxu1 %v4481_v31  ;;  %v5624_v61 = vsub.s32 0, %v302_v59  ;;  %v4505_v31 = vpack.c.bf16 %v1157_v25, %v1155_v21  ;;  %v1180_v25 = vld [vmem:[#allocation2 + $0x368] sm:$0xff] }
  0xad   : > { %551 = vmatprep.mubr.f32.mxu0 %v5343_v0 }
  0xae   : > { %4494 = vmatpush1.bf16.msra.mxu0 %v4493_v60  ;;  %v5629_v6 = vrot.slane %v299_v62, %v5624_v61  ;;  %v1172_v60 = vld [vmem:[#allocation2 + $0x328] sm:$0xff]  ;;  %v1174_v62 = vld [vmem:[#allocation2 + $0x338] sm:$0xff] }
  0xaf   : > { %4496 = vmatprep.subr.bf16.mxu0 %v4495_v3  ;;  %v4517_v3 = vpack.c.bf16 %v1169_v58, %v1167_v57  ;;  %v1187_v58 = vld [vmem:[#allocation2 + $0x3a0] sm:$0xff] }
  0xb0   : > { %4301 = vmatmul.mubr.msk.f32.gmra.mrb[24].mxu0 %vm311_vm1, %v253_v5  ;;  %v1149_v5 = vld [vmem:[#allocation2 + $0x270] sm:$0xff] }
  0xb1   : > { %557 = vmatprep.mubr.f32.mxu0 %v5343_v0  ;;  %v4497_v7 = vpack.c.bf16 %v1149_v5, %v1147_v4 }
  0xb3   : > { %4498 = vmatpush1.bf16.msra.mxu0 %v4497_v7 }
  0xb4   : > { %4302 = vmatmul.mubr.msk.f32.gmra.mrb[26].mxu0 %vm311_vm1, %v254_v12  ;;  %v1151_v12 = vld [vmem:[#allocation2 + $0x280] sm:$0xff] }
  0xb5   : > { %563 = vmatprep.mubr.f32.mxu0 %v5343_v0 }
  0xb8   : > { %4303 = vmatmul.mubr.msk.f32.gmra.mrb[28].mxu0 %vm311_vm1, %v255_v14 }
  0xb9   : > { %569 = vmatprep.mubr.f32.mxu0 %v5343_v0 }
  0xbc   : > { %4304 = vmatmul.mubr.msk.f32.gmra.mrb[30].mxu0 %vm311_vm1, %v256_v15  ;;  %v4499_v15 = vpack.c.bf16 %v1154_v11, %v1152_v10  ;;  %v1171_v10 = vld [vmem:[#allocation2 + $0x320] sm:$0xff]  ;;  %v1173_v11 = vld [vmem:[#allocation2 + $0x330] sm:$0xff] }
  0xbd   : > { %575 = vmatprep.mubr.f32.mxu0 %v5343_v0 }
  0xbe   : > { %4500 = vmatprep.subr.bf16.mxu0 %v4499_v15 }
  0xc0   : > { %4305 = vmatmul.mubr.msk.f32.gmra.mrb[32].mxu0 %vm311_vm1, %v257_v16  ;;  %v1153_v16 = vld [vmem:[#allocation2 + $0x290] sm:$0xff] }
  0xc1   : > { %581 = vmatprep.mubr.f32.mxu0 %v5343_v0 }
  0xc4   : > { %4306 = vmatmul.mubr.msk.f32.gmra.mrb[34].mxu0 %vm311_vm1, %v258_v17 }
  0xc5   : > { %587 = vmatprep.mubr.f32.mxu0 %v5343_v0 }
  0xc8   : > { %4307 = vmatmul.mubr.msk.f32.gmra.mrb[36].mxu0 %vm311_vm1, %v259_v18  ;;  %v4501_v18 = vpack.c.bf16 %v1153_v16, %v1151_v12 }
  0xc9   : > { %593 = vmatprep.mubr.f32.mxu0 %v5343_v0 }
  0xca   : > { %4502 = vmatpush1.bf16.msra.mxu0 %v4501_v18 }
  0xcc   : > { %4308 = vmatmul.mubr.msk.f32.gmra.mrb[38].mxu0 %vm311_vm1, %v260_v19  ;;  %v1156_v19 = vld [vmem:[#allocation2 + $0x2a8] sm:$0xff] }
  0xcd   : > { %599 = vmatprep.mubr.f32.mxu0 %v5343_v0 }
  0xd0   : > { %4309 = vmatmul.mubr.msk.f32.gmra.mrb[40].mxu0 %vm311_vm1, %v261_v20  ;;  %v1158_v20 = vld [vmem:[#allocation2 + $0x2b8] sm:$0xff] }
  0xd1   : > { %605 = vmatprep.mubr.f32.mxu0 %v5343_v0  ;;  %v4503_v24 = vpack.c.bf16 %v1158_v20, %v1156_v19 }
  0xd3   : > { %4504 = vmatprep.subr.bf16.mxu0 %v4503_v24 }
  0xd4   : > { %4310 = vmatmul.mubr.msk.f32.gmra.mrb[42].mxu0 %vm311_vm1, %v262_v23 }
  0xd5   : > { %611 = vmatprep.mubr.f32.mxu0 %v5343_v0  ;;  %4506 = vmatpush1.bf16.msra.mxu0 %v4505_v31 }
  0xd8   : > { %4311 = vmatmul.mubr.msk.f32.gmra.mrb[44].mxu0 %vm311_vm1, %v263_v30 }
  0xd9   : > { %617 = vmatprep.mubr.f32.mxu0 %v5343_v0 }
  0xdc   : > { %4312 = vmatmul.mubr.msk.f32.gmra.mrb[46].mxu0 %vm311_vm1, %v264_v32  ;;  %v4507_v32 = vpack.c.bf16 %v1162_v27, %v1160_v26  ;;  %v1182_v26 = vld [vmem:[#allocation2 + $0x378] sm:$0xff] }
  0xdd   : > { %623 = vmatprep.mubr.f32.mxu0 %v5343_v0 }
  0xde   : > { %4508 = vmatprep.subr.bf16.mxu0 %v4507_v32 }
  0xe0   : > { %4313 = vmatmul.mubr.msk.f32.gmra.mrb[48].mxu0 %vm311_vm1, %v265_v33  ;;  %v1159_v33 = vld [vmem:[#allocation2 + $0x2c0] sm:$0xff] }
  0xe1   : > { %629 = vmatprep.mubr.f32.mxu0 %v5343_v0 }
  0xe4   : > { %4314 = vmatmul.mubr.msk.f32.gmra.mrb[50].mxu0 %vm311_vm1, %v266_v34  ;;  %v1161_v34 = vld [vmem:[#allocation2 + $0x2d0] sm:$0xff] }
  0xe5   : > { %635 = vmatprep.mubr.f32.mxu0 %v5343_v0 }
  0xe8   : > { %4315 = vmatmul.mubr.msk.f32.gmra.mrb[52].mxu0 %vm311_vm1, %v267_v35 }
  0xe9   : > { %641 = vmatprep.mubr.f32.mxu0 %v5343_v0 }
  0xec   : > { %4316 = vmatmul.mubr.msk.f32.gmra.mrb[54].mxu0 %vm311_vm1, %v268_v36  ;;  %v1164_v36 = vld [vmem:[#allocation2 + $0x2e8] sm:$0xff] }
  0xed   : > { %647 = vmatprep.mubr.f32.mxu0 %v5343_v0 }
  0xf0   : > { %4317 = vmatmul.mubr.msk.f32.gmra.mrb[56].mxu0 %vm311_vm1, %v269_v37  ;;  %v1166_v37 = vld [vmem:[#allocation2 + $0x2f8] sm:$0xff] }
  0xf1   : > { %653 = vmatprep.mubr.f32.mxu0 %v5343_v0  ;;  %v4511_v44 = vpack.c.bf16 %v1166_v37, %v1164_v36  ;;  %v1184_v37 = vld [vmem:[#allocation2 + $0x388] sm:$0xff] }
  0xf4   : > { %4318 = vmatmul.mubr.msk.f32.gmra.mrb[58].mxu0 %vm311_vm1, %v270_v38 }
  0xf5   : > { %659 = vmatprep.mubr.f32.mxu0 %v5343_v0 }
  0xf8   : > { %4319 = vmatmul.mubr.msk.f32.gmra.mrb[60].mxu0 %vm311_vm1, %v271_v39 }
  0xf9   : > { %665 = vmatprep.mubr.f32.mxu0 %v5343_v0 }
  0xfc   : > { %4320 = vmatmul.mubr.msk.f32.gmra.mrb[62].mxu0 %vm311_vm1, %v272_v40  ;;  %v4509_v40 = vpack.c.bf16 %v1161_v34, %v1159_v33  ;;  %v4527_v33 = vpack.c.bf16 %v1182_v26, %v1180_v25  ;;  %v1179_v34 = vld [vmem:[#allocation2 + $0x360] sm:$0xff] }
  0xfe   : > { %4510 = vmatpush1.bf16.msra.mxu0 %v4509_v40 }
  0xff   : > { %4512 = vmatprep.subr.bf16.mxu0 %v4511_v44 }
 0x102   : > { %4514 = vmatpush1.bf16.msra.mxu0 %v4513_v52 }
 0x103   : > { %4516 = vmatprep.subr.bf16.mxu0 %v4515_v56 }
 0x106   : > { %4518 = vmatpush1.bf16.msra.mxu0 %v4517_v3 }
 0x153   : > { %v481_v9 = vpop.f32.mrb[0].mxu0 }
 0x154   : > { %v482_v13 = vadd.f32 %v481_v9, %v5629_v6  ;;  %v483_v14 = vpop.f32.mrb[1].mxu0  ;;  %v4519_v9 = vpack.c.bf16 %v1174_v62, %v1172_v60  ;;  %v1192_v62 = vld [vmem:[#allocation2 + $0x3c8] sm:$0xff] }
 0x155   : > { %v484_v17 = vadd.f32 %v483_v14, %v5632_v8  ;;  %v1178_v14 = vld [vmem:[#allocation2 + $0x358] sm:$0xff] }
 0x156   : > { %v672_v28 = vmax.f32 %v482_v13, 0.0  ;;  %v1176_v13 = vld [vmem:[#allocation2 + $0x348] sm:$0xff]  ;;  %4520 = vmatprep.subr.bf16.mxu0 %v4519_v9 }
 0x157   : > { %v487_v22 = vpop.f32.mrb[2].mxu0  ;;  %v673_v23 = vmax.f32 %v484_v17, 0.0  ;;  %v4521_v17 = vpack.c.bf16 %v1173_v11, %v1171_v10  ;;  %v4523_v21 = vpack.c.bf16 %v1178_v14, %v1176_v13  ;;  %v1191_v11 = vld [vmem:[#allocation2 + $0x3c0] sm:$0xff]  ;;  %v1196_v14 = vld [vmem:[#allocation2 + $0x3e8] sm:$0xff] }
 0x158   : > { %v488_v29 = vadd.f32 %v487_v22, %v5629_v6  ;;  %v489_v30 = vpop.f32.mrb[3].mxu0  ;;  %v1175_v22 = vld [vmem:[#allocation2 + $0x340] sm:$0xff] }
 0x159   : > { %v490_v35 = vadd.f32 %v489_v30, %v5632_v8  ;;  %877 = vmatprep.mubr.f32.mxu1 %v673_v23  ;;  %v1177_v23 = vld [vmem:[#allocation2 + $0x350] sm:$0xff]  ;;  %4522 = vmatpush1.bf16.msra.mxu0 %v4521_v17 }
 0x15a   : > { %878 = vmatmul.mubr.f32.vlgmr.msra.gmra.mrb[0].mxu1 %v672_v28  ;;  %v674_v41 = vmax.f32 %v488_v29, 0.0  ;;  %v4525_v29 = vpack.c.bf16 %v1177_v23, %v1175_v22  ;;  %4524 = vmatprep.subr.bf16.mxu0 %v4523_v21  ;;  %v1195_v23 = vld [vmem:[#allocation2 + $0x3e0] sm:$0xff] }
 0x15b   : > { %v675_v38 = vmax.f32 %v490_v35, 0.0  ;;  %v493_v39 = vpop.f32.mrb[4].mxu0  ;;  %v1181_v35 = vld [vmem:[#allocation2 + $0x370] sm:$0xff] }
 0x15c   : > { %v494_v42 = vadd.f32 %v493_v39, %v5629_v6  ;;  %v495_v43 = vpop.f32.mrb[5].mxu0 }
 0x15d   : > { %v496_v47 = vadd.f32 %v495_v43, %v5632_v8  ;;  %883 = vmatprep.mubr.f32.mxu1 %v675_v38  ;;  %v1186_v38 = vld [vmem:[#allocation2 + $0x398] sm:$0xff]  ;;  %4526 = vmatpush1.bf16.msra.mxu0 %v4525_v29 }
 0x15e   : > { %884 = vmatmul.mubr.f32.gmra.mrb[2].mxu1 %v674_v41  ;;  %v676_v53 = vmax.f32 %v494_v42, 0.0  ;;  %v4529_v41 = vpack.c.bf16 %v1181_v35, %v1179_v34  ;;  %4528 = vmatprep.subr.bf16.mxu0 %v4527_v33  ;;  %v4531_v45 = vpack.c.bf16 %v1186_v38, %v1184_v37 }
 0x15f   : > { %v677_v50 = vmax.f32 %v496_v47, 0.0  ;;  %v499_v51 = vpop.f32.mrb[6].mxu0  ;;  %v1185_v47 = vld [vmem:[#allocation2 + $0x390] sm:$0xff] }
 0x160   : > { %v500_v54 = vadd.f32 %v499_v51, %v5629_v6  ;;  %v501_v55 = vpop.f32.mrb[7].mxu0 }
 0x161   : > { %v502_v59 = vadd.f32 %v501_v55, %v5632_v8  ;;  %889 = vmatprep.mubr.f32.mxu1 %v677_v50  ;;  %v1190_v50 = vld [vmem:[#allocation2 + $0x3b8] sm:$0xff]  ;;  %4530 = vmatpush1.bf16.msra.mxu0 %v4529_v41 }
 0x162   : > { %890 = vmatmul.mubr.f32.gmra.mrb[4].mxu1 %v676_v53  ;;  %v678_v4 = vmax.f32 %v500_v54, 0.0  ;;  %v4533_v53 = vpack.c.bf16 %v1185_v47, %v1183_v46  ;;  %4532 = vmatprep.subr.bf16.mxu0 %v4531_v45  ;;  %v4535_v57 = vpack.c.bf16 %v1190_v50, %v1188_v49 }
 0x163   : > { %v679_v1 = vmax.f32 %v502_v59, 0.0  ;;  %v505_v2 = vpop.f32.mrb[8].mxu0  ;;  %v1189_v59 = vld [vmem:[#allocation2 + $0x3b0] sm:$0xff] }
 0x164   : > { %v506_v5 = vadd.f32 %v505_v2, %v5629_v6  ;;  %v507_v7 = vpop.f32.mrb[9].mxu0 }
 0x165   : > { %v508_v12 = vadd.f32 %v507_v7, %v5632_v8  ;;  %895 = vmatprep.mubr.f32.mxu1 %v679_v1  ;;  %v1194_v1 = vld [vmem:[#allocation2 + $0x3d8] sm:$0xff]  ;;  %4534 = vmatpush1.bf16.msra.mxu0 %v4533_v53 }
 0x166   : > { %896 = vmatmul.mubr.f32.gmra.mrb[6].mxu1 %v678_v4  ;;  %v680_v18 = vmax.f32 %v506_v5, 0.0  ;;  %v4537_v4 = vpack.c.bf16 %v1189_v59, %v1187_v58  ;;  %4536 = vmatprep.subr.bf16.mxu0 %v4535_v57  ;;  %v4539_v10 = vpack.c.bf16 %v1194_v1, %v1192_v62 }
 0x167   : > { %v681_v15 = vmax.f32 %v508_v12, 0.0  ;;  %v511_v16 = vpop.f32.mrb[10].mxu0  ;;  %v1193_v12 = vld [vmem:[#allocation2 + $0x3d0] sm:$0xff] }
 0x168   : > { %v512_v19 = vadd.f32 %v511_v16, %v5629_v6  ;;  %v513_v20 = vpop.f32.mrb[11].mxu0 }
 0x169   : > { %v514_v24 = vadd.f32 %v513_v20, %v5632_v8  ;;  %901 = vmatprep.mubr.f32.mxu1 %v681_v15  ;;  %v1198_v15 = vld [vmem:[#allocation2 + $0x3f8] sm:$0xff]  ;;  %4538 = vmatpush1.bf16.msra.mxu0 %v4537_v4 }
 0x16a   : > { %902 = vmatmul.mubr.f32.gmra.mrb[8].mxu1 %v680_v18  ;;  %v682_v30 = vmax.f32 %v512_v19, 0.0  ;;  %v4541_v18 = vpack.c.bf16 %v1193_v12, %v1191_v11  ;;  %4540 = vmatprep.subr.bf16.mxu0 %v4539_v10  ;;  %v4543_v22 = vpack.c.bf16 %v1198_v15, %v1196_v14 }
 0x16b   : > { %v683_v27 = vmax.f32 %v514_v24, 0.0  ;;  %v517_v28 = vpop.f32.mrb[12].mxu0  ;;  %v1197_v24 = vld [vmem:[#allocation2 + $0x3f0] sm:$0xff] }
 0x16c   : > { %v518_v31 = vadd.f32 %v517_v28, %v5629_v6  ;;  %v519_v32 = vpop.f32.mrb[13].mxu0  ;;  %v4545_v28 = vpack.c.bf16 %v1197_v24, %v1195_v23 }
 0x16d   : > { %v520_v36 = vadd.f32 %v519_v32, %v5632_v8  ;;  %907 = vmatprep.mubr.f32.mxu1 %v683_v27  ;;  %4542 = vmatpush1.bf16.msra.mxu0 %v4541_v18 }
 0x16e   : > { %908 = vmatmul.mubr.f32.gmra.mrb[10].mxu1 %v682_v30  ;;  %v684_v42 = vmax.f32 %v518_v31, 0.0  ;;  %4544 = vmatprep.subr.bf16.mxu0 %v4543_v22 }
 0x16f   : > { %v685_v39 = vmax.f32 %v520_v36, 0.0  ;;  %v523_v40 = vpop.f32.mrb[14].mxu0 }
 0x170   : > { %v524_v43 = vadd.f32 %v523_v40, %v5629_v6  ;;  %v525_v44 = vpop.f32.mrb[15].mxu0 }
 0x171   : > { %v526_v48 = vadd.f32 %v525_v44, %v5632_v8  ;;  %913 = vmatprep.mubr.f32.mxu1 %v685_v39  ;;  %4546 = vmatpush1.bf16.msra.mxu0 %v4545_v28 }
 0x172   : > { %914 = vmatmul.mubr.f32.gmra.mrb[12].mxu1 %v684_v42  ;;  %v686_v54 = vmax.f32 %v524_v43, 0.0 }
 0x173   : > { %v687_v51 = vmax.f32 %v526_v48, 0.0  ;;  %v529_v52 = vpop.f32.mrb[16].mxu0 }
 0x174   : > { %v530_v55 = vadd.f32 %v529_v52, %v5629_v6  ;;  %v531_v56 = vpop.f32.mrb[17].mxu0 }
 0x175   : > { %v532_v60 = vadd.f32 %v531_v56, %v5632_v8  ;;  %919 = vmatprep.mubr.f32.mxu1 %v687_v51 }
 0x176   : > { %920 = vmatmul.mubr.f32.gmra.mrb[14].mxu1 %v686_v54  ;;  %v688_v5 = vmax.f32 %v530_v55, 0.0 }
 0x177   : > { %v689_v2 = vmax.f32 %v532_v60, 0.0  ;;  %v535_v3 = vpop.f32.mrb[18].mxu0 }
 0x178   : > { %v536_v7 = vadd.f32 %v535_v3, %v5629_v6  ;;  %v537_v9 = vpop.f32.mrb[19].mxu0 }
 0x179   : > { %v538_v13 = vadd.f32 %v537_v9, %v5632_v8  ;;  %925 = vmatprep.mubr.f32.mxu1 %v689_v2 }
 0x17a   : > { %926 = vmatmul.mubr.f32.gmra.mrb[16].mxu1 %v688_v5  ;;  %v690_v19 = vmax.f32 %v536_v7, 0.0 }
 0x17b   : > { %v691_v16 = vmax.f32 %v538_v13, 0.0  ;;  %v541_v17 = vpop.f32.mrb[20].mxu0 }
 0x17c   : > { %v542_v20 = vadd.f32 %v541_v17, %v5629_v6  ;;  %v543_v21 = vpop.f32.mrb[21].mxu0 }
 0x17d   : > { %v544_v25 = vadd.f32 %v543_v21, %v5632_v8  ;;  %931 = vmatprep.mubr.f32.mxu1 %v691_v16 }
 0x17e   : > { %932 = vmatmul.mubr.f32.gmra.mrb[18].mxu1 %v690_v19  ;;  %v692_v29 = vmax.f32 %v542_v20, 0.0 }
 0x17f   : > { %v693_v26 = vmax.f32 %v544_v25, 0.0  ;;  %v547_v27 = vpop.f32.mrb[22].mxu0 }
 0x180   : > { %v548_v30 = vadd.f32 %v547_v27, %v5629_v6  ;;  %v549_v31 = vpop.f32.mrb[23].mxu0 }
 0x181   : > { %v550_v32 = vadd.f32 %v549_v31, %v5632_v8  ;;  %937 = vmatprep.mubr.f32.mxu1 %v693_v26 }
 0x182   : > { %938 = vmatmul.mubr.f32.gmra.mrb[20].mxu1 %v692_v29  ;;  %v694_v35 = vmax.f32 %v548_v30, 0.0 }
 0x183   : > { %v695_v33 = vmax.f32 %v550_v32, 0.0  ;;  %v553_v34 = vpop.f32.mrb[24].mxu0 }
 0x184   : > { %v554_v36 = vadd.f32 %v553_v34, %v5629_v6  ;;  %v555_v37 = vpop.f32.mrb[25].mxu0 }
 0x185   : > { %v556_v38 = vadd.f32 %v555_v37, %v5632_v8  ;;  %943 = vmatprep.mubr.f32.mxu1 %v695_v33 }
 0x186   : > { %944 = vmatmul.mubr.f32.gmra.mrb[22].mxu1 %v694_v35  ;;  %v696_v41 = vmax.f32 %v554_v36, 0.0 }
 0x187   : > { %v697_v39 = vmax.f32 %v556_v38, 0.0  ;;  %v559_v40 = vpop.f32.mrb[26].mxu0 }
 0x188   : > { %v560_v42 = vadd.f32 %v559_v40, %v5629_v6  ;;  %v561_v43 = vpop.f32.mrb[27].mxu0 }
 0x189   : > { %v562_v44 = vadd.f32 %v561_v43, %v5632_v8  ;;  %949 = vmatprep.mubr.f32.mxu1 %v697_v39 }
 0x18a   : > { %950 = vmatmul.mubr.f32.gmra.mrb[24].mxu1 %v696_v41  ;;  %v698_v47 = vmax.f32 %v560_v42, 0.0 }
 0x18b   : > { %v699_v45 = vmax.f32 %v562_v44, 0.0  ;;  %v565_v46 = vpop.f32.mrb[28].mxu0 }
 0x18c   : > { %v566_v48 = vadd.f32 %v565_v46, %v5629_v6  ;;  %v567_v49 = vpop.f32.mrb[29].mxu0 }
 0x18d   : > { %v568_v50 = vadd.f32 %v567_v49, %v5632_v8  ;;  %955 = vmatprep.mubr.f32.mxu1 %v699_v45 }
 0x18e   : > { %956 = vmatmul.mubr.f32.gmra.mrb[26].mxu1 %v698_v47  ;;  %v700_v53 = vmax.f32 %v566_v48, 0.0 }
 0x18f   : > { %v701_v51 = vmax.f32 %v568_v50, 0.0  ;;  %v571_v52 = vpop.f32.mrb[30].mxu0 }
 0x190   : > { %v572_v54 = vadd.f32 %v571_v52, %v5629_v6  ;;  %v573_v55 = vpop.f32.mrb[31].mxu0 }
 0x191   : > { %v574_v56 = vadd.f32 %v573_v55, %v5632_v8  ;;  %961 = vmatprep.mubr.f32.mxu1 %v701_v51 }
 0x192   : > { %962 = vmatmul.mubr.f32.gmra.mrb[28].mxu1 %v700_v53  ;;  %v702_v59 = vmax.f32 %v572_v54, 0.0 }
 0x193   : > { %v703_v57 = vmax.f32 %v574_v56, 0.0  ;;  %v577_v58 = vpop.f32.mrb[32].mxu0 }
 0x194   : > { %v578_v60 = vadd.f32 %v577_v58, %v5629_v6  ;;  %v579_v62 = vpop.f32.mrb[33].mxu0 }
 0x195   : > { %v580_v1 = vadd.f32 %v579_v62, %v5632_v8  ;;  %967 = vmatprep.mubr.f32.mxu1 %v703_v57 }
 0x196   : > { %968 = vmatmul.mubr.f32.gmra.mrb[30].mxu1 %v702_v59  ;;  %v704_v4 = vmax.f32 %v578_v60, 0.0 }
 0x197   : > { %v705_v2 = vmax.f32 %v580_v1, 0.0  ;;  %v583_v3 = vpop.f32.mrb[34].mxu0 }
 0x198   : > { %v584_v5 = vadd.f32 %v583_v3, %v5629_v6  ;;  %v585_v7 = vpop.f32.mrb[35].mxu0 }
 0x199   : > { %v586_v9 = vadd.f32 %v585_v7, %v5632_v8  ;;  %973 = vmatprep.mubr.f32.mxu1 %v705_v2 }
 0x19a   : > { %974 = vmatmul.mubr.f32.gmra.mrb[32].mxu1 %v704_v4  ;;  %v706_v12 = vmax.f32 %v584_v5, 0.0 }
 0x19b   : > { %v707_v10 = vmax.f32 %v586_v9, 0.0  ;;  %v589_v11 = vpop.f32.mrb[36].mxu0 }
 0x19c   : > { %v590_v13 = vadd.f32 %v589_v11, %v5629_v6  ;;  %v591_v14 = vpop.f32.mrb[37].mxu0 }
 0x19d   : > { %v592_v15 = vadd.f32 %v591_v14, %v5632_v8  ;;  %979 = vmatprep.mubr.f32.mxu1 %v707_v10 }
 0x19e   : > { %980 = vmatmul.mubr.f32.gmra.mrb[34].mxu1 %v706_v12  ;;  %v708_v18 = vmax.f32 %v590_v13, 0.0 }
 0x19f   : > { %v709_v16 = vmax.f32 %v592_v15, 0.0  ;;  %v595_v17 = vpop.f32.mrb[38].mxu0 }
 0x1a0   : > { %v596_v19 = vadd.f32 %v595_v17, %v5629_v6  ;;  %v597_v20 = vpop.f32.mrb[39].mxu0 }
 0x1a1   : > { %v598_v21 = vadd.f32 %v597_v20, %v5632_v8  ;;  %985 = vmatprep.mubr.f32.mxu1 %v709_v16 }
 0x1a2   : > { %986 = vmatmul.mubr.f32.gmra.mrb[36].mxu1 %v708_v18  ;;  %v710_v24 = vmax.f32 %v596_v19, 0.0 }
 0x1a3   : > { %v711_v22 = vmax.f32 %v598_v21, 0.0  ;;  %v601_v23 = vpop.f32.mrb[40].mxu0 }
 0x1a4   : > { %v602_v25 = vadd.f32 %v601_v23, %v5629_v6  ;;  %v603_v26 = vpop.f32.mrb[41].mxu0 }
 0x1a5   : > { %v604_v27 = vadd.f32 %v603_v26, %v5632_v8  ;;  %991 = vmatprep.mubr.f32.mxu1 %v711_v22 }
 0x1a6   : > { %992 = vmatmul.mubr.f32.gmra.mrb[38].mxu1 %v710_v24  ;;  %v712_v30 = vmax.f32 %v602_v25, 0.0 }
 0x1a7   : > { %v713_v28 = vmax.f32 %v604_v27, 0.0  ;;  %v607_v29 = vpop.f32.mrb[42].mxu0 }
 0x1a8   : > { %v608_v31 = vadd.f32 %v607_v29, %v5629_v6  ;;  %v609_v32 = vpop.f32.mrb[43].mxu0 }
 0x1a9   : > { %v610_v33 = vadd.f32 %v609_v32, %v5632_v8  ;;  %997 = vmatprep.mubr.f32.mxu1 %v713_v28 }
 0x1aa   : > { %998 = vmatmul.mubr.f32.gmra.mrb[40].mxu1 %v712_v30  ;;  %v714_v36 = vmax.f32 %v608_v31, 0.0 }
 0x1ab   : > { %v715_v34 = vmax.f32 %v610_v33, 0.0  ;;  %v613_v35 = vpop.f32.mrb[44].mxu0 }
 0x1ac   : > { %v614_v37 = vadd.f32 %v613_v35, %v5629_v6  ;;  %v615_v38 = vpop.f32.mrb[45].mxu0 }
 0x1ad   : > { %v616_v39 = vadd.f32 %v615_v38, %v5632_v8  ;;  %1003 = vmatprep.mubr.f32.mxu1 %v715_v34  ;;  %v1537_v38 = vld [vmem:[#allocation2 + $0x418] sm:$0xff] }
 0x1ae   : > { %1004 = vmatmul.mubr.f32.gmra.mrb[42].mxu1 %v714_v36  ;;  %v716_v42 = vmax.f32 %v614_v37, 0.0  ;;  %v1535_v37 = vld [vmem:[#allocation2 + $0x408] sm:$0xff] }
 0x1af   : > { %v717_v40 = vmax.f32 %v616_v39, 0.0  ;;  %v619_v41 = vpop.f32.mrb[46].mxu0  ;;  %v4547_v39 = vpack.c.bf16 %v1537_v38, %v1535_v37 }
 0x1b0   : > { %v620_v43 = vadd.f32 %v619_v41, %v5629_v6  ;;  %v621_v44 = vpop.f32.mrb[47].mxu0  ;;  %v1536_v41 = vld [vmem:[#allocation2 + $0x410] sm:$0xff] }
 0x1b1   : > { %v622_v45 = vadd.f32 %v621_v44, %v5632_v8  ;;  %1009 = vmatprep.mubr.f32.mxu1 %v717_v40  ;;  %v1534_v40 = vld [vmem:[#allocation2 + $0x400] sm:$0xff]  ;;  %4548 = vmatprep.subr.bf16.mxu1 %v4547_v39  ;;  %v1541_v44 = vld [vmem:[#allocation2 + $0x438] sm:$0xff] }
 0x1b2   : > { %1010 = vmatmul.mubr.f32.gmra.mrb[44].mxu1 %v716_v42  ;;  %v718_v48 = vmax.f32 %v620_v43, 0.0  ;;  %v4549_v42 = vpack.c.bf16 %v1536_v41, %v1534_v40  ;;  %v1539_v43 = vld [vmem:[#allocation2 + $0x428] sm:$0xff]  ;;  %v1562_v39 = vld [vmem:[#allocation2 + $0x4e0] sm:$0xff]  ;;  %v1564_v40 = vld [vmem:[#allocation2 + $0x4f0] sm:$0xff] }
 0x1b3   : > { %v719_v46 = vmax.f32 %v622_v45, 0.0  ;;  %v625_v47 = vpop.f32.mrb[48].mxu0  ;;  %v1538_v45 = vld [vmem:[#allocation2 + $0x420] sm:$0xff] }
 0x1b4   : > { %v626_v49 = vadd.f32 %v625_v47, %v5629_v6  ;;  %v627_v50 = vpop.f32.mrb[49].mxu0  ;;  %4550 = vmatpush1.bf16.msra.mxu1 %v4549_v42  ;;  %v1543_v47 = vld [vmem:[#allocation2 + $0x448] sm:$0xff] }
 0x1b5   : > { %v628_v51 = vadd.f32 %v627_v50, %v5632_v8  ;;  %1015 = vmatprep.mubr.f32.mxu1 %v719_v46  ;;  %v1540_v46 = vld [vmem:[#allocation2 + $0x430] sm:$0xff]  ;;  %v1542_v50 = vld [vmem:[#allocation2 + $0x440] sm:$0xff]  ;;  %v1567_v42 = vld [vmem:[#allocation2 + $0x508] sm:$0xff] }
 0x1b6   : > { %1016 = vmatmul.mubr.f32.gmra.mrb[46].mxu1 %v718_v48  ;;  %v720_v54 = vmax.f32 %v626_v49, 0.0  ;;  %v1545_v48 = vld [vmem:[#allocation2 + $0x458] sm:$0xff] }
 0x1b7   : > { %v721_v52 = vmax.f32 %v628_v51, 0.0  ;;  %v631_v53 = vpop.f32.mrb[50].mxu0  ;;  %v4555_v49 = vpack.c.bf16 %v1545_v48, %v1543_v47  ;;  %v1544_v51 = vld [vmem:[#allocation2 + $0x450] sm:$0xff]  ;;  %v2001_v47 = vld [vmem:[#allocation5 + $0xe8] sm:$0xff] }
 0x1b8   : > { %v632_v55 = vadd.f32 %v631_v53, %v5629_v6  ;;  %v633_v56 = vpop.f32.mrb[51].mxu0  ;;  %v801_v53 = vld [vmem:[#allocation7 + $0x1] ss:$8 sm:$0x3] }
 0x1b9   : > { %v634_v57 = vadd.f32 %v633_v56, %v5632_v8  ;;  %1021 = vmatprep.mubr.f32.mxu1 %v721_v52  ;;  %v4557_v52 = vpack.c.bf16 %v1544_v51, %v1542_v50 }
 0x1ba   : > { %1022 = vmatmul.mubr.f32.gmra.mrb[48].mxu1 %v720_v54  ;;  %v722_v60 = vmax.f32 %v632_v55, 0.0  ;;  %v1547_v54 = vld [vmem:[#allocation2 + $0x468] sm:$0xff]  ;;  %v1549_v55 = vld [vmem:[#allocation2 + $0x478] sm:$0xff] }
 0x1bb   : > { %v723_v58 = vmax.f32 %v634_v57, 0.0  ;;  %v637_v59 = vpop.f32.mrb[52].mxu0  ;;  %v4559_v56 = vpack.c.bf16 %v1549_v55, %v1547_v54  ;;  %v1546_v57 = vld [vmem:[#allocation2 + $0x460] sm:$0xff]  ;;  %v1998_v54 = vld [vmem:[#allocation5 + $0xd0] sm:$0xff] }
 0x1bc   : > { %v638_v62 = vadd.f32 %v637_v59, %v5629_v6  ;;  %v639_v1 = vpop.f32.mrb[53].mxu0  ;;  %v5699_v59 = vrot.slane %v801_v53, %v5624_v61  ;;  %v2000_v55 = vld [vmem:[#allocation5 + $0xe0] sm:$0xff] }
 0x1bd   : > { %v640_v2 = vadd.f32 %v639_v1, %v5632_v8  ;;  %1027 = vmatprep.mubr.f32.mxu1 %v723_v58  ;;  %v1548_v58 = vld [vmem:[#allocation2 + $0x470] sm:$0xff] }
 0x1be   : > { %1028 = vmatmul.mubr.f32.gmra.mrb[50].mxu1 %v722_v60  ;;  %v724_v5 = vmax.f32 %v638_v62, 0.0  ;;  %v4561_v60 = vpack.c.bf16 %v1548_v58, %v1546_v57  ;;  %v5702_v62 = vrot.slane %v801_v53, %v5626_v63  ;;  %v1571_v57 = vld [vmem:[#allocation2 + $0x528] sm:$0xff]  ;;  %v1573_v58 = vld [vmem:[#allocation2 + $0x538] sm:$0xff] }
 0x1bf   : > { %v725_v3 = vmax.f32 %v640_v2, 0.0  ;;  %v643_v4 = vpop.f32.mrb[54].mxu0  ;;  %v1551_v2 = vld [vmem:[#allocation2 + $0x488] sm:$0xff] }
 0x1c0   : > { %v644_v7 = vadd.f32 %v643_v4, %v5629_v6  ;;  %v645_v9 = vpop.f32.mrb[55].mxu0  ;;  %v1550_v4 = vld [vmem:[#allocation2 + $0x480] sm:$0xff] }
 0x1c1   : > { %v646_v10 = vadd.f32 %v645_v9, %v5632_v8  ;;  %1033 = vmatprep.mubr.f32.mxu1 %v725_v3  ;;  %v1553_v3 = vld [vmem:[#allocation2 + $0x498] sm:$0xff] }
 0x1c2   : > { %1034 = vmatmul.mubr.f32.gmra.mrb[52].mxu1 %v724_v5  ;;  %v726_v13 = vmax.f32 %v644_v7, 0.0  ;;  %v4563_v9 = vpack.c.bf16 %v1553_v3, %v1551_v2 }
 0x1c3   : > { %v727_v11 = vmax.f32 %v646_v10, 0.0  ;;  %v649_v12 = vpop.f32.mrb[56].mxu0  ;;  %v1552_v10 = vld [vmem:[#allocation2 + $0x490] sm:$0xff] }
 0x1c4   : > { %v650_v14 = vadd.f32 %v649_v12, %v5629_v6  ;;  %v651_v15 = vpop.f32.mrb[57].mxu0  ;;  %v4565_v12 = vpack.c.bf16 %v1552_v10, %v1550_v4  ;;  %v1570_v4 = vld [vmem:[#allocation2 + $0x520] sm:$0xff] }
 0x1c5   : > { %v652_v16 = vadd.f32 %v651_v15, %v5632_v8  ;;  %1039 = vmatprep.mubr.f32.mxu1 %v727_v11  ;;  %v1554_v15 = vld [vmem:[#allocation2 + $0x4a0] sm:$0xff] }
 0x1c6   : > { %1040 = vmatmul.mubr.f32.gmra.mrb[54].mxu1 %v726_v13  ;;  %v728_v19 = vmax.f32 %v650_v14, 0.0  ;;  %v1555_v13 = vld [vmem:[#allocation2 + $0x4a8] sm:$0xff]  ;;  %v1557_v14 = vld [vmem:[#allocation2 + $0x4b8] sm:$0xff] }
 0x1c7   : > { %v729_v17 = vmax.f32 %v652_v16, 0.0  ;;  %v655_v18 = vpop.f32.mrb[58].mxu0 }
 0x1c8   : > { %v656_v20 = vadd.f32 %v655_v18, %v5629_v6  ;;  %v657_v21 = vpop.f32.mrb[59].mxu0  ;;  %v4567_v18 = vpack.c.bf16 %v1557_v14, %v1555_v13  ;;  %v1572_v13 = vld [vmem:[#allocation2 + $0x530] sm:$0xff] }
 0x1c9   : > { %v658_v22 = vadd.f32 %v657_v21, %v5632_v8  ;;  %1045 = vmatprep.mubr.f32.mxu1 %v729_v17  ;;  %v1561_v21 = vld [vmem:[#allocation2 + $0x4d8] sm:$0xff] }
 0x1ca   : > { %1046 = vmatmul.mubr.f32.gmra.mrb[56].mxu1 %v728_v19  ;;  %v730_v25 = vmax.f32 %v656_v20, 0.0  ;;  %v1556_v19 = vld [vmem:[#allocation2 + $0x4b0] sm:$0xff]  ;;  %v1559_v20 = vld [vmem:[#allocation2 + $0x4c8] sm:$0xff] }
 0x1cb   : > { %v731_v23 = vmax.f32 %v658_v22, 0.0  ;;  %v661_v24 = vpop.f32.mrb[60].mxu0 }
 0x1cc   : > { %v662_v26 = vadd.f32 %v661_v24, %v5629_v6  ;;  %v663_v27 = vpop.f32.mrb[61].mxu0 }
 0x1cd   : > { %v664_v28 = vadd.f32 %v663_v27, %v5632_v8  ;;  %1051 = vmatprep.mubr.f32.mxu1 %v731_v23  ;;  %v1558_v27 = vld [vmem:[#allocation2 + $0x4c0] sm:$0xff] }
 0x1ce   : > { %1052 = vmatmul.mubr.f32.gmra.mrb[58].mxu1 %v730_v25  ;;  %v732_v31 = vmax.f32 %v662_v26, 0.0  ;;  %v4569_v25 = vpack.c.bf16 %v1556_v19, %v1554_v15  ;;  %v4571_v26 = vpack.c.bf16 %v1561_v21, %v1559_v20  ;;  %v2002_v15 = vld [vmem:[#allocation5 + $0xf0] sm:$0xff]  ;;  %v1577_v19 = vld [vmem:[#allocation2 + $0x558] sm:$0xff] }
 0x1cf   : > { %v733_v29 = vmax.f32 %v664_v28, 0.0  ;;  %v667_v30 = vpop.f32.mrb[62].mxu0  ;;  %v1560_v28 = vld [vmem:[#allocation2 + $0x4d0] sm:$0xff] }
 0x1d0   : > { %v668_v32 = vadd.f32 %v667_v30, %v5629_v6  ;;  %v669_v33 = vpop.f32.mrb[63].mxu0  ;;  %v4551_v6 = vpack.c.bf16 %v1541_v44, %v1539_v43  ;;  %v1563_v30 = vld [vmem:[#allocation2 + $0x4e8] sm:$0xff]  ;;  %v1569_v43 = vld [vmem:[#allocation2 + $0x518] sm:$0xff] }
 0x1d1   : > { %v670_v34 = vadd.f32 %v669_v33, %v5632_v8  ;;  %1057 = vmatprep.mubr.f32.mxu1 %v733_v29  ;;  %v4553_v8 = vpack.c.bf16 %v1540_v46, %v1538_v45  ;;  %v4577_v45 = vpack.c.bf16 %v1564_v40, %v1562_v39  ;;  %v1566_v46 = vld [vmem:[#allocation2 + $0x500] sm:$0xff]  ;;  %v4579_v51 = vpack.c.bf16 %v1569_v43, %v1567_v42  ;;  %v1583_v43 = vld [vmem:[#allocation2 + $0x588] sm:$0xff] }
 0x1d2   : > { %1058 = vmatmul.mubr.f32.gmra.mrb[60].mxu1 %v732_v31  ;;  %v734_v36 = vmax.f32 %v668_v32, 0.0  ;;  %4552 = vmatprep.subr.bf16.mxu1 %v4551_v6  ;;  %v1565_v31 = vld [vmem:[#allocation2 + $0x4f8] sm:$0xff]  ;;  %v1578_v40 = vld [vmem:[#allocation2 + $0x560] sm:$0xff] }
 0x1d3   : > { %v735_v35 = vmax.f32 %v670_v34, 0.0  ;;  %4554 = vmatpush1.bf16.msra.mxu1 %v4553_v8  ;;  %v4573_v34 = vpack.c.bf16 %v1560_v28, %v1558_v27  ;;  %v4575_v38 = vpack.c.bf16 %v1565_v31, %v1563_v30  ;;  %v1999_v8 = vld [vmem:[#allocation5 + $0xd8] sm:$0xff]  ;;  %v1574_v28 = vld [vmem:[#allocation2 + $0x540] sm:$0xff]  ;;  %v1579_v31 = vld [vmem:[#allocation2 + $0x568] sm:$0xff] }
 0x1d4   : > { %4556 = vmatprep.subr.bf16.mxu1 %v4555_v49  ;;  %v4611_v53 = vpack.c.bf16 %v2001_v47, %v1999_v8 }
 0x1d5   : > { %1063 = vmatprep.mubr.f32.mxu1 %v735_v35 }
 0x1d6   : > { %1064 = vmatmul.mubr.f32.gmra.mrb[62].mxu1 %v734_v36  ;;  %4612 = vmatprep.subr.bf16.mxu0 %v4611_v53  ;;  %v1587_v53 = vld [vmem:[#allocation2 + $0x5a8] sm:$0xff] }
 0x1d7   : > { %4558 = vmatpush1.bf16.msra.mxu1 %v4557_v52  ;;  %v1568_v52 = vld [vmem:[#allocation2 + $0x510] sm:$0xff] }
 0x1d8   : > { %4560 = vmatprep.subr.bf16.mxu1 %v4559_v56  ;;  %v4581_v3 = vpack.c.bf16 %v1568_v52, %v1566_v46 }
 0x1db   : > { %4562 = vmatpush1.bf16.msra.mxu1 %v4561_v60  ;;  %v4613_v60 = vpack.c.bf16 %v2000_v55, %v1998_v54  ;;  %v1589_v54 = vld [vmem:[#allocation2 + $0x5b8] sm:$0xff] }
 0x1dc   : > { %4564 = vmatprep.subr.bf16.mxu1 %v4563_v9 }
 0x1df   : > { %4566 = vmatpush1.bf16.msra.mxu1 %v4565_v12  ;;  %v4583_v12 = vpack.c.bf16 %v1573_v58, %v1571_v57 }
 0x1e0   : > { %4568 = vmatprep.subr.bf16.mxu1 %v4567_v18  ;;  %v1575_v18 = vld [vmem:[#allocation2 + $0x548] sm:$0xff] }
 0x1e1   : > { %v4587_v27 = vpack.c.bf16 %v1577_v19, %v1575_v18  ;;  %v1592_v18 = vld [vmem:[#allocation2 + $0x5d0] sm:$0xff] }
 0x1e3   : > { %4570 = vmatpush1.bf16.msra.mxu1 %v4569_v25 }
 0x1e4   : > { %4572 = vmatprep.subr.bf16.mxu1 %v4571_v26 }
 0x1e7   : > { %4574 = vmatpush1.bf16.msra.mxu1 %v4573_v34 }
 0x1e8   : > { %4576 = vmatprep.subr.bf16.mxu1 %v4575_v38 }
 0x1eb   : > { %4578 = vmatpush1.bf16.msra.mxu1 %v4577_v45 }
 0x1ec   : > { %4580 = vmatprep.subr.bf16.mxu1 %v4579_v51  ;;  %v1584_v51 = vld [vmem:[#allocation2 + $0x590] sm:$0xff] }
 0x1ef   : > { %4582 = vmatpush1.bf16.msra.mxu1 %v4581_v3  ;;  %v1586_v3 = vld [vmem:[#allocation2 + $0x5a0] sm:$0xff] }
 0x1f0   : > { %4584 = vmatprep.subr.bf16.mxu1 %v4583_v12 }
 0x22d   : > { %v879_v1 = vpop.f32.mrb[0].mxu1 }
 0x22e   : > { %v880_v5 = vadd.f32 %v879_v1, %v5699_v59  ;;  %v881_v7 = vpop.f32.mrb[1].mxu1 }
 0x22f   : > { %v882_v11 = vadd.f32 %v881_v7, %v5702_v62  ;;  %v2005_v7 = vld [vmem:[#allocation5 + $0x108] sm:$0xff] }
 0x230   : > { %v1070_v22 = vmax.f32 %v880_v5, 0.0  ;;  %v2003_v5 = vld [vmem:[#allocation5 + $0xf8] sm:$0xff] }
 0x231   : > { %v1071_v16 = vmax.f32 %v882_v11, 0.0  ;;  %v885_v17 = vpop.f32.mrb[2].mxu1  ;;  %v4615_v14 = vpack.c.bf16 %v2005_v7, %v2003_v5  ;;  %v1591_v7 = vld [vmem:[#allocation2 + $0x5c8] sm:$0xff] }
 0x232   : > { %v886_v23 = vadd.f32 %v885_v17, %v5699_v59  ;;  %v887_v24 = vpop.f32.mrb[3].mxu1 }
 0x233   : > { %v888_v29 = vadd.f32 %v887_v24, %v5702_v62  ;;  %1276 = vmatprep.mubr.f32.mxu0 %v1071_v16  ;;  %v2004_v16 = vld [vmem:[#allocation5 + $0x100] sm:$0xff] }
 0x234   : > { %1277 = vmatmul.mubr.f32.vlgmr.msra.gmra.mrb[64].mxu0 %v1070_v22  ;;  %v1072_v35 = vmax.f32 %v886_v23, 0.0  ;;  %v4617_v20 = vpack.c.bf16 %v2004_v16, %v2002_v15  ;;  %v4585_v23 = vpack.c.bf16 %v1572_v13, %v1570_v4  ;;  %v1588_v4 = vld [vmem:[#allocation2 + $0x5b0] sm:$0xff] }
 0x235   : > { %v1073_v32 = vmax.f32 %v888_v29, 0.0  ;;  %v891_v33 = vpop.f32.mrb[4].mxu1  ;;  %4614 = vmatpush1.bf16.msra.mxu0 %v4613_v60  ;;  %v1576_v29 = vld [vmem:[#allocation2 + $0x550] sm:$0xff]  ;;  %v4601_v12 = vpack.c.bf16 %v1588_v4, %v1586_v3 }
 0x236   : > { %v892_v36 = vadd.f32 %v891_v33, %v5699_v59  ;;  %v893_v37 = vpop.f32.mrb[5].mxu1  ;;  %4616 = vmatprep.subr.bf16.mxu0 %v4615_v14  ;;  %4586 = vmatpush1.bf16.msra.mxu1 %v4585_v23 }
 0x237   : > { %v894_v41 = vadd.f32 %v893_v37, %v5702_v62  ;;  %1282 = vmatprep.mubr.f32.mxu0 %v1073_v32  ;;  %v1581_v32 = vld [vmem:[#allocation2 + $0x578] sm:$0xff]  ;;  %4588 = vmatprep.subr.bf16.mxu1 %v4587_v27 }
 0x238   : > { %1283 = vmatmul.mubr.f32.gmra.mrb[66].mxu0 %v1072_v35  ;;  %v1074_v48 = vmax.f32 %v892_v36, 0.0  ;;  %v4589_v35 = vpack.c.bf16 %v1576_v29, %v1574_v28  ;;  %v4591_v39 = vpack.c.bf16 %v1581_v32, %v1579_v31  ;;  %v1594_v29 = vld [vmem:[#allocation2 + $0x5e0] sm:$0xff] }
 0x239   : > { %v1075_v44 = vmax.f32 %v894_v41, 0.0  ;;  %v897_v6 = vpop.f32.mrb[6].mxu1  ;;  %4618 = vmatpush1.bf16.msra.mxu0 %v4617_v20  ;;  %v1580_v41 = vld [vmem:[#allocation2 + $0x570] sm:$0xff]  ;;  %v1595_v20 = vld [vmem:[#allocation2 + $0x5e8] sm:$0xff] }
 0x23a   : > { %v898_v49 = vadd.f32 %v897_v6, %v5699_v59  ;;  %v899_v50 = vpop.f32.mrb[7].mxu1  ;;  %4590 = vmatpush1.bf16.msra.mxu1 %v4589_v35  ;;  %v4593_v46 = vpack.c.bf16 %v1580_v41, %v1578_v40 }
 0x23b   : > { %v900_v56 = vadd.f32 %v899_v50, %v5702_v62  ;;  %1288 = vmatprep.mubr.f32.mxu0 %v1075_v44  ;;  %v1585_v44 = vld [vmem:[#allocation2 + $0x598] sm:$0xff]  ;;  %4592 = vmatprep.subr.bf16.mxu1 %v4591_v39  ;;  %v1582_v50 = vld [vmem:[#allocation2 + $0x580] sm:$0xff] }
 0x23c   : > { %1289 = vmatmul.mubr.f32.gmra.mrb[68].mxu0 %v1074_v48  ;;  %v1076_v9 = vmax.f32 %v898_v49, 0.0  ;;  %v4595_v49 = vpack.c.bf16 %v1585_v44, %v1583_v43  ;;  %v4597_v57 = vpack.c.bf16 %v1584_v51, %v1582_v50 }
 0x23d   : > { %v1077_v1 = vmax.f32 %v900_v56, 0.0  ;;  %v903_v2 = vpop.f32.mrb[8].mxu1 }
 0x23e   : > { %v904_v10 = vadd.f32 %v903_v2, %v5699_v59  ;;  %v905_v11 = vpop.f32.mrb[9].mxu1  ;;  %4594 = vmatpush1.bf16.msra.mxu1 %v4593_v46  ;;  %v4599_v2 = vpack.c.bf16 %v1589_v54, %v1587_v53 }
 0x23f   : > { %v906_v17 = vadd.f32 %v905_v11, %v5702_v62  ;;  %1294 = vmatprep.mubr.f32.mxu0 %v1077_v1  ;;  %4596 = vmatprep.subr.bf16.mxu1 %v4595_v49 }
 0x240   : > { %1295 = vmatmul.mubr.f32.gmra.mrb[70].mxu0 %v1076_v9  ;;  %v1078_v24 = vmax.f32 %v904_v10, 0.0  ;;  %v1593_v9 = vld [vmem:[#allocation2 + $0x5d8] sm:$0xff] }
 0x241   : > { %v1079_v21 = vmax.f32 %v906_v17, 0.0  ;;  %v909_v22 = vpop.f32.mrb[10].mxu1  ;;  %v4603_v16 = vpack.c.bf16 %v1593_v9, %v1591_v7  ;;  %v1590_v17 = vld [vmem:[#allocation2 + $0x5c0] sm:$0xff] }
 0x242   : > { %v910_v25 = vadd.f32 %v909_v22, %v5699_v59  ;;  %v911_v26 = vpop.f32.mrb[11].mxu1  ;;  %4598 = vmatpush1.bf16.msra.mxu1 %v4597_v57 }
 0x243   : > { %v912_v30 = vadd.f32 %v911_v26, %v5702_v62  ;;  %1300 = vmatprep.mubr.f32.mxu0 %v1079_v21  ;;  %4600 = vmatprep.subr.bf16.mxu1 %v4599_v2  ;;  %v1597_v21 = vld [vmem:[#allocation2 + $0x5f8] sm:$0xff] }
 0x244   : > { %1301 = vmatmul.mubr.f32.gmra.mrb[72].mxu0 %v1078_v24  ;;  %v1080_v36 = vmax.f32 %v910_v25, 0.0  ;;  %v4605_v24 = vpack.c.bf16 %v1592_v18, %v1590_v17  ;;  %v4607_v28 = vpack.c.bf16 %v1597_v21, %v1595_v20 }
 0x245   : > { %v1081_v33 = vmax.f32 %v912_v30, 0.0  ;;  %v915_v34 = vpop.f32.mrb[12].mxu1  ;;  %v1596_v30 = vld [vmem:[#allocation2 + $0x5f0] sm:$0xff] }
 0x246   : > { %v916_v37 = vadd.f32 %v915_v34, %v5699_v59  ;;  %v917_v38 = vpop.f32.mrb[13].mxu1  ;;  %4602 = vmatpush1.bf16.msra.mxu1 %v4601_v12  ;;  %v4609_v34 = vpack.c.bf16 %v1596_v30, %v1594_v29 }
 0x247   : > { %v918_v42 = vadd.f32 %v917_v38, %v5702_v62  ;;  %1306 = vmatprep.mubr.f32.mxu0 %v1081_v33  ;;  %4604 = vmatprep.subr.bf16.mxu1 %v4603_v16 }
 0x248   : > { %1307 = vmatmul.mubr.f32.gmra.mrb[74].mxu0 %v1080_v36  ;;  %v1082_v8 = vmax.f32 %v916_v37, 0.0 }
 0x249   : > { %v1083_v6 = vmax.f32 %v918_v42, 0.0  ;;  %v921_v45 = vpop.f32.mrb[14].mxu1 }
 0x24a   : > { %v922_v47 = vadd.f32 %v921_v45, %v5699_v59  ;;  %v923_v48 = vpop.f32.mrb[15].mxu1  ;;  %4606 = vmatpush1.bf16.msra.mxu1 %v4605_v24 }
 0x24b   : > { %v924_v52 = vadd.f32 %v923_v48, %v5702_v62  ;;  %1312 = vmatprep.mubr.f32.mxu0 %v1083_v6  ;;  %4608 = vmatprep.subr.bf16.mxu1 %v4607_v28 }
 0x24c   : > { %1313 = vmatmul.mubr.f32.gmra.mrb[76].mxu0 %v1082_v8  ;;  %v1084_v58 = vmax.f32 %v922_v47, 0.0 }
 0x24d   : > { %v1085_v55 = vmax.f32 %v924_v52, 0.0  ;;  %v927_v56 = vpop.f32.mrb[16].mxu1 }
 0x24e   : > { %v928_v60 = vadd.f32 %v927_v56, %v5699_v59  ;;  %v929_v1 = vpop.f32.mrb[17].mxu1  ;;  %4610 = vmatpush1.bf16.msra.mxu1 %v4609_v34 }
 0x24f   : > { %v930_v5 = vadd.f32 %v929_v1, %v5702_v62  ;;  %1318 = vmatprep.mubr.f32.mxu0 %v1085_v55 }
 0x250   : > { %1319 = vmatmul.mubr.f32.gmra.mrb[78].mxu0 %v1084_v58  ;;  %v1086_v13 = vmax.f32 %v928_v60, 0.0 }
 0x251   : > { %v1087_v10 = vmax.f32 %v930_v5, 0.0  ;;  %v933_v11 = vpop.f32.mrb[18].mxu1 }
 0x252   : > { %v934_v14 = vadd.f32 %v933_v11, %v5699_v59  ;;  %v935_v15 = vpop.f32.mrb[19].mxu1 }
 0x253   : > { %v936_v19 = vadd.f32 %v935_v15, %v5702_v62  ;;  %1324 = vmatprep.mubr.f32.mxu0 %v1087_v10 }
 0x254   : > { %1325 = vmatmul.mubr.f32.gmra.mrb[80].mxu0 %v1086_v13  ;;  %v1088_v25 = vmax.f32 %v934_v14, 0.0 }
 0x255   : > { %v1089_v22 = vmax.f32 %v936_v19, 0.0  ;;  %v939_v23 = vpop.f32.mrb[20].mxu1 }
 0x256   : > { %v940_v26 = vadd.f32 %v939_v23, %v5699_v59  ;;  %v941_v27 = vpop.f32.mrb[21].mxu1 }
 0x257   : > { %v942_v31 = vadd.f32 %v941_v27, %v5702_v62  ;;  %1330 = vmatprep.mubr.f32.mxu0 %v1089_v22 }
 0x258   : > { %1331 = vmatmul.mubr.f32.gmra.mrb[82].mxu0 %v1088_v25  ;;  %v1090_v35 = vmax.f32 %v940_v26, 0.0 }
 0x259   : > { %v1091_v32 = vmax.f32 %v942_v31, 0.0  ;;  %v945_v33 = vpop.f32.mrb[22].mxu1 }
 0x25a   : > { %v946_v36 = vadd.f32 %v945_v33, %v5699_v59  ;;  %v947_v37 = vpop.f32.mrb[23].mxu1 }
 0x25b   : > { %v948_v38 = vadd.f32 %v947_v37, %v5702_v62  ;;  %1336 = vmatprep.mubr.f32.mxu0 %v1091_v32 }
 0x25c   : > { %1337 = vmatmul.mubr.f32.gmra.mrb[84].mxu0 %v1090_v35  ;;  %v1092_v41 = vmax.f32 %v946_v36, 0.0 }
 0x25d   : > { %v1093_v39 = vmax.f32 %v948_v38, 0.0  ;;  %v951_v40 = vpop.f32.mrb[24].mxu1 }
 0x25e   : > { %v952_v42 = vadd.f32 %v951_v40, %v5699_v59  ;;  %v953_v43 = vpop.f32.mrb[25].mxu1 }
 0x25f   : > { %v954_v44 = vadd.f32 %v953_v43, %v5702_v62  ;;  %1342 = vmatprep.mubr.f32.mxu0 %v1093_v39 }
 0x260   : > { %1343 = vmatmul.mubr.f32.gmra.mrb[86].mxu0 %v1092_v41  ;;  %v1094_v46 = vmax.f32 %v952_v42, 0.0 }
 0x261   : > { %v1095_v6 = vmax.f32 %v954_v44, 0.0  ;;  %v957_v45 = vpop.f32.mrb[26].mxu1 }
 0x262   : > { %v958_v8 = vadd.f32 %v957_v45, %v5699_v59  ;;  %v959_v47 = vpop.f32.mrb[27].mxu1 }
 0x263   : > { %v960_v48 = vadd.f32 %v959_v47, %v5702_v62  ;;  %1348 = vmatprep.mubr.f32.mxu0 %v1095_v6 }
 0x264   : > { %1349 = vmatmul.mubr.f32.gmra.mrb[88].mxu0 %v1094_v46  ;;  %v1096_v51 = vmax.f32 %v958_v8, 0.0 }
 0x265   : > { %v1097_v49 = vmax.f32 %v960_v48, 0.0  ;;  %v963_v50 = vpop.f32.mrb[28].mxu1 }
 0x266   : > { %v964_v52 = vadd.f32 %v963_v50, %v5699_v59  ;;  %v965_v53 = vpop.f32.mrb[29].mxu1 }
 0x267   : > { %v966_v54 = vadd.f32 %v965_v53, %v5702_v62  ;;  %1354 = vmatprep.mubr.f32.mxu0 %v1097_v49 }
 0x268   : > { %1355 = vmatmul.mubr.f32.gmra.mrb[90].mxu0 %v1096_v51  ;;  %v1098_v57 = vmax.f32 %v964_v52, 0.0 }
 0x269   : > { %v1099_v55 = vmax.f32 %v966_v54, 0.0  ;;  %v969_v56 = vpop.f32.mrb[30].mxu1 }
 0x26a   : > { %v970_v58 = vadd.f32 %v969_v56, %v5699_v59  ;;  %v971_v60 = vpop.f32.mrb[31].mxu1  ;;  %v2007_v56 = vld [vmem:[#allocation5 + $0x118] sm:$0xff] }
 0x26b   : > { %v972_v1 = vadd.f32 %v971_v60, %v5702_v62  ;;  %1360 = vmatprep.mubr.f32.mxu0 %v1099_v55 }
 0x26c   : > { %1361 = vmatmul.mubr.f32.gmra.mrb[92].mxu0 %v1098_v57  ;;  %v1100_v4 = vmax.f32 %v970_v58, 0.0  ;;  %v2009_v57 = vld [vmem:[#allocation5 + $0x128] sm:$0xff]  ;;  %v2006_v58 = vld [vmem:[#allocation5 + $0x110] sm:$0xff] }
 0x26d   : > { %v1101_v2 = vmax.f32 %v972_v1, 0.0  ;;  %v975_v3 = vpop.f32.mrb[32].mxu1  ;;  %v4619_v60 = vpack.c.bf16 %v2009_v57, %v2007_v56  ;;  %v2008_v1 = vld [vmem:[#allocation5 + $0x120] sm:$0xff] }
 0x26e   : > { %v976_v5 = vadd.f32 %v975_v3, %v5699_v59  ;;  %v977_v7 = vpop.f32.mrb[33].mxu1  ;;  %v2016_v57 = vld [vmem:[#allocation5 + $0x160] sm:$0xff] }
 0x26f   : > { %v978_v9 = vadd.f32 %v977_v7, %v5702_v62  ;;  %1366 = vmatprep.mubr.f32.mxu0 %v1101_v2  ;;  %4620 = vmatprep.subr.bf16.mxu0 %v4619_v60 }
 0x270   : > { %1367 = vmatmul.mubr.f32.gmra.mrb[94].mxu0 %v1100_v4  ;;  %v1102_v12 = vmax.f32 %v976_v5, 0.0  ;;  %v4621_v4 = vpack.c.bf16 %v2008_v1, %v2006_v58  ;;  %v2018_v1 = vld [vmem:[#allocation5 + $0x170] sm:$0xff] }
 0x271   : > { %v1103_v10 = vmax.f32 %v978_v9, 0.0  ;;  %v981_v11 = vpop.f32.mrb[34].mxu1 }
 0x272   : > { %v982_v13 = vadd.f32 %v981_v11, %v5699_v59  ;;  %v983_v14 = vpop.f32.mrb[35].mxu1  ;;  %4622 = vmatpush1.bf16.msra.mxu0 %v4621_v4  ;;  %v2023_v4 = vld [vmem:[#allocation5 + $0x198] sm:$0x7] }
 0x273   : > { %v984_v15 = vadd.f32 %v983_v14, %v5702_v62  ;;  %1372 = vmatprep.mubr.f32.mxu0 %v1103_v10 }
 0x274   : > { %1373 = vmatmul.mubr.f32.gmra.mrb[96].mxu0 %v1102_v12  ;;  %v1104_v18 = vmax.f32 %v982_v13, 0.0 }
 0x275   : > { %v1105_v16 = vmax.f32 %v984_v15, 0.0  ;;  %v987_v17 = vpop.f32.mrb[36].mxu1 }
 0x276   : > { %v988_v19 = vadd.f32 %v987_v17, %v5699_v59  ;;  %v989_v20 = vpop.f32.mrb[37].mxu1 }
 0x277   : > { %v990_v21 = vadd.f32 %v989_v20, %v5702_v62  ;;  %1378 = vmatprep.mubr.f32.mxu0 %v1105_v16 }
 0x278   : > { %1379 = vmatmul.mubr.f32.gmra.mrb[98].mxu0 %v1104_v18  ;;  %v1106_v24 = vmax.f32 %v988_v19, 0.0 }
 0x279   : > { %v1107_v22 = vmax.f32 %v990_v21, 0.0  ;;  %v993_v23 = vpop.f32.mrb[38].mxu1 }
 0x27a   : > { %v994_v25 = vadd.f32 %v993_v23, %v5699_v59  ;;  %v995_v26 = vpop.f32.mrb[39].mxu1 }
 0x27b   : > { %v996_v27 = vadd.f32 %v995_v26, %v5702_v62  ;;  %1384 = vmatprep.mubr.f32.mxu0 %v1107_v22 }
 0x27c   : > { %1385 = vmatmul.mubr.f32.gmra.mrb[100].mxu0 %v1106_v24  ;;  %v1108_v30 = vmax.f32 %v994_v25, 0.0 }
 0x27d   : > { %v1109_v28 = vmax.f32 %v996_v27, 0.0  ;;  %v999_v29 = vpop.f32.mrb[40].mxu1 }
 0x27e   : > { %v1000_v31 = vadd.f32 %v999_v29, %v5699_v59  ;;  %v1001_v32 = vpop.f32.mrb[41].mxu1  ;;  %v2011_v29 = vld [vmem:[#allocation5 + $0x138] sm:$0xff] }
 0x27f   : > { %v1002_v33 = vadd.f32 %v1001_v32, %v5702_v62  ;;  %1390 = vmatprep.mubr.f32.mxu0 %v1109_v28 }
 0x280   : > { %1391 = vmatmul.mubr.f32.gmra.mrb[102].mxu0 %v1108_v30  ;;  %v1110_v36 = vmax.f32 %v1000_v31, 0.0  ;;  %v2013_v30 = vld [vmem:[#allocation5 + $0x148] sm:$0xff] }
 0x281   : > { %v1111_v34 = vmax.f32 %v1002_v33, 0.0  ;;  %v1005_v35 = vpop.f32.mrb[42].mxu1  ;;  %v4623_v31 = vpack.c.bf16 %v2013_v30, %v2011_v29  ;;  %v1944_v29 = vld [vmem:[#allocation2 + $0x658] sm:$0xff] }
 0x282   : > { %v1006_v37 = vadd.f32 %v1005_v35, %v5699_v59  ;;  %v1007_v38 = vpop.f32.mrb[43].mxu1 }
 0x283   : > { %v1008_v39 = vadd.f32 %v1007_v38, %v5702_v62  ;;  %1396 = vmatprep.mubr.f32.mxu0 %v1111_v34  ;;  %4624 = vmatprep.subr.bf16.mxu0 %v4623_v31  ;;  %v2012_v38 = vld [vmem:[#allocation5 + $0x140] sm:$0xff] }
 0x284   : > { %1397 = vmatmul.mubr.f32.gmra.mrb[104].mxu0 %v1110_v36  ;;  %v1112_v42 = vmax.f32 %v1006_v37, 0.0  ;;  %v2010_v37 = vld [vmem:[#allocation5 + $0x130] sm:$0xff]  ;;  %v1941_v31 = vld [vmem:[#allocation2 + $0x640] sm:$0xff] }
 0x285   : > { %v1113_v40 = vmax.f32 %v1008_v39, 0.0  ;;  %v1011_v41 = vpop.f32.mrb[44].mxu1 }
 0x286   : > { %v1012_v43 = vadd.f32 %v1011_v41, %v5699_v59  ;;  %v1013_v44 = vpop.f32.mrb[45].mxu1 }
 0x287   : > { %v1014_v6 = vadd.f32 %v1013_v44, %v5702_v62  ;;  %1402 = vmatprep.mubr.f32.mxu0 %v1113_v40  ;;  %v4625_v40 = vpack.c.bf16 %v2012_v38, %v2010_v37  ;;  %v1946_v37 = vld [vmem:[#allocation2 + $0x668] sm:$0xff]  ;;  %v1948_v38 = vld [vmem:[#allocation2 + $0x678] sm:$0xff] }
 0x288   : > { %1403 = vmatmul.mubr.f32.gmra.mrb[106].mxu0 %v1112_v42  ;;  %v1114_v8 = vmax.f32 %v1012_v43, 0.0 }
 0x289   : > { %v1115_v45 = vmax.f32 %v1014_v6, 0.0  ;;  %v1017_v46 = vpop.f32.mrb[46].mxu1  ;;  %4626 = vmatpush1.bf16.msra.mxu0 %v4625_v40  ;;  %v1945_v40 = vld [vmem:[#allocation2 + $0x660] sm:$0xff] }
 0x28a   : > { %v1018_v47 = vadd.f32 %v1017_v46, %v5699_v59  ;;  %v1019_v48 = vpop.f32.mrb[47].mxu1 }
 0x28b   : > { %v1020_v49 = vadd.f32 %v1019_v48, %v5702_v62  ;;  %1408 = vmatprep.mubr.f32.mxu0 %v1115_v45 }
 0x28c   : > { %1409 = vmatmul.mubr.f32.gmra.mrb[108].mxu0 %v1114_v8  ;;  %v1116_v52 = vmax.f32 %v1018_v47, 0.0 }
 0x28d   : > { %v1117_v50 = vmax.f32 %v1020_v49, 0.0  ;;  %v1023_v51 = vpop.f32.mrb[48].mxu1 }
 0x28e   : > { %v1024_v53 = vadd.f32 %v1023_v51, %v5699_v59  ;;  %v1025_v54 = vpop.f32.mrb[49].mxu1 }
 0x28f   : > { %v1026_v55 = vadd.f32 %v1025_v54, %v5702_v62  ;;  %1414 = vmatprep.mubr.f32.mxu0 %v1117_v50  ;;  %v2017_v54 = vld [vmem:[#allocation5 + $0x168] sm:$0xff] }
 0x290   : > { %1415 = vmatmul.mubr.f32.gmra.mrb[110].mxu0 %v1116_v52  ;;  %v1118_v5 = vmax.f32 %v1024_v53, 0.0  ;;  %v2015_v53 = vld [vmem:[#allocation5 + $0x158] sm:$0xff] }
 0x291   : > { %v1119_v2 = vmax.f32 %v1026_v55, 0.0  ;;  %v1029_v3 = vpop.f32.mrb[50].mxu1  ;;  %v2014_v55 = vld [vmem:[#allocation5 + $0x150] sm:$0xff]  ;;  %v4627_v56 = vpack.c.bf16 %v2017_v54, %v2015_v53 }
 0x292   : > { %v1030_v7 = vadd.f32 %v1029_v3, %v5699_v59  ;;  %v1031_v9 = vpop.f32.mrb[51].mxu1  ;;  %v4629_v58 = vpack.c.bf16 %v2016_v57, %v2014_v55  ;;  %v1954_v55 = vld [vmem:[#allocation2 + $0x6a8] sm:$0xff]  ;;  %v1953_v57 = vld [vmem:[#allocation2 + $0x6a0] sm:$0xff] }
 0x293   : > { %v1032_v10 = vadd.f32 %v1031_v9, %v5702_v62  ;;  %1420 = vmatprep.mubr.f32.mxu0 %v1119_v2  ;;  %4628 = vmatprep.subr.bf16.mxu0 %v4627_v56  ;;  %v2020_v2 = vld [vmem:[#allocation5 + $0x180] sm:$0xff]  ;;  %v5119_v9 = vld [vmem:[%s5525_s5 + $0x8] sm:$0xff]  ;;  %v1956_v56 = vld [vmem:[#allocation2 + $0x6b8] sm:$0xff] }
 0x294   : > { %1421 = vmatmul.mubr.f32.gmra.mrb[112].mxu0 %v1118_v5  ;;  %v1120_v13 = vmax.f32 %v1030_v7, 0.0  ;;  %v4633_v3 = vpack.c.bf16 %v2020_v2, %v2018_v1  ;;  %v2022_v5 = vld [vmem:[#allocation5 + $0x190] sm:$0x7]  ;;  %v5118_v7 = vld [vmem:[%s5525_s5] sm:$0xff]  ;;  %v1958_v1 = vld [vmem:[#allocation2 + $0x6c8] sm:$0xff] }
 0x295   : > { %v1121_v11 = vmax.f32 %v1032_v10, 0.0  ;;  %v1035_v12 = vpop.f32.mrb[52].mxu1  ;;  %4630 = vmatpush1.bf16.msra.mxu0 %v4629_v58  ;;  %v5120_v10 = vld [vmem:[%s5525_s5 + $0x10] sm:$0xff]  ;;  %v1960_v2 = vld [vmem:[#allocation2 + $0x6d8] sm:$0xff] }
 0x296   : > { %v1036_v14 = vadd.f32 %v1035_v12, %v5699_v59  ;;  %v1037_v15 = vpop.f32.mrb[53].mxu1  ;;  %v1934_v12 = vld [vmem:[#allocation2 + $0x608] sm:$0xff] }
 0x297   : > { %v1038_v16 = vadd.f32 %v1037_v15, %v5702_v62  ;;  %1426 = vmatprep.mubr.f32.mxu0 %v1121_v11  ;;  %v5121_v11 = vld [vmem:[%s5525_s5 + $0x18] sm:$0xff] }
 0x298   : > { %1427 = vmatmul.mubr.f32.gmra.mrb[114].mxu0 %v1120_v13  ;;  %v1122_v19 = vmax.f32 %v1036_v14, 0.0  ;;  %v1936_v13 = vld [vmem:[#allocation2 + $0x618] sm:$0xff]  ;;  %v5122_v14 = vld [vmem:[%s5525_s5 + $0x20] sm:$0xff] }
 0x299   : > { %v1123_v17 = vmax.f32 %v1038_v16, 0.0  ;;  %v1041_v18 = vpop.f32.mrb[54].mxu1  ;;  %v4635_v15 = vpack.c.bf16 %v1936_v13, %v1934_v12  ;;  %v1933_v16 = vld [vmem:[#allocation2 + $0x600] sm:$0xff]  ;;  %v1959_v12 = vld [vmem:[#allocation2 + $0x6d0] sm:$0xff] }
 0x29a   : > { %v1042_v20 = vadd.f32 %v1041_v18, %v5699_v59  ;;  %v1043_v21 = vpop.f32.mrb[55].mxu1 }
 0x29b   : > { %v1044_v22 = vadd.f32 %v1043_v21, %v5702_v62  ;;  %1432 = vmatprep.mubr.f32.mxu0 %v1123_v17  ;;  %v1935_v17 = vld [vmem:[#allocation2 + $0x610] sm:$0xff]  ;;  %v1940_v21 = vld [vmem:[#allocation2 + $0x638] sm:$0xff] }
 0x29c   : > { %1433 = vmatmul.mubr.f32.gmra.mrb[116].mxu0 %v1122_v19  ;;  %v1124_v25 = vmax.f32 %v1042_v20, 0.0  ;;  %v4637_v18 = vpack.c.bf16 %v1935_v17, %v1933_v16  ;;  %v5123_v19 = vld [vmem:[%s5525_s5 + $0x28] sm:$0xff] }
 0x29d   : > { %v1125_v23 = vmax.f32 %v1044_v22, 0.0  ;;  %v1047_v24 = vpop.f32.mrb[56].mxu1  ;;  %v1938_v20 = vld [vmem:[#allocation2 + $0x628] sm:$0xff] }
 0x29e   : > { %v1048_v26 = vadd.f32 %v1047_v24, %v5699_v59  ;;  %v1049_v27 = vpop.f32.mrb[57].mxu1  ;;  %v4639_v22 = vpack.c.bf16 %v1940_v21, %v1938_v20  ;;  %v1939_v24 = vld [vmem:[#allocation2 + $0x630] sm:$0xff] }
 0x29f   : > { %v1050_v28 = vadd.f32 %v1049_v27, %v5702_v62  ;;  %1438 = vmatprep.mubr.f32.mxu0 %v1125_v23  ;;  %v1937_v23 = vld [vmem:[#allocation2 + $0x620] sm:$0xff]  ;;  %v5125_v27 = vld [vmem:[%s5525_s5 + $0x38] sm:$0xff] }
 0x2a0   : > { %1439 = vmatmul.mubr.f32.gmra.mrb[118].mxu0 %v1124_v25  ;;  %v1126_v34 = vmax.f32 %v1048_v26, 0.0  ;;  %v5124_v25 = vld [vmem:[%s5525_s5 + $0x30] sm:$0xff]  ;;  %v4641_v26 = vpack.c.bf16 %v1939_v24, %v1937_v23  ;;  %v1961_v24 = vld [vmem:[#allocation2 + $0x6e0] sm:$0xff] }
 0x2a1   : > { %v1127_v32 = vmax.f32 %v1050_v28, 0.0  ;;  %v1053_v33 = vpop.f32.mrb[58].mxu1  ;;  %v1942_v28 = vld [vmem:[#allocation2 + $0x648] sm:$0xff] }
 0x2a2   : > { %v1054_v35 = vadd.f32 %v1053_v33, %v5699_v59  ;;  %v1055_v36 = vpop.f32.mrb[59].mxu1  ;;  %v4643_v30 = vpack.c.bf16 %v1944_v29, %v1942_v28  ;;  %v5126_v33 = vld [vmem:[%s5525_s5 + $0x40] sm:$0xff]  ;;  %v1968_v28 = vld [vmem:[#allocation2 + $0x718] sm:$0xff] }
 0x2a3   : > { %v1056_v39 = vadd.f32 %v1055_v36, %v5702_v62  ;;  %1444 = vmatprep.mubr.f32.mxu0 %v1127_v32  ;;  %v1943_v32 = vld [vmem:[#allocation2 + $0x650] sm:$0xff] }
 0x2a4   : > { %1445 = vmatmul.mubr.f32.gmra.mrb[120].mxu0 %v1126_v34  ;;  %v1128_v43 = vmax.f32 %v1054_v35, 0.0  ;;  %v4645_v34 = vpack.c.bf16 %v1943_v32, %v1941_v31  ;;  %v5127_v35 = vld [vmem:[%s5525_s5 + $0x48] sm:$0xff]  ;;  %v1200_v36 = vld [vmem:[#allocation7 + $0x2] ss:$8 sm:$0x3] }
 0x2a5   : > { %v1129_v41 = vmax.f32 %v1056_v39, 0.0  ;;  %v1059_v42 = vpop.f32.mrb[60].mxu1  ;;  %v4647_v39 = vpack.c.bf16 %v1948_v38, %v1946_v37  ;;  %v1965_v37 = vld [vmem:[#allocation2 + $0x700] sm:$0xff]  ;;  %v1967_v38 = vld [vmem:[#allocation2 + $0x710] sm:$0xff] }
 0x2a6   : > { %v1060_v44 = vadd.f32 %v1059_v42, %v5699_v59  ;;  %v1061_v6 = vpop.f32.mrb[61].mxu1  ;;  %v5128_v42 = vld [vmem:[%s5525_s5 + $0x50] sm:$0xff] }
 0x2a7   : > { %v1062_v45 = vadd.f32 %v1061_v6, %v5702_v62  ;;  %1450 = vmatprep.mubr.f32.mxu0 %v1129_v41  ;;  %v1947_v41 = vld [vmem:[#allocation2 + $0x670] sm:$0xff]  ;;  %v5808_v6 = vrot.slane %v1200_v36, %v5626_v63 }
 0x2a8   : > { %1451 = vmatmul.mubr.f32.gmra.mrb[122].mxu0 %v1128_v43  ;;  %v1130_v47 = vmax.f32 %v1060_v44, 0.0  ;;  %v5804_v43 = vrot.slane %v1200_v36, %v5624_v61  ;;  %v4649_v44 = vpack.c.bf16 %v1947_v41, %v1945_v40  ;;  %v1970_v40 = vld [vmem:[#allocation2 + $0x728] sm:$0xff]  ;;  %v1972_v41 = vld [vmem:[#allocation2 + $0x738] sm:$0xff] }
 0x2a9   : > { %v1131_v46 = vmax.f32 %v1062_v45, 0.0  ;;  %v1065_v8 = vpop.f32.mrb[62].mxu1 }
 0x2aa   : > { %v1066_v48 = vadd.f32 %v1065_v8, %v5699_v59  ;;  %v1067_v49 = vpop.f32.mrb[63].mxu1  ;;  %v2019_v59 = vld [vmem:[#allocation5 + $0x178] sm:$0xff] }
 0x2ab   : > { %v1068_v50 = vadd.f32 %v1067_v49, %v5702_v62  ;;  %1456 = vmatprep.mubr.f32.mxu0 %v1131_v46  ;;  %v2021_v62 = vld [vmem:[#allocation5 + $0x188] sm:$0xff]  ;;  %v1952_v8 = vld [vmem:[#allocation2 + $0x698] sm:$0xff] }
 0x2ac   : > { %1457 = vmatmul.mubr.f32.gmra.mrb[124].mxu0 %v1130_v47  ;;  %v1132_v52 = vmax.f32 %v1066_v48, 0.0  ;;  %v4631_v60 = vpack.c.bf16 %v2021_v62, %v2019_v59  ;;  %v1950_v46 = vld [vmem:[#allocation2 + $0x688] sm:$0xff]  ;;  %v1949_v47 = vld [vmem:[#allocation2 + $0x680] sm:$0xff]  ;;  %v5129_v48 = vld [vmem:[%s5525_s5 + $0x58] sm:$0xff]  ;;  %v4655_v62 = vpack.c.bf16 %v1956_v56, %v1954_v55 }
 0x2ad   : > { %v1133_v51 = vmax.f32 %v1068_v50, 0.0 }
 0x2ae   : > { %4632 = vmatprep.subr.bf16.mxu0 %v4631_v60  ;;  %v1955_v60 = vld [vmem:[#allocation2 + $0x6b0] sm:$0xff] }
 0x2af   : > { %1462 = vmatprep.mubr.f32.mxu0 %v1133_v51  ;;  %4634 = vmatpush1.bf16.msra.mxu0 %v4633_v3  ;;  %v4651_v51 = vpack.c.bf16 %v1952_v8, %v1950_v46 }
 0x2b0   : > { %1463 = vmatmul.mubr.f32.gmra.mrb[126].mxu0 %v1132_v52  ;;  %4321 = vmatprep.subr.msk.mxu0 %vm408_vm0, %v2023_v4  ;;  %v1951_v52 = vld [vmem:[#allocation2 + $0x690] sm:$0xff] }
 0x2b1   : > { %2094 = vmatprep.mubr.f32.mxu0 %v5343_v0  ;;  %v4653_v54 = vpack.c.bf16 %v1951_v52, %v1949_v47 }
 0x2b3   : > { %4322 = vmatpush1.msk.msra.mxu0 %vm408_vm0, %v2022_v5 }
 0x2b4   : > { %4323 = vmatmul.mubr.msk.f32.vlgmr.msra.gmra.mrb[128].mxu0 %vm311_vm1, %v5118_v7  ;;  %4636 = vmatprep.subr.bf16.mxu0 %v4635_v15  ;;  %v4657_v7 = vpack.c.bf16 %v1955_v60, %v1953_v57  ;;  %v1964_v15 = vld [vmem:[#allocation2 + $0x6f8] sm:$0xff]  ;;  %v5134_v60 = vld [vmem:[%s5525_s5 + $0x80] sm:$0xff] }
 0x2b5   : > { %2100 = vmatprep.mubr.f32.mxu0 %v5343_v0  ;;  %4638 = vmatpush1.bf16.msra.mxu0 %v4637_v18 }
 0x2b6   : > { %4640 = vmatprep.subr.bf16.mxu0 %v4639_v22  ;;  %v5131_v22 = vld [vmem:[%s5525_s5 + $0x68] sm:$0xff] }
 0x2b8   : > { %4324 = vmatmul.mubr.msk.f32.gmra.mrb[130].mxu0 %vm311_vm1, %v5119_v9  ;;  %v4659_v9 = vpack.c.bf16 %v1960_v2, %v1958_v1  ;;  %v1973_v2 = vld [vmem:[#allocation2 + $0x740] sm:$0xff] }
 0x2b9   : > { %2106 = vmatprep.mubr.f32.mxu0 %v5343_v0  ;;  %4642 = vmatpush1.bf16.msra.mxu0 %v4641_v26 }
 0x2ba   : > { %4644 = vmatprep.subr.bf16.mxu0 %v4643_v30 }
 0x2bc   : > { %4325 = vmatmul.mubr.msk.f32.gmra.mrb[132].mxu0 %vm311_vm1, %v5120_v10  ;;  %v5130_v10 = vld [vmem:[%s5525_s5 + $0x60] sm:$0xff] }
 0x2bd   : > { %2112 = vmatprep.mubr.f32.mxu0 %v5343_v0  ;;  %4646 = vmatpush1.bf16.msra.mxu0 %v4645_v34 }
 0x2be   : > { %4648 = vmatprep.subr.bf16.mxu0 %v4647_v39 }
 0x2c0   : > { %4326 = vmatmul.mubr.msk.f32.gmra.mrb[134].mxu0 %vm311_vm1, %v5121_v11  ;;  %v1957_v11 = vld [vmem:[#allocation2 + $0x6c0] sm:$0xff] }
 0x2c1   : > { %2118 = vmatprep.mubr.f32.mxu0 %v5343_v0  ;;  %4650 = vmatpush1.bf16.msra.mxu0 %v4649_v44  ;;  %v4661_v18 = vpack.c.bf16 %v1959_v12, %v1957_v11 }
 0x2c2   : > { %4652 = vmatprep.subr.bf16.mxu0 %v4651_v51  ;;  %v1971_v51 = vld [vmem:[#allocation2 + $0x730] sm:$0xff] }
 0x2c4   : > { %4327 = vmatmul.mubr.msk.f32.gmra.mrb[136].mxu0 %vm311_vm1, %v5122_v14  ;;  %v1962_v14 = vld [vmem:[#allocation2 + $0x6e8] sm:$0xff] }
 0x2c5   : > { %2124 = vmatprep.mubr.f32.mxu0 %v5343_v0  ;;  %4654 = vmatpush1.bf16.msra.mxu0 %v4653_v54  ;;  %v4663_v23 = vpack.c.bf16 %v1964_v15, %v1962_v14  ;;  %v1976_v54 = vld [vmem:[#allocation2 + $0x758] sm:$0xff]  ;;  %v5135_v15 = vld [vmem:[%s5525_s5 + $0x88] sm:$0xff] }
 0x2c6   : > { %4656 = vmatprep.subr.bf16.mxu0 %v4655_v62 }
 0x2c8   : > { %4328 = vmatmul.mubr.msk.f32.gmra.mrb[138].mxu0 %vm311_vm1, %v5123_v19 }
 0x2c9   : > { %2130 = vmatprep.mubr.f32.mxu0 %v5343_v0  ;;  %4658 = vmatpush1.bf16.msra.mxu0 %v4657_v7  ;;  %v1980_v7 = vld [vmem:[#allocation2 + $0x778] sm:$0xff] }
 0x2ca   : > { %4660 = vmatprep.subr.bf16.mxu0 %v4659_v9 }
 0x2cc   : > { %4329 = vmatmul.mubr.msk.f32.gmra.mrb[140].mxu0 %vm311_vm1, %v5124_v25  ;;  %v1963_v25 = vld [vmem:[#allocation2 + $0x6f0] sm:$0xff] }
 0x2cd   : > { %2136 = vmatprep.mubr.f32.mxu0 %v5343_v0  ;;  %4662 = vmatpush1.bf16.msra.mxu0 %v4661_v18  ;;  %v4665_v31 = vpack.c.bf16 %v1963_v25, %v1961_v24  ;;  %v1979_v18 = vld [vmem:[#allocation2 + $0x770] sm:$0xff] }
 0x2ce   : > { %4664 = vmatprep.subr.bf16.mxu0 %v4663_v23 }
 0x2d0   : > { %4330 = vmatmul.mubr.msk.f32.gmra.mrb[142].mxu0 %vm311_vm1, %v5125_v27  ;;  %v1966_v27 = vld [vmem:[#allocation2 + $0x708] sm:$0xff] }
 0x2d1   : > { %2142 = vmatprep.mubr.f32.mxu0 %v5343_v0  ;;  %v4667_v36 = vpack.c.bf16 %v1968_v28, %v1966_v27  ;;  %4666 = vmatpush1.bf16.msra.mxu0 %v4665_v31  ;;  %v5136_v28 = vld [vmem:[%s5525_s5 + $0x90] sm:$0xff] }
 0x2d2   : > { %v1983_v31 = vld [vmem:[#allocation2 + $0x790] sm:$0xff] }
 0x2d3   : > { %4668 = vmatprep.subr.bf16.mxu0 %v4667_v36 }
 0x2d4   : > { %4331 = vmatmul.mubr.msk.f32.gmra.mrb[144].mxu0 %vm311_vm1, %v5126_v33 }
 0x2d5   : > { %2148 = vmatprep.mubr.f32.mxu0 %v5343_v0 }
 0x2d8   : > { %4332 = vmatmul.mubr.msk.f32.gmra.mrb[146].mxu0 %vm311_vm1, %v5127_v35  ;;  %v5132_v35 = vld [vmem:[%s5525_s5 + $0x70] sm:$0xff] }
 0x2d9   : > { %2154 = vmatprep.mubr.f32.mxu0 %v5343_v0 }
 0x2dc   : > { %4333 = vmatmul.mubr.msk.f32.gmra.mrb[148].mxu0 %vm311_vm1, %v5128_v42 }
 0x2dd   : > { %2160 = vmatprep.mubr.f32.mxu0 %v5343_v0 }
 0x2e0   : > { %4334 = vmatmul.mubr.msk.f32.gmra.mrb[150].mxu0 %vm311_vm1, %v5129_v48  ;;  %v5133_v48 = vld [vmem:[%s5525_s5 + $0x78] sm:$0xff] }
 0x2e1   : > { %2166 = vmatprep.mubr.f32.mxu0 %v5343_v0 }
 0x2e4   : > { %4335 = vmatmul.mubr.msk.f32.gmra.mrb[152].mxu0 %vm311_vm1, %v5130_v10 }
 0x2e5   : > { %2172 = vmatprep.mubr.f32.mxu0 %v5343_v0 }
 0x2e8   : > { %4336 = vmatmul.mubr.msk.f32.gmra.mrb[154].mxu0 %vm311_vm1, %v5131_v22 }
 0x2e9   : > { %2178 = vmatprep.mubr.f32.mxu0 %v5343_v0 }
 0x2ec   : > { %4337 = vmatmul.mubr.msk.f32.gmra.mrb[156].mxu0 %vm311_vm1, %v5132_v35 }
 0x2ed   : > { %2184 = vmatprep.mubr.f32.mxu0 %v5343_v0 }
 0x2f0   : > { %4338 = vmatmul.mubr.msk.f32.gmra.mrb[158].mxu0 %vm311_vm1, %v5133_v48 }
 0x2f1   : > { %2190 = vmatprep.mubr.f32.mxu0 %v5343_v0 }
 0x2f4   : > { %4339 = vmatmul.mubr.msk.f32.gmra.mrb[160].mxu0 %vm311_vm1, %v5134_v60 }
 0x2f5   : > { %2196 = vmatprep.mubr.f32.mxu0 %v5343_v0 }
 0x2f8   : > { %4340 = vmatmul.mubr.msk.f32.gmra.mrb[162].mxu0 %vm311_vm1, %v5135_v15 }
 0x2f9   : > { %2202 = vmatprep.mubr.f32.mxu0 %v5343_v0 }
 0x2fc   : > { %4341 = vmatmul.mubr.msk.f32.gmra.mrb[164].mxu0 %vm311_vm1, %v5136_v28 }
 0x2fd   : > { %2208 = vmatprep.mubr.f32.mxu0 %v5343_v0 }
 0x307   : > { %v1278_v45 = vpop.f32.mrb[64].mxu0 }
 0x308   : > { %v1279_v49 = vadd.f32 %v1278_v45, %v5804_v43  ;;  %v1280_v50 = vpop.f32.mrb[65].mxu0  ;;  %v4669_v45 = vpack.c.bf16 %v1967_v38, %v1965_v37 }
 0x309   : > { %v1281_v53 = vadd.f32 %v1280_v50, %v5808_v6  ;;  %v1969_v50 = vld [vmem:[#allocation2 + $0x720] sm:$0xff] }
 0x30a   : > { %v1469_v3 = vmax.f32 %v1279_v49, 0.0  ;;  %v4671_v49 = vpack.c.bf16 %v1972_v41, %v1970_v40  ;;  %4670 = vmatpush1.bf16.msra.mxu0 %v4669_v45  ;;  %v4673_v57 = vpack.c.bf16 %v1971_v51, %v1969_v50  ;;  %v5137_v41 = vld [vmem:[%s5525_s5 + $0x98] sm:$0xff]  ;;  %v1987_v45 = vld [vmem:[#allocation2 + $0x7b0] sm:$0xff] }
 0x30b   : > { %v1470_v58 = vmax.f32 %v1281_v53, 0.0  ;;  %v1284_v59 = vpop.f32.mrb[66].mxu0  ;;  %v1974_v53 = vld [vmem:[#allocation2 + $0x748] sm:$0xff]  ;;  %4342 = vmatmul.mubr.msk.f32.gmra.mrb[166].mxu0 %vm311_vm1, %v5137_v41 }
 0x30c   : > { %v1285_v4 = vadd.f32 %v1284_v59, %v5804_v43  ;;  %v1286_v5 = vpop.f32.mrb[67].mxu0  ;;  %4672 = vmatprep.subr.bf16.mxu0 %v4671_v49  ;;  %v4675_v1 = vpack.c.bf16 %v1976_v54, %v1974_v53  ;;  %2214 = vmatprep.mubr.f32.mxu0 %v5343_v0  ;;  %v5138_v54 = vld [vmem:[%s5525_s5 + $0xa0] sm:$0xff] }
 0x30d   : > { %v1287_v13 = vadd.f32 %v1286_v5, %v5808_v6  ;;  %1675 = vmatprep.mubr.f32.mxu1 %v1470_v58  ;;  %v1978_v5 = vld [vmem:[#allocation2 + $0x768] sm:$0xff] }
 0x30e   : > { %1676 = vmatmul.mubr.f32.vlgmr.msra.gmra.mrb[64].mxu1 %v1469_v3  ;;  %v1471_v19 = vmax.f32 %v1285_v4, 0.0  ;;  %v1975_v3 = vld [vmem:[#allocation2 + $0x750] sm:$0xff]  ;;  %4674 = vmatpush1.bf16.msra.mxu0 %v4673_v57 }
 0x30f   : > { %v1472_v16 = vmax.f32 %v1287_v13, 0.0  ;;  %v1290_v17 = vpop.f32.mrb[68].mxu0  ;;  %v4677_v11 = vpack.c.bf16 %v1975_v3, %v1973_v2  ;;  %4676 = vmatprep.subr.bf16.mxu0 %v4675_v1  ;;  %4343 = vmatmul.mubr.msk.f32.gmra.mrb[168].mxu0 %vm311_vm1, %v5138_v54  ;;  %v1991_v57 = vld [vmem:[#allocation2 + $0x7d0] sm:$0xff]  ;;  %v5145_v54 = vld [vmem:[%s5525_s5 + $0xd8] sm:$0xff] }
 0x310   : > { %v1291_v20 = vadd.f32 %v1290_v17, %v5804_v43  ;;  %v1292_v21 = vpop.f32.mrb[69].mxu0  ;;  %v1977_v17 = vld [vmem:[#allocation2 + $0x760] sm:$0xff]  ;;  %2220 = vmatprep.mubr.f32.mxu0 %v5343_v0 }
 0x311   : > { %v1293_v26 = vadd.f32 %v1292_v21, %v5808_v6  ;;  %1681 = vmatprep.mubr.f32.mxu1 %v1472_v16  ;;  %v4679_v16 = vpack.c.bf16 %v1980_v7, %v1978_v5  ;;  %v1984_v21 = vld [vmem:[#allocation2 + $0x798] sm:$0xff]  ;;  %v4681_v24 = vpack.c.bf16 %v1979_v18, %v1977_v17  ;;  %v5139_v7 = vld [vmem:[%s5525_s5 + $0xa8] sm:$0xff] }
 0x312   : > { %1682 = vmatmul.mubr.f32.gmra.mrb[66].mxu1 %v1471_v19  ;;  %v1473_v32 = vmax.f32 %v1291_v20, 0.0  ;;  %v1982_v20 = vld [vmem:[#allocation2 + $0x788] sm:$0xff]  ;;  %4678 = vmatpush1.bf16.msra.mxu0 %v4677_v11  ;;  %v1995_v11 = vld [vmem:[#allocation2 + $0x7f0] sm:$0xff] }
 0x313   : > { %v1474_v29 = vmax.f32 %v1293_v26, 0.0  ;;  %v1296_v30 = vpop.f32.mrb[70].mxu0  ;;  %4680 = vmatprep.subr.bf16.mxu0 %v4679_v16  ;;  %4344 = vmatmul.mubr.msk.f32.gmra.mrb[170].mxu0 %vm311_vm1, %v5139_v7 }
 0x314   : > { %v1297_v33 = vadd.f32 %v1296_v30, %v5804_v43  ;;  %v1298_v34 = vpop.f32.mrb[71].mxu0  ;;  %v1981_v30 = vld [vmem:[#allocation2 + $0x780] sm:$0xff]  ;;  %2226 = vmatprep.mubr.f32.mxu0 %v5343_v0 }
 0x315   : > { %v1299_v39 = vadd.f32 %v1298_v34, %v5808_v6  ;;  %1687 = vmatprep.mubr.f32.mxu1 %v1474_v29  ;;  %v4683_v29 = vpack.c.bf16 %v1984_v21, %v1982_v20  ;;  %v1988_v34 = vld [vmem:[#allocation2 + $0x7b8] sm:$0xff]  ;;  %v4685_v37 = vpack.c.bf16 %v1983_v31, %v1981_v30 }
 0x316   : > { %1688 = vmatmul.mubr.f32.gmra.mrb[68].mxu1 %v1473_v32  ;;  %v1475_v46 = vmax.f32 %v1297_v33, 0.0  ;;  %v1986_v33 = vld [vmem:[#allocation2 + $0x7a8] sm:$0xff]  ;;  %4682 = vmatpush1.bf16.msra.mxu0 %v4681_v24 }
 0x317   : > { %v1476_v42 = vmax.f32 %v1299_v39, 0.0  ;;  %v1302_v44 = vpop.f32.mrb[72].mxu0  ;;  %4684 = vmatprep.subr.bf16.mxu0 %v4683_v29 }
 0x318   : > { %v1303_v8 = vadd.f32 %v1302_v44, %v5804_v43  ;;  %v1304_v47 = vpop.f32.mrb[73].mxu0  ;;  %v1985_v44 = vld [vmem:[#allocation2 + $0x7a0] sm:$0xff] }
 0x319   : > { %v1305_v52 = vadd.f32 %v1304_v47, %v5808_v6  ;;  %1693 = vmatprep.mubr.f32.mxu1 %v1476_v42  ;;  %v4687_v42 = vpack.c.bf16 %v1988_v34, %v1986_v33  ;;  %v1992_v47 = vld [vmem:[#allocation2 + $0x7d8] sm:$0xff]  ;;  %v4689_v50 = vpack.c.bf16 %v1987_v45, %v1985_v44  ;;  %v5142_v33 = vld [vmem:[%s5525_s5 + $0xc0] sm:$0xff] }
 0x31a   : > { %1694 = vmatmul.mubr.f32.gmra.mrb[70].mxu1 %v1475_v46  ;;  %v1477_v58 = vmax.f32 %v1303_v8, 0.0  ;;  %v1990_v8 = vld [vmem:[#allocation2 + $0x7c8] sm:$0xff]  ;;  %4686 = vmatpush1.bf16.msra.mxu0 %v4685_v37 }
 0x31b   : > { %v1478_v55 = vmax.f32 %v1305_v52, 0.0  ;;  %v1308_v56 = vpop.f32.mrb[74].mxu0  ;;  %4688 = vmatprep.subr.bf16.mxu0 %v4687_v42 }
 0x31c   : > { %v1309_v59 = vadd.f32 %v1308_v56, %v5804_v43  ;;  %v1310_v62 = vpop.f32.mrb[75].mxu0  ;;  %v1989_v56 = vld [vmem:[#allocation2 + $0x7c0] sm:$0xff] }
 0x31d   : > { %v1311_v4 = vadd.f32 %v1310_v62, %v5808_v6  ;;  %1699 = vmatprep.mubr.f32.mxu1 %v1478_v55  ;;  %v4691_v55 = vpack.c.bf16 %v1992_v47, %v1990_v8  ;;  %v1996_v62 = vld [vmem:[#allocation2 + $0x7f8] sm:$0xff]  ;;  %v4693_v2 = vpack.c.bf16 %v1991_v57, %v1989_v56  ;;  %v5144_v47 = vld [vmem:[%s5525_s5 + $0xd0] sm:$0xff] }
 0x31e   : > { %1700 = vmatmul.mubr.f32.gmra.mrb[72].mxu1 %v1477_v58  ;;  %v1479_v12 = vmax.f32 %v1309_v59, 0.0  ;;  %v1994_v59 = vld [vmem:[#allocation2 + $0x7e8] sm:$0xff]  ;;  %4690 = vmatpush1.bf16.msra.mxu0 %v4689_v50 }
 0x31f   : > { %v1480_v9 = vmax.f32 %v1311_v4, 0.0  ;;  %v1314_v10 = vpop.f32.mrb[76].mxu0  ;;  %4692 = vmatprep.subr.bf16.mxu0 %v4691_v55 }
 0x320   : > { %v1315_v13 = vadd.f32 %v1314_v10, %v5804_v43  ;;  %v1316_v14 = vpop.f32.mrb[77].mxu0  ;;  %v1993_v10 = vld [vmem:[#allocation2 + $0x7e0] sm:$0xff] }
 0x321   : > { %v1317_v19 = vadd.f32 %v1316_v14, %v5808_v6  ;;  %1705 = vmatprep.mubr.f32.mxu1 %v1480_v9  ;;  %v4695_v9 = vpack.c.bf16 %v1996_v62, %v1994_v59  ;;  %v4697_v15 = vpack.c.bf16 %v1995_v11, %v1993_v10 }
 0x322   : > { %1706 = vmatmul.mubr.f32.gmra.mrb[74].mxu1 %v1479_v12  ;;  %v1481_v25 = vmax.f32 %v1315_v13, 0.0  ;;  %4694 = vmatpush1.bf16.msra.mxu0 %v4693_v2 }
 0x323   : > { %v1482_v22 = vmax.f32 %v1317_v19, 0.0  ;;  %v1320_v23 = vpop.f32.mrb[78].mxu0  ;;  %v5140_v19 = vld [vmem:[%s5525_s5 + $0xb0] sm:$0xff]  ;;  %4696 = vmatprep.subr.bf16.mxu0 %v4695_v9  ;;  %v5147_v9 = vld [vmem:[%s5525_s5 + $0xe8] sm:$0xff] }
 0x324   : > { %v1321_v26 = vadd.f32 %v1320_v23, %v5804_v43  ;;  %v1322_v27 = vpop.f32.mrb[79].mxu0  ;;  %4345 = vmatmul.mubr.msk.f32.gmra.mrb[172].mxu0 %vm311_vm1, %v5140_v19 }
 0x325   : > { %v1323_v32 = vadd.f32 %v1322_v27, %v5808_v6  ;;  %1711 = vmatprep.mubr.f32.mxu1 %v1482_v22  ;;  %2232 = vmatprep.mubr.f32.mxu0 %v5343_v0 }
 0x326   : > { %1712 = vmatmul.mubr.f32.gmra.mrb[76].mxu1 %v1481_v25  ;;  %v1483_v38 = vmax.f32 %v1321_v26, 0.0  ;;  %4698 = vmatpush1.bf16.msra.mxu0 %v4697_v15  ;;  %v5141_v26 = vld [vmem:[%s5525_s5 + $0xb8] sm:$0xff] }
 0x327   : > { %v1484_v35 = vmax.f32 %v1323_v32, 0.0  ;;  %v1326_v36 = vpop.f32.mrb[80].mxu0 }
 0x328   : > { %v1327_v39 = vadd.f32 %v1326_v36, %v5804_v43  ;;  %v1328_v40 = vpop.f32.mrb[81].mxu0  ;;  %4346 = vmatmul.mubr.msk.f32.gmra.mrb[174].mxu0 %vm311_vm1, %v5141_v26 }
 0x329   : > { %v1329_v46 = vadd.f32 %v1328_v40, %v5808_v6  ;;  %1717 = vmatprep.mubr.f32.mxu1 %v1484_v35  ;;  %2238 = vmatprep.mubr.f32.mxu0 %v5343_v0  ;;  %v5143_v40 = vld [vmem:[%s5525_s5 + $0xc8] sm:$0xff] }
 0x32a   : > { %1718 = vmatmul.mubr.f32.gmra.mrb[78].mxu1 %v1483_v38  ;;  %v1485_v51 = vmax.f32 %v1327_v39, 0.0 }
 0x32b   : > { %v1486_v48 = vmax.f32 %v1329_v46, 0.0  ;;  %v1332_v49 = vpop.f32.mrb[82].mxu0 }
 0x32c   : > { %v1333_v52 = vadd.f32 %v1332_v49, %v5804_v43  ;;  %v1334_v53 = vpop.f32.mrb[83].mxu0  ;;  %4347 = vmatmul.mubr.msk.f32.gmra.mrb[176].mxu0 %vm311_vm1, %v5142_v33 }
 0x32d   : > { %v1335_v58 = vadd.f32 %v1334_v53, %v5808_v6  ;;  %1723 = vmatprep.mubr.f32.mxu1 %v1486_v48  ;;  %2244 = vmatprep.mubr.f32.mxu0 %v5343_v0 }
 0x32e   : > { %1724 = vmatmul.mubr.f32.gmra.mrb[80].mxu1 %v1485_v51  ;;  %v1487_v3 = vmax.f32 %v1333_v52, 0.0 }
 0x32f   : > { %v1488_v60 = vmax.f32 %v1335_v58, 0.0  ;;  %v1338_v1 = vpop.f32.mrb[84].mxu0 }
 0x330   : > { %v1339_v4 = vadd.f32 %v1338_v1, %v5804_v43  ;;  %v1340_v5 = vpop.f32.mrb[85].mxu0  ;;  %4348 = vmatmul.mubr.msk.f32.gmra.mrb[178].mxu0 %vm311_vm1, %v5143_v40 }
 0x331   : > { %v1341_v12 = vadd.f32 %v1340_v5, %v5808_v6  ;;  %1729 = vmatprep.mubr.f32.mxu1 %v1488_v60  ;;  %2250 = vmatprep.mubr.f32.mxu0 %v5343_v0  ;;  %v5146_v60 = vld [vmem:[%s5525_s5 + $0xe0] sm:$0xff] }
 0x332   : > { %1730 = vmatmul.mubr.f32.gmra.mrb[82].mxu1 %v1487_v3  ;;  %v1489_v16 = vmax.f32 %v1339_v4, 0.0 }
 0x333   : > { %v1490_v13 = vmax.f32 %v1341_v12, 0.0  ;;  %v1344_v14 = vpop.f32.mrb[86].mxu0 }
 0x334   : > { %v1345_v17 = vadd.f32 %v1344_v14, %v5804_v43  ;;  %v1346_v18 = vpop.f32.mrb[87].mxu0  ;;  %4349 = vmatmul.mubr.msk.f32.gmra.mrb[180].mxu0 %vm311_vm1, %v5144_v47 }
 0x335   : > { %v1347_v20 = vadd.f32 %v1346_v18, %v5808_v6  ;;  %1735 = vmatprep.mubr.f32.mxu1 %v1490_v13  ;;  %2256 = vmatprep.mubr.f32.mxu0 %v5343_v0 }
 0x336   : > { %1736 = vmatmul.mubr.f32.gmra.mrb[84].mxu1 %v1489_v16  ;;  %v1491_v23 = vmax.f32 %v1345_v17, 0.0  ;;  %v5148_v16 = vld [vmem:[%s5525_s5 + $0xf0] sm:$0xff] }
 0x337   : > { %v1492_v21 = vmax.f32 %v1347_v20, 0.0  ;;  %v1350_v22 = vpop.f32.mrb[88].mxu0 }
 0x338   : > { %v1351_v24 = vadd.f32 %v1350_v22, %v5804_v43  ;;  %v1352_v25 = vpop.f32.mrb[89].mxu0  ;;  %4350 = vmatmul.mubr.msk.f32.gmra.mrb[182].mxu0 %vm311_vm1, %v5145_v54 }
 0x339   : > { %v1353_v27 = vadd.f32 %v1352_v25, %v5808_v6  ;;  %1741 = vmatprep.mubr.f32.mxu1 %v1492_v21  ;;  %2262 = vmatprep.mubr.f32.mxu0 %v5343_v0 }
 0x33a   : > { %1742 = vmatmul.mubr.f32.gmra.mrb[86].mxu1 %v1491_v23  ;;  %v1493_v30 = vmax.f32 %v1351_v24, 0.0  ;;  %v5149_v23 = vld [vmem:[%s5525_s5 + $0xf8] sm:$0xff] }
 0x33b   : > { %v1494_v28 = vmax.f32 %v1353_v27, 0.0  ;;  %v1356_v29 = vpop.f32.mrb[90].mxu0 }
 0x33c   : > { %v1357_v31 = vadd.f32 %v1356_v29, %v5804_v43  ;;  %v1358_v32 = vpop.f32.mrb[91].mxu0  ;;  %4351 = vmatmul.mubr.msk.f32.gmra.mrb[184].mxu0 %vm311_vm1, %v5146_v60 }
 0x33d   : > { %v1359_v34 = vadd.f32 %v1358_v32, %v5808_v6  ;;  %1747 = vmatprep.mubr.f32.mxu1 %v1494_v28  ;;  %2268 = vmatprep.mubr.f32.mxu0 %v5343_v0 }
 0x33e   : > { %1748 = vmatmul.mubr.f32.gmra.mrb[88].mxu1 %v1493_v30  ;;  %v1495_v37 = vmax.f32 %v1357_v31, 0.0 }
 0x33f   : > { %v1496_v35 = vmax.f32 %v1359_v34, 0.0  ;;  %v1362_v36 = vpop.f32.mrb[92].mxu0 }
 0x340   : > { %v1363_v38 = vadd.f32 %v1362_v36, %v5804_v43  ;;  %v1364_v39 = vpop.f32.mrb[93].mxu0  ;;  %4352 = vmatmul.mubr.msk.f32.gmra.mrb[186].mxu0 %vm311_vm1, %v5147_v9 }
 0x341   : > { %v1365_v41 = vadd.f32 %v1364_v39, %v5808_v6  ;;  %1753 = vmatprep.mubr.f32.mxu1 %v1496_v35  ;;  %2274 = vmatprep.mubr.f32.mxu0 %v5343_v0 }
 0x342   : > { %1754 = vmatmul.mubr.f32.gmra.mrb[90].mxu1 %v1495_v37  ;;  %v1497_v45 = vmax.f32 %v1363_v38, 0.0 }
 0x343   : > { %v1498_v42 = vmax.f32 %v1365_v41, 0.0  ;;  %v1368_v44 = vpop.f32.mrb[94].mxu0 }
 0x344   : > { %v1369_v46 = vadd.f32 %v1368_v44, %v5804_v43  ;;  %v1370_v8 = vpop.f32.mrb[95].mxu0  ;;  %4353 = vmatmul.mubr.msk.f32.gmra.mrb[188].mxu0 %vm311_vm1, %v5148_v16 }
 0x345   : > { %v1371_v48 = vadd.f32 %v1370_v8, %v5808_v6  ;;  %1759 = vmatprep.mubr.f32.mxu1 %v1498_v42  ;;  %2280 = vmatprep.mubr.f32.mxu0 %v5343_v0 }
 0x346   : > { %1760 = vmatmul.mubr.f32.gmra.mrb[92].mxu1 %v1497_v45  ;;  %v1499_v51 = vmax.f32 %v1369_v46, 0.0 }
 0x347   : > { %v1500_v49 = vmax.f32 %v1371_v48, 0.0  ;;  %v1374_v50 = vpop.f32.mrb[96].mxu0 }
 0x348   : > { %v1375_v52 = vadd.f32 %v1374_v50, %v5804_v43  ;;  %v1376_v53 = vpop.f32.mrb[97].mxu0  ;;  %4354 = vmatmul.mubr.msk.f32.gmra.mrb[190].mxu0 %vm311_vm1, %v5149_v23 }
 0x349   : > { %v1377_v55 = vadd.f32 %v1376_v53, %v5808_v6  ;;  %1765 = vmatprep.mubr.f32.mxu1 %v1500_v49 }
 0x34a   : > { %1766 = vmatmul.mubr.f32.gmra.mrb[94].mxu1 %v1499_v51  ;;  %v1501_v58 = vmax.f32 %v1375_v52, 0.0 }
 0x34b   : > { %v1502_v56 = vmax.f32 %v1377_v55, 0.0  ;;  %v1380_v57 = vpop.f32.mrb[98].mxu0 }
 0x34c   : > { %v1381_v59 = vadd.f32 %v1380_v57, %v5804_v43  ;;  %v1382_v62 = vpop.f32.mrb[99].mxu0 }
 0x34d   : > { %v1383_v1 = vadd.f32 %v1382_v62, %v5808_v6  ;;  %1771 = vmatprep.mubr.f32.mxu1 %v1502_v56 }
 0x34e   : > { %1772 = vmatmul.mubr.f32.gmra.mrb[96].mxu1 %v1501_v58  ;;  %v1503_v4 = vmax.f32 %v1381_v59, 0.0 }
 0x34f   : > { %v1504_v2 = vmax.f32 %v1383_v1, 0.0  ;;  %v1386_v3 = vpop.f32.mrb[100].mxu0 }
 0x350   : > { %v1387_v5 = vadd.f32 %v1386_v3, %v5804_v43  ;;  %v1388_v7 = vpop.f32.mrb[101].mxu0 }
 0x351   : > { %v1389_v10 = vadd.f32 %v1388_v7, %v5808_v6  ;;  %1777 = vmatprep.mubr.f32.mxu1 %v1504_v2 }
 0x352   : > { %1778 = vmatmul.mubr.f32.gmra.mrb[98].mxu1 %v1503_v4  ;;  %v1505_v13 = vmax.f32 %v1387_v5, 0.0 }
 0x353   : > { %v1506_v11 = vmax.f32 %v1389_v10, 0.0  ;;  %v1392_v12 = vpop.f32.mrb[102].mxu0 }
 0x354   : > { %v1393_v14 = vadd.f32 %v1392_v12, %v5804_v43  ;;  %v1394_v15 = vpop.f32.mrb[103].mxu0 }
 0x355   : > { %v1395_v17 = vadd.f32 %v1394_v15, %v5808_v6  ;;  %1783 = vmatprep.mubr.f32.mxu1 %v1506_v11 }
 0x356   : > { %1784 = vmatmul.mubr.f32.gmra.mrb[100].mxu1 %v1505_v13  ;;  %v1507_v20 = vmax.f32 %v1393_v14, 0.0 }
 0x357   : > { %v1508_v18 = vmax.f32 %v1395_v17, 0.0  ;;  %v1398_v19 = vpop.f32.mrb[104].mxu0 }
 0x358   : > { %v1399_v21 = vadd.f32 %v1398_v19, %v5804_v43  ;;  %v1400_v22 = vpop.f32.mrb[105].mxu0 }
 0x359   : > { %v1401_v24 = vadd.f32 %v1400_v22, %v5808_v6  ;;  %1789 = vmatprep.mubr.f32.mxu1 %v1508_v18 }
 0x35a   : > { %1790 = vmatmul.mubr.f32.gmra.mrb[102].mxu1 %v1507_v20  ;;  %v1509_v27 = vmax.f32 %v1399_v21, 0.0 }
 0x35b   : > { %v1510_v25 = vmax.f32 %v1401_v24, 0.0  ;;  %v1404_v26 = vpop.f32.mrb[106].mxu0 }
 0x35c   : > { %v1405_v28 = vadd.f32 %v1404_v26, %v5804_v43  ;;  %v1406_v29 = vpop.f32.mrb[107].mxu0 }
 0x35d   : > { %v1407_v30 = vadd.f32 %v1406_v29, %v5808_v6  ;;  %1795 = vmatprep.mubr.f32.mxu1 %v1510_v25 }
 0x35e   : > { %1796 = vmatmul.mubr.f32.gmra.mrb[104].mxu1 %v1509_v27  ;;  %v1511_v33 = vmax.f32 %v1405_v28, 0.0 }
 0x35f   : > { %v1512_v31 = vmax.f32 %v1407_v30, 0.0  ;;  %v1410_v32 = vpop.f32.mrb[108].mxu0 }
 0x360   : > { %v1411_v34 = vadd.f32 %v1410_v32, %v5804_v43  ;;  %v1412_v35 = vpop.f32.mrb[109].mxu0 }
 0x361   : > { %v1413_v36 = vadd.f32 %v1412_v35, %v5808_v6  ;;  %1801 = vmatprep.mubr.f32.mxu1 %v1512_v31  ;;  %v2689_v35 = vld [vmem:[#allocation2 + $0x818] sm:$0xff] }
 0x362   : > { %1802 = vmatmul.mubr.f32.gmra.mrb[106].mxu1 %v1511_v33  ;;  %v1513_v39 = vmax.f32 %v1411_v34, 0.0  ;;  %v2687_v34 = vld [vmem:[#allocation2 + $0x808] sm:$0xff] }
 0x363   : > { %v1514_v37 = vmax.f32 %v1413_v36, 0.0  ;;  %v1416_v38 = vpop.f32.mrb[110].mxu0  ;;  %v4699_v36 = vpack.c.bf16 %v2689_v35, %v2687_v34 }
 0x364   : > { %v1417_v40 = vadd.f32 %v1416_v38, %v5804_v43  ;;  %v1418_v41 = vpop.f32.mrb[111].mxu0  ;;  %v2688_v38 = vld [vmem:[#allocation2 + $0x810] sm:$0xff] }
 0x365   : > { %v1419_v42 = vadd.f32 %v1418_v41, %v5808_v6  ;;  %1807 = vmatprep.mubr.f32.mxu1 %v1514_v37  ;;  %v2686_v37 = vld [vmem:[#allocation2 + $0x800] sm:$0xff]  ;;  %4700 = vmatprep.subr.bf16.mxu1 %v4699_v36  ;;  %v2693_v41 = vld [vmem:[#allocation2 + $0x838] sm:$0xff] }
 0x366   : > { %1808 = vmatmul.mubr.f32.gmra.mrb[108].mxu1 %v1513_v39  ;;  %v1515_v46 = vmax.f32 %v1417_v40, 0.0  ;;  %v4701_v39 = vpack.c.bf16 %v2688_v38, %v2686_v37  ;;  %v2691_v40 = vld [vmem:[#allocation2 + $0x828] sm:$0xff]  ;;  %v2714_v36 = vld [vmem:[#allocation2 + $0x8e0] sm:$0xff]  ;;  %v2716_v37 = vld [vmem:[#allocation2 + $0x8f0] sm:$0xff] }
 0x367   : > { %v1516_v44 = vmax.f32 %v1419_v42, 0.0  ;;  %v1422_v45 = vpop.f32.mrb[112].mxu0  ;;  %v2690_v42 = vld [vmem:[#allocation2 + $0x820] sm:$0xff] }
 0x368   : > { %v1423_v8 = vadd.f32 %v1422_v45, %v5804_v43  ;;  %v1424_v47 = vpop.f32.mrb[113].mxu0  ;;  %4702 = vmatpush1.bf16.msra.mxu1 %v4701_v39  ;;  %v2695_v45 = vld [vmem:[#allocation2 + $0x848] sm:$0xff] }
 0x369   : > { %v1425_v48 = vadd.f32 %v1424_v47, %v5808_v6  ;;  %1813 = vmatprep.mubr.f32.mxu1 %v1516_v44  ;;  %v2692_v44 = vld [vmem:[#allocation2 + $0x830] sm:$0xff]  ;;  %v2694_v47 = vld [vmem:[#allocation2 + $0x840] sm:$0xff]  ;;  %v2719_v39 = vld [vmem:[#allocation2 + $0x908] sm:$0xff] }
 0x36a   : > { %1814 = vmatmul.mubr.f32.gmra.mrb[110].mxu1 %v1515_v46  ;;  %v1517_v51 = vmax.f32 %v1423_v8, 0.0  ;;  %v2697_v46 = vld [vmem:[#allocation2 + $0x858] sm:$0xff] }
 0x36b   : > { %v1518_v49 = vmax.f32 %v1425_v48, 0.0  ;;  %v1428_v50 = vpop.f32.mrb[114].mxu0  ;;  %v4707_v8 = vpack.c.bf16 %v2697_v46, %v2695_v45  ;;  %v2696_v48 = vld [vmem:[#allocation2 + $0x850] sm:$0xff] }
 0x36c   : > { %v1429_v52 = vadd.f32 %v1428_v50, %v5804_v43  ;;  %v1430_v53 = vpop.f32.mrb[115].mxu0  ;;  %v1599_v50 = vld [vmem:[#allocation7 + $0x3] ss:$8 sm:$0x3] }
 0x36d   : > { %v1431_v54 = vadd.f32 %v1430_v53, %v5808_v6  ;;  %1819 = vmatprep.mubr.f32.mxu1 %v1518_v49  ;;  %v4709_v49 = vpack.c.bf16 %v2696_v48, %v2694_v47  ;;  %v2720_v47 = vld [vmem:[#allocation2 + $0x910] sm:$0xff] }
 0x36e   : > { %1820 = vmatmul.mubr.f32.gmra.mrb[112].mxu1 %v1517_v51  ;;  %v1519_v57 = vmax.f32 %v1429_v52, 0.0  ;;  %v2699_v51 = vld [vmem:[#allocation2 + $0x868] sm:$0xff]  ;;  %v2701_v52 = vld [vmem:[#allocation2 + $0x878] sm:$0xff] }
 0x36f   : > { %v1520_v55 = vmax.f32 %v1431_v54, 0.0  ;;  %v1434_v56 = vpop.f32.mrb[116].mxu0  ;;  %v4711_v53 = vpack.c.bf16 %v2701_v52, %v2699_v51  ;;  %v2698_v54 = vld [vmem:[#allocation2 + $0x860] sm:$0xff] }
 0x370   : > { %v1435_v58 = vadd.f32 %v1434_v56, %v5804_v43  ;;  %v1436_v59 = vpop.f32.mrb[117].mxu0  ;;  %v5937_v56 = vrot.slane %v1599_v50, %v5624_v61 }
 0x371   : > { %v1437_v62 = vadd.f32 %v1436_v59, %v5808_v6  ;;  %1825 = vmatprep.mubr.f32.mxu1 %v1520_v55  ;;  %v2700_v55 = vld [vmem:[#allocation2 + $0x870] sm:$0xff] }
 0x372   : > { %1826 = vmatmul.mubr.f32.gmra.mrb[114].mxu1 %v1519_v57  ;;  %v1521_v2 = vmax.f32 %v1435_v58, 0.0  ;;  %v4713_v57 = vpack.c.bf16 %v2700_v55, %v2698_v54  ;;  %v5940_v58 = vrot.slane %v1599_v50, %v5626_v63  ;;  %v2725_v50 = vld [vmem:[#allocation2 + $0x938] sm:$0xff] }
 0x373   : > { %v1522_v60 = vmax.f32 %v1437_v62, 0.0  ;;  %v1440_v1 = vpop.f32.mrb[118].mxu0  ;;  %v2703_v62 = vld [vmem:[#allocation2 + $0x888] sm:$0xff] }
 0x374   : > { %v1441_v3 = vadd.f32 %v1440_v1, %v5804_v43  ;;  %v1442_v4 = vpop.f32.mrb[119].mxu0  ;;  %v2702_v1 = vld [vmem:[#allocation2 + $0x880] sm:$0xff] }
 0x375   : > { %v1443_v5 = vadd.f32 %v1442_v4, %v5808_v6  ;;  %1831 = vmatprep.mubr.f32.mxu1 %v1522_v60  ;;  %v2705_v60 = vld [vmem:[#allocation2 + $0x898] sm:$0xff] }
 0x376   : > { %1832 = vmatmul.mubr.f32.gmra.mrb[116].mxu1 %v1521_v2  ;;  %v1523_v10 = vmax.f32 %v1441_v3, 0.0  ;;  %v4715_v4 = vpack.c.bf16 %v2705_v60, %v2703_v62  ;;  %v2722_v62 = vld [vmem:[#allocation2 + $0x920] sm:$0xff]  ;;  %v2724_v60 = vld [vmem:[#allocation2 + $0x930] sm:$0xff] }
 0x377   : > { %v1524_v7 = vmax.f32 %v1443_v5, 0.0  ;;  %v1446_v9 = vpop.f32.mrb[120].mxu0  ;;  %v2704_v5 = vld [vmem:[#allocation2 + $0x890] sm:$0xff] }
 0x378   : > { %v1447_v11 = vadd.f32 %v1446_v9, %v5804_v43  ;;  %v1448_v12 = vpop.f32.mrb[121].mxu0  ;;  %v4717_v9 = vpack.c.bf16 %v2704_v5, %v2702_v1 }
 0x379   : > { %v1449_v13 = vadd.f32 %v1448_v12, %v5808_v6  ;;  %1837 = vmatprep.mubr.f32.mxu1 %v1524_v7  ;;  %v2706_v12 = vld [vmem:[#allocation2 + $0x8a0] sm:$0xff] }
 0x37a   : > { %1838 = vmatmul.mubr.f32.gmra.mrb[118].mxu1 %v1523_v10  ;;  %v1525_v16 = vmax.f32 %v1447_v11, 0.0  ;;  %v2707_v10 = vld [vmem:[#allocation2 + $0x8a8] sm:$0xff]  ;;  %v2709_v11 = vld [vmem:[#allocation2 + $0x8b8] sm:$0xff] }
 0x37b   : > { %v1526_v14 = vmax.f32 %v1449_v13, 0.0  ;;  %v1452_v15 = vpop.f32.mrb[122].mxu0 }
 0x37c   : > { %v1453_v17 = vadd.f32 %v1452_v15, %v5804_v43  ;;  %v1454_v18 = vpop.f32.mrb[123].mxu0  ;;  %v4719_v15 = vpack.c.bf16 %v2709_v11, %v2707_v10 }
 0x37d   : > { %v1455_v19 = vadd.f32 %v1454_v18, %v5808_v6  ;;  %1843 = vmatprep.mubr.f32.mxu1 %v1526_v14  ;;  %v2713_v18 = vld [vmem:[#allocation2 + $0x8d8] sm:$0xff] }
 0x37e   : > { %1844 = vmatmul.mubr.f32.gmra.mrb[120].mxu1 %v1525_v16  ;;  %v1527_v22 = vmax.f32 %v1453_v17, 0.0  ;;  %v2708_v16 = vld [vmem:[#allocation2 + $0x8b0] sm:$0xff]  ;;  %v2711_v17 = vld [vmem:[#allocation2 + $0x8c8] sm:$0xff] }
 0x37f   : > { %v1528_v20 = vmax.f32 %v1455_v19, 0.0  ;;  %v1458_v21 = vpop.f32.mrb[124].mxu0 }
 0x380   : > { %v1459_v23 = vadd.f32 %v1458_v21, %v5804_v43  ;;  %v1460_v24 = vpop.f32.mrb[125].mxu0 }
 0x381   : > { %v1461_v25 = vadd.f32 %v1460_v24, %v5808_v6  ;;  %1849 = vmatprep.mubr.f32.mxu1 %v1528_v20  ;;  %v2710_v24 = vld [vmem:[#allocation2 + $0x8c0] sm:$0xff] }
 0x382   : > { %1850 = vmatmul.mubr.f32.gmra.mrb[122].mxu1 %v1527_v22  ;;  %v1529_v28 = vmax.f32 %v1459_v23, 0.0  ;;  %v4721_v22 = vpack.c.bf16 %v2708_v16, %v2706_v12  ;;  %v4723_v23 = vpack.c.bf16 %v2713_v18, %v2711_v17  ;;  %v2731_v16 = vld [vmem:[#allocation2 + $0x968] sm:$0xff]  ;;  %v2733_v17 = vld [vmem:[#allocation2 + $0x978] sm:$0xff] }
 0x383   : > { %v1530_v26 = vmax.f32 %v1461_v25, 0.0  ;;  %v1464_v27 = vpop.f32.mrb[126].mxu0  ;;  %v2712_v25 = vld [vmem:[#allocation2 + $0x8d0] sm:$0xff] }
 0x384   : > { %v1465_v29 = vadd.f32 %v1464_v27, %v5804_v43  ;;  %v1466_v30 = vpop.f32.mrb[127].mxu0  ;;  %v4703_v43 = vpack.c.bf16 %v2693_v41, %v2691_v40  ;;  %v2715_v27 = vld [vmem:[#allocation2 + $0x8e8] sm:$0xff]  ;;  %v2721_v40 = vld [vmem:[#allocation2 + $0x918] sm:$0xff] }
 0x385   : > { %v1467_v31 = vadd.f32 %v1466_v30, %v5808_v6  ;;  %1855 = vmatprep.mubr.f32.mxu1 %v1530_v26  ;;  %v4705_v6 = vpack.c.bf16 %v2692_v44, %v2690_v42  ;;  %v4729_v42 = vpack.c.bf16 %v2716_v37, %v2714_v36  ;;  %v4731_v46 = vpack.c.bf16 %v2721_v40, %v2719_v39  ;;  %v2734_v37 = vld [vmem:[#allocation2 + $0x980] sm:$0xff]  ;;  %v2739_v40 = vld [vmem:[#allocation2 + $0x9a8] sm:$0xff] }
 0x386   : > { %1856 = vmatmul.mubr.f32.gmra.mrb[124].mxu1 %v1529_v28  ;;  %v1531_v33 = vmax.f32 %v1465_v29, 0.0  ;;  %4704 = vmatprep.subr.bf16.mxu1 %v4703_v43  ;;  %v2717_v28 = vld [vmem:[#allocation2 + $0x8f8] sm:$0xff] }
 0x387   : > { %v1532_v32 = vmax.f32 %v1467_v31, 0.0  ;;  %4706 = vmatpush1.bf16.msra.mxu1 %v4705_v6  ;;  %v4725_v31 = vpack.c.bf16 %v2712_v25, %v2710_v24  ;;  %v4727_v35 = vpack.c.bf16 %v2717_v28, %v2715_v27  ;;  %v4743_v24 = vpack.c.bf16 %v2733_v17, %v2731_v16  ;;  %v2730_v25 = vld [vmem:[#allocation2 + $0x960] sm:$0xff]  ;;  %v2735_v28 = vld [vmem:[#allocation2 + $0x988] sm:$0xff] }
 0x388   : > { %4708 = vmatprep.subr.bf16.mxu1 %v4707_v8  ;;  %v2718_v8 = vld [vmem:[#allocation2 + $0x900] sm:$0xff] }
 0x389   : > { %1861 = vmatprep.mubr.f32.mxu1 %v1532_v32 }
 0x38a   : > { %1862 = vmatmul.mubr.f32.gmra.mrb[126].mxu1 %v1531_v33 }
 0x38b   : > { %4710 = vmatpush1.bf16.msra.mxu1 %v4709_v49  ;;  %v2723_v49 = vld [vmem:[#allocation2 + $0x928] sm:$0xff] }
 0x38c   : > { %4712 = vmatprep.subr.bf16.mxu1 %v4711_v53  ;;  %v4733_v53 = vpack.c.bf16 %v2720_v47, %v2718_v8  ;;  %v2738_v47 = vld [vmem:[#allocation2 + $0x9a0] sm:$0xff] }
 0x38f   : > { %4714 = vmatpush1.bf16.msra.mxu1 %v4713_v57 }
 0x390   : > { %4716 = vmatprep.subr.bf16.mxu1 %v4715_v4 }
 0x393   : > { %4718 = vmatpush1.bf16.msra.mxu1 %v4717_v9 }
 0x394   : > { %4720 = vmatprep.subr.bf16.mxu1 %v4719_v15 }
 0x397   : > { %4722 = vmatpush1.bf16.msra.mxu1 %v4721_v22 }
 0x398   : > { %4724 = vmatprep.subr.bf16.mxu1 %v4723_v23 }
 0x39b   : > { %4726 = vmatpush1.bf16.msra.mxu1 %v4725_v31 }
 0x39c   : > { %4728 = vmatprep.subr.bf16.mxu1 %v4727_v35 }
 0x39f   : > { %4730 = vmatpush1.bf16.msra.mxu1 %v4729_v42 }
 0x3a0   : > { %4732 = vmatprep.subr.bf16.mxu1 %v4731_v46 }
 0x3a3   : > { %4734 = vmatpush1.bf16.msra.mxu1 %v4733_v53 }
 0x3e1   : > { %v1677_v59 = vpop.f32.mrb[64].mxu1 }
 0x3e2   : > { %v1678_v2 = vadd.f32 %v1677_v59, %v5937_v56  ;;  %v1679_v3 = vpop.f32.mrb[65].mxu1  ;;  %v4735_v59 = vpack.c.bf16 %v2725_v50, %v2723_v49  ;;  %v2743_v50 = vld [vmem:[#allocation2 + $0x9c8] sm:$0xff] }
 0x3e3   : > { %v1680_v7 = vadd.f32 %v1679_v3, %v5940_v58  ;;  %v2729_v3 = vld [vmem:[#allocation2 + $0x958] sm:$0xff] }
 0x3e4   : > { %v1868_v19 = vmax.f32 %v1678_v2, 0.0  ;;  %v2727_v2 = vld [vmem:[#allocation2 + $0x948] sm:$0xff]  ;;  %4736 = vmatprep.subr.bf16.mxu1 %v4735_v59 }
 0x3e5   : > { %v1869_v13 = vmax.f32 %v1680_v7, 0.0  ;;  %v1683_v14 = vpop.f32.mrb[66].mxu1  ;;  %v4737_v7 = vpack.c.bf16 %v2724_v60, %v2722_v62  ;;  %v4739_v12 = vpack.c.bf16 %v2729_v3, %v2727_v2  ;;  %v2742_v60 = vld [vmem:[#allocation2 + $0x9c0] sm:$0xff]  ;;  %v2747_v3 = vld [vmem:[#allocation2 + $0x9e8] sm:$0xff] }
 0x3e6   : > { %v1684_v20 = vadd.f32 %v1683_v14, %v5937_v56  ;;  %v1685_v21 = vpop.f32.mrb[67].mxu1  ;;  %v2728_v14 = vld [vmem:[#allocation2 + $0x950] sm:$0xff] }
 0x3e7   : > { %v1686_v26 = vadd.f32 %v1685_v21, %v5940_v58  ;;  %2351 = vmatprep.mubr.f32.mxu0 %v1869_v13  ;;  %v2726_v13 = vld [vmem:[#allocation2 + $0x940] sm:$0xff]  ;;  %4738 = vmatpush1.bf16.msra.mxu1 %v4737_v7 }
 0x3e8   : > { %2352 = vmatmul.mubr.f32.vlgmr.msra.gmra.mrb[128].mxu0 %v1868_v19  ;;  %v1870_v32 = vmax.f32 %v1684_v20, 0.0  ;;  %v4741_v20 = vpack.c.bf16 %v2728_v14, %v2726_v13  ;;  %4740 = vmatprep.subr.bf16.mxu1 %v4739_v12  ;;  %v2746_v14 = vld [vmem:[#allocation2 + $0x9e0] sm:$0xff] }
 0x3e9   : > { %v1871_v29 = vmax.f32 %v1686_v26, 0.0  ;;  %v1689_v30 = vpop.f32.mrb[68].mxu1  ;;  %v2732_v26 = vld [vmem:[#allocation2 + $0x970] sm:$0xff] }
 0x3ea   : > { %v1690_v33 = vadd.f32 %v1689_v30, %v5937_v56  ;;  %v1691_v34 = vpop.f32.mrb[69].mxu1 }
 0x3eb   : > { %v1692_v38 = vadd.f32 %v1691_v34, %v5940_v58  ;;  %2357 = vmatprep.mubr.f32.mxu0 %v1871_v29  ;;  %v2737_v29 = vld [vmem:[#allocation2 + $0x998] sm:$0xff]  ;;  %4742 = vmatpush1.bf16.msra.mxu1 %v4741_v20 }
 0x3ec   : > { %2358 = vmatmul.mubr.f32.gmra.mrb[130].mxu0 %v1870_v32  ;;  %v1872_v44 = vmax.f32 %v1690_v33, 0.0  ;;  %v4745_v32 = vpack.c.bf16 %v2732_v26, %v2730_v25  ;;  %4744 = vmatprep.subr.bf16.mxu1 %v4743_v24  ;;  %v4747_v36 = vpack.c.bf16 %v2737_v29, %v2735_v28 }
 0x3ed   : > { %v1873_v41 = vmax.f32 %v1692_v38, 0.0  ;;  %v1695_v43 = vpop.f32.mrb[70].mxu1  ;;  %v2736_v38 = vld [vmem:[#allocation2 + $0x990] sm:$0xff] }
 0x3ee   : > { %v1696_v6 = vadd.f32 %v1695_v43, %v5937_v56  ;;  %v1697_v45 = vpop.f32.mrb[71].mxu1 }
 0x3ef   : > { %v1698_v48 = vadd.f32 %v1697_v45, %v5940_v58  ;;  %2363 = vmatprep.mubr.f32.mxu0 %v1873_v41  ;;  %v2741_v41 = vld [vmem:[#allocation2 + $0x9b8] sm:$0xff]  ;;  %4746 = vmatpush1.bf16.msra.mxu1 %v4745_v32 }
 0x3f0   : > { %2364 = vmatmul.mubr.f32.gmra.mrb[132].mxu0 %v1872_v44  ;;  %v1874_v54 = vmax.f32 %v1696_v6, 0.0  ;;  %v4749_v44 = vpack.c.bf16 %v2736_v38, %v2734_v37  ;;  %4748 = vmatprep.subr.bf16.mxu1 %v4747_v36  ;;  %v4751_v8 = vpack.c.bf16 %v2741_v41, %v2739_v40 }
 0x3f1   : > { %v1875_v51 = vmax.f32 %v1698_v48, 0.0  ;;  %v1701_v52 = vpop.f32.mrb[72].mxu1  ;;  %v2740_v48 = vld [vmem:[#allocation2 + $0x9b0] sm:$0xff] }
 0x3f2   : > { %v1702_v55 = vadd.f32 %v1701_v52, %v5937_v56  ;;  %v1703_v57 = vpop.f32.mrb[73].mxu1 }
 0x3f3   : > { %v1704_v1 = vadd.f32 %v1703_v57, %v5940_v58  ;;  %2369 = vmatprep.mubr.f32.mxu0 %v1875_v51  ;;  %v2745_v51 = vld [vmem:[#allocation2 + $0x9d8] sm:$0xff]  ;;  %4750 = vmatpush1.bf16.msra.mxu1 %v4749_v44 }
 0x3f4   : > { %2370 = vmatmul.mubr.f32.gmra.mrb[134].mxu0 %v1874_v54  ;;  %v1876_v9 = vmax.f32 %v1702_v55, 0.0  ;;  %v4753_v54 = vpack.c.bf16 %v2740_v48, %v2738_v47  ;;  %4752 = vmatprep.subr.bf16.mxu1 %v4751_v8  ;;  %v4755_v62 = vpack.c.bf16 %v2745_v51, %v2743_v50 }
 0x3f5   : > { %v1877_v4 = vmax.f32 %v1704_v1, 0.0  ;;  %v1707_v5 = vpop.f32.mrb[74].mxu1  ;;  %v2744_v1 = vld [vmem:[#allocation2 + $0x9d0] sm:$0xff] }
 0x3f6   : > { %v1708_v10 = vadd.f32 %v1707_v5, %v5937_v56  ;;  %v1709_v11 = vpop.f32.mrb[75].mxu1 }
 0x3f7   : > { %v1710_v15 = vadd.f32 %v1709_v11, %v5940_v58  ;;  %2375 = vmatprep.mubr.f32.mxu0 %v1877_v4  ;;  %v2749_v4 = vld [vmem:[#allocation2 + $0x9f8] sm:$0xff]  ;;  %4754 = vmatpush1.bf16.msra.mxu1 %v4753_v54 }
 0x3f8   : > { %2376 = vmatmul.mubr.f32.gmra.mrb[136].mxu0 %v1876_v9  ;;  %v1878_v21 = vmax.f32 %v1708_v10, 0.0  ;;  %v4757_v9 = vpack.c.bf16 %v2744_v1, %v2742_v60  ;;  %4756 = vmatprep.subr.bf16.mxu1 %v4755_v62  ;;  %v4759_v13 = vpack.c.bf16 %v2749_v4, %v2747_v3 }
 0x3f9   : > { %v1879_v18 = vmax.f32 %v1710_v15, 0.0  ;;  %v1713_v19 = vpop.f32.mrb[76].mxu1  ;;  %v2748_v15 = vld [vmem:[#allocation2 + $0x9f0] sm:$0xff] }
 0x3fa   : > { %v1714_v22 = vadd.f32 %v1713_v19, %v5937_v56  ;;  %v1715_v23 = vpop.f32.mrb[77].mxu1  ;;  %v4761_v19 = vpack.c.bf16 %v2748_v15, %v2746_v14 }
 0x3fb   : > { %v1716_v27 = vadd.f32 %v1715_v23, %v5940_v58  ;;  %2381 = vmatprep.mubr.f32.mxu0 %v1879_v18  ;;  %4758 = vmatpush1.bf16.msra.mxu1 %v4757_v9 }
 0x3fc   : > { %2382 = vmatmul.mubr.f32.gmra.mrb[138].mxu0 %v1878_v21  ;;  %v1880_v33 = vmax.f32 %v1714_v22, 0.0  ;;  %4760 = vmatprep.subr.bf16.mxu1 %v4759_v13 }
 0x3fd   : > { %v1881_v30 = vmax.f32 %v1716_v27, 0.0  ;;  %v1719_v31 = vpop.f32.mrb[78].mxu1 }
 0x3fe   : > { %v1720_v34 = vadd.f32 %v1719_v31, %v5937_v56  ;;  %v1721_v35 = vpop.f32.mrb[79].mxu1 }
 0x3ff   : > { %v1722_v39 = vadd.f32 %v1721_v35, %v5940_v58  ;;  %2387 = vmatprep.mubr.f32.mxu0 %v1881_v30  ;;  %4762 = vmatpush1.bf16.msra.mxu1 %v4761_v19 }
 0x400   : > { %2388 = vmatmul.mubr.f32.gmra.mrb[140].mxu0 %v1880_v33  ;;  %v1882_v6 = vmax.f32 %v1720_v34, 0.0 }
 0x401   : > { %v1883_v43 = vmax.f32 %v1722_v39, 0.0  ;;  %v1725_v42 = vpop.f32.mrb[80].mxu1 }
 0x402   : > { %v1726_v45 = vadd.f32 %v1725_v42, %v5937_v56  ;;  %v1727_v46 = vpop.f32.mrb[81].mxu1 }
 0x403   : > { %v1728_v49 = vadd.f32 %v1727_v46, %v5940_v58  ;;  %2393 = vmatprep.mubr.f32.mxu0 %v1883_v43 }
 0x404   : > { %2394 = vmatmul.mubr.f32.gmra.mrb[142].mxu0 %v1882_v6  ;;  %v1884_v55 = vmax.f32 %v1726_v45, 0.0 }
 0x405   : > { %v1885_v52 = vmax.f32 %v1728_v49, 0.0  ;;  %v1731_v53 = vpop.f32.mrb[82].mxu1 }
 0x406   : > { %v1732_v57 = vadd.f32 %v1731_v53, %v5937_v56  ;;  %v1733_v59 = vpop.f32.mrb[83].mxu1 }
 0x407   : > { %v1734_v2 = vadd.f32 %v1733_v59, %v5940_v58  ;;  %2399 = vmatprep.mubr.f32.mxu0 %v1885_v52 }
 0x408   : > { %2400 = vmatmul.mubr.f32.gmra.mrb[144].mxu0 %v1884_v55  ;;  %v1886_v10 = vmax.f32 %v1732_v57, 0.0 }
 0x409   : > { %v1887_v5 = vmax.f32 %v1734_v2, 0.0  ;;  %v1737_v7 = vpop.f32.mrb[84].mxu1 }
 0x40a   : > { %v1738_v11 = vadd.f32 %v1737_v7, %v5937_v56  ;;  %v1739_v12 = vpop.f32.mrb[85].mxu1 }
 0x40b   : > { %v1740_v16 = vadd.f32 %v1739_v12, %v5940_v58  ;;  %2405 = vmatprep.mubr.f32.mxu0 %v1887_v5 }
 0x40c   : > { %2406 = vmatmul.mubr.f32.gmra.mrb[146].mxu0 %v1886_v10  ;;  %v1888_v20 = vmax.f32 %v1738_v11, 0.0 }
 0x40d   : > { %v1889_v17 = vmax.f32 %v1740_v16, 0.0  ;;  %v1743_v18 = vpop.f32.mrb[86].mxu1 }
 0x40e   : > { %v1744_v21 = vadd.f32 %v1743_v18, %v5937_v56  ;;  %v1745_v22 = vpop.f32.mrb[87].mxu1 }
 0x40f   : > { %v1746_v23 = vadd.f32 %v1745_v22, %v5940_v58  ;;  %2411 = vmatprep.mubr.f32.mxu0 %v1889_v17 }
 0x410   : > { %2412 = vmatmul.mubr.f32.gmra.mrb[148].mxu0 %v1888_v20  ;;  %v1890_v26 = vmax.f32 %v1744_v21, 0.0 }
 0x411   : > { %v1891_v24 = vmax.f32 %v1746_v23, 0.0  ;;  %v1749_v25 = vpop.f32.mrb[88].mxu1 }
 0x412   : > { %v1750_v27 = vadd.f32 %v1749_v25, %v5937_v56  ;;  %v1751_v28 = vpop.f32.mrb[89].mxu1 }
 0x413   : > { %v1752_v29 = vadd.f32 %v1751_v28, %v5940_v58  ;;  %2417 = vmatprep.mubr.f32.mxu0 %v1891_v24 }
 0x414   : > { %2418 = vmatmul.mubr.f32.gmra.mrb[150].mxu0 %v1890_v26  ;;  %v1892_v32 = vmax.f32 %v1750_v27, 0.0 }
 0x415   : > { %v1893_v30 = vmax.f32 %v1752_v29, 0.0  ;;  %v1755_v31 = vpop.f32.mrb[90].mxu1 }
 0x416   : > { %v1756_v33 = vadd.f32 %v1755_v31, %v5937_v56  ;;  %v1757_v34 = vpop.f32.mrb[91].mxu1 }
 0x417   : > { %v1758_v35 = vadd.f32 %v1757_v34, %v5940_v58  ;;  %2423 = vmatprep.mubr.f32.mxu0 %v1893_v30 }
 0x418   : > { %2424 = vmatmul.mubr.f32.gmra.mrb[152].mxu0 %v1892_v32  ;;  %v1894_v38 = vmax.f32 %v1756_v33, 0.0 }
 0x419   : > { %v1895_v36 = vmax.f32 %v1758_v35, 0.0  ;;  %v1761_v37 = vpop.f32.mrb[92].mxu1 }
 0x41a   : > { %v1762_v39 = vadd.f32 %v1761_v37, %v5937_v56  ;;  %v1763_v40 = vpop.f32.mrb[93].mxu1 }
 0x41b   : > { %v1764_v41 = vadd.f32 %v1763_v40, %v5940_v58  ;;  %2429 = vmatprep.mubr.f32.mxu0 %v1895_v36 }
 0x41c   : > { %2430 = vmatmul.mubr.f32.gmra.mrb[154].mxu0 %v1894_v38  ;;  %v1896_v44 = vmax.f32 %v1762_v39, 0.0 }
 0x41d   : > { %v1897_v43 = vmax.f32 %v1764_v41, 0.0  ;;  %v1767_v42 = vpop.f32.mrb[94].mxu1 }
 0x41e   : > { %v1768_v6 = vadd.f32 %v1767_v42, %v5937_v56  ;;  %v1769_v45 = vpop.f32.mrb[95].mxu1  ;;  %v3151_v42 = vld [vmem:[#allocation5 + $0x1a8] sm:$0xff] }
 0x41f   : > { %v1770_v46 = vadd.f32 %v1769_v45, %v5940_v58  ;;  %2435 = vmatprep.mubr.f32.mxu0 %v1897_v43 }
 0x420   : > { %2436 = vmatmul.mubr.f32.gmra.mrb[156].mxu0 %v1896_v44  ;;  %v1898_v48 = vmax.f32 %v1768_v6, 0.0  ;;  %v3153_v44 = vld [vmem:[#allocation5 + $0x1b8] sm:$0xff] }
 0x421   : > { %v1899_v8 = vmax.f32 %v1770_v46, 0.0  ;;  %v1773_v47 = vpop.f32.mrb[96].mxu1  ;;  %v4763_v6 = vpack.c.bf16 %v3153_v44, %v3151_v42 }
 0x422   : > { %v1774_v49 = vadd.f32 %v1773_v47, %v5937_v56  ;;  %v1775_v50 = vpop.f32.mrb[97].mxu1 }
 0x423   : > { %v1776_v51 = vadd.f32 %v1775_v50, %v5940_v58  ;;  %2441 = vmatprep.mubr.f32.mxu0 %v1899_v8  ;;  %4764 = vmatprep.subr.bf16.mxu1 %v4763_v6 }
 0x424   : > { %2442 = vmatmul.mubr.f32.gmra.mrb[158].mxu0 %v1898_v48  ;;  %v1900_v54 = vmax.f32 %v1774_v49, 0.0 }
 0x425   : > { %v1901_v52 = vmax.f32 %v1776_v51, 0.0  ;;  %v1779_v53 = vpop.f32.mrb[98].mxu1 }
 0x426   : > { %v1780_v55 = vadd.f32 %v1779_v53, %v5937_v56  ;;  %v1781_v57 = vpop.f32.mrb[99].mxu1 }
 0x427   : > { %v1782_v59 = vadd.f32 %v1781_v57, %v5940_v58  ;;  %2447 = vmatprep.mubr.f32.mxu0 %v1901_v52 }
 0x428   : > { %2448 = vmatmul.mubr.f32.gmra.mrb[160].mxu0 %v1900_v54  ;;  %v1902_v1 = vmax.f32 %v1780_v55, 0.0 }
 0x429   : > { %v1903_v62 = vmax.f32 %v1782_v59, 0.0  ;;  %v1785_v60 = vpop.f32.mrb[100].mxu1 }
 0x42a   : > { %v1786_v2 = vadd.f32 %v1785_v60, %v5937_v56  ;;  %v1787_v3 = vpop.f32.mrb[101].mxu1 }
 0x42b   : > { %v1788_v4 = vadd.f32 %v1787_v3, %v5940_v58  ;;  %2453 = vmatprep.mubr.f32.mxu0 %v1903_v62 }
 0x42c   : > { %2454 = vmatmul.mubr.f32.gmra.mrb[162].mxu0 %v1902_v1  ;;  %v1904_v9 = vmax.f32 %v1786_v2, 0.0 }
 0x42d   : > { %v1905_v5 = vmax.f32 %v1788_v4, 0.0  ;;  %v1791_v7 = vpop.f32.mrb[102].mxu1 }
 0x42e   : > { %v1792_v10 = vadd.f32 %v1791_v7, %v5937_v56  ;;  %v1793_v11 = vpop.f32.mrb[103].mxu1 }
 0x42f   : > { %v1794_v12 = vadd.f32 %v1793_v11, %v5940_v58  ;;  %2459 = vmatprep.mubr.f32.mxu0 %v1905_v5 }
 0x430   : > { %2460 = vmatmul.mubr.f32.gmra.mrb[164].mxu0 %v1904_v9  ;;  %v1906_v15 = vmax.f32 %v1792_v10, 0.0 }
 0x431   : > { %v1907_v13 = vmax.f32 %v1794_v12, 0.0  ;;  %v1797_v14 = vpop.f32.mrb[104].mxu1 }
 0x432   : > { %v1798_v16 = vadd.f32 %v1797_v14, %v5937_v56  ;;  %v1799_v17 = vpop.f32.mrb[105].mxu1 }
 0x433   : > { %v1800_v18 = vadd.f32 %v1799_v17, %v5940_v58  ;;  %2465 = vmatprep.mubr.f32.mxu0 %v1907_v13 }
 0x434   : > { %2466 = vmatmul.mubr.f32.gmra.mrb[166].mxu0 %v1906_v15  ;;  %v1908_v21 = vmax.f32 %v1798_v16, 0.0 }
 0x435   : > { %v1909_v19 = vmax.f32 %v1800_v18, 0.0  ;;  %v1803_v20 = vpop.f32.mrb[106].mxu1 }
 0x436   : > { %v1804_v22 = vadd.f32 %v1803_v20, %v5937_v56  ;;  %v1805_v23 = vpop.f32.mrb[107].mxu1 }
 0x437   : > { %v1806_v24 = vadd.f32 %v1805_v23, %v5940_v58  ;;  %2471 = vmatprep.mubr.f32.mxu0 %v1909_v19 }
 0x438   : > { %2472 = vmatmul.mubr.f32.gmra.mrb[168].mxu0 %v1908_v21  ;;  %v1910_v27 = vmax.f32 %v1804_v22, 0.0 }
 0x439   : > { %v1911_v25 = vmax.f32 %v1806_v24, 0.0  ;;  %v1809_v26 = vpop.f32.mrb[108].mxu1 }
 0x43a   : > { %v1810_v28 = vadd.f32 %v1809_v26, %v5937_v56  ;;  %v1811_v29 = vpop.f32.mrb[109].mxu1 }
 0x43b   : > { %v1812_v30 = vadd.f32 %v1811_v29, %v5940_v58  ;;  %2477 = vmatprep.mubr.f32.mxu0 %v1911_v25 }
 0x43c   : > { %2478 = vmatmul.mubr.f32.gmra.mrb[170].mxu0 %v1910_v27  ;;  %v1912_v33 = vmax.f32 %v1810_v28, 0.0 }
 0x43d   : > { %v1913_v31 = vmax.f32 %v1812_v30, 0.0  ;;  %v1815_v32 = vpop.f32.mrb[110].mxu1 }
 0x43e   : > { %v1816_v34 = vadd.f32 %v1815_v32, %v5937_v56  ;;  %v1817_v35 = vpop.f32.mrb[111].mxu1 }
 0x43f   : > { %v1818_v36 = vadd.f32 %v1817_v35, %v5940_v58  ;;  %2483 = vmatprep.mubr.f32.mxu0 %v1913_v31  ;;  %v2545_v31 = vld [vmem:[#allocation7 + $0x4] ss:$8 sm:$0x3] }
 0x440   : > { %2484 = vmatmul.mubr.f32.gmra.mrb[172].mxu0 %v1912_v33  ;;  %v1914_v39 = vmax.f32 %v1816_v34, 0.0  ;;  %v6007_v32 = vrot.slane %v2545_v31, %v5624_v61  ;;  %v6010_v33 = vrot.slane %v2545_v31, %v5626_v63 }
 0x441   : > { %v1915_v37 = vmax.f32 %v1818_v36, 0.0  ;;  %v1821_v38 = vpop.f32.mrb[112].mxu1  ;;  %v3150_v36 = vld [vmem:[#allocation5 + $0x1a0] sm:$0xff] }
 0x442   : > { %v1822_v40 = vadd.f32 %v1821_v38, %v5937_v56  ;;  %v1823_v41 = vpop.f32.mrb[113].mxu1  ;;  %v3155_v38 = vld [vmem:[#allocation5 + $0x1c8] sm:$0xff] }
 0x443   : > { %v1824_v43 = vadd.f32 %v1823_v41, %v5940_v58  ;;  %2489 = vmatprep.mubr.f32.mxu0 %v1915_v37  ;;  %v3152_v37 = vld [vmem:[#allocation5 + $0x1b0] sm:$0xff] }
 0x444   : > { %2490 = vmatmul.mubr.f32.gmra.mrb[174].mxu0 %v1914_v39  ;;  %v1916_v8 = vmax.f32 %v1822_v40, 0.0  ;;  %v3157_v39 = vld [vmem:[#allocation5 + $0x1d8] sm:$0xff] }
 0x445   : > { %v1917_v45 = vmax.f32 %v1824_v43, 0.0  ;;  %v1827_v46 = vpop.f32.mrb[114].mxu1  ;;  %v4765_v43 = vpack.c.bf16 %v3152_v37, %v3150_v36  ;;  %v3170_v37 = vld [vmem:[#allocation5 + $0x240] sm:$0xff] }
 0x446   : > { %v1828_v47 = vadd.f32 %v1827_v46, %v5937_v56  ;;  %v1829_v48 = vpop.f32.mrb[115].mxu1  ;;  %v3154_v46 = vld [vmem:[#allocation5 + $0x1c0] sm:$0xff] }
 0x447   : > { %v1830_v49 = vadd.f32 %v1829_v48, %v5940_v58  ;;  %2495 = vmatprep.mubr.f32.mxu0 %v1917_v45  ;;  %v4767_v45 = vpack.c.bf16 %v3157_v39, %v3155_v38  ;;  %v3159_v48 = vld [vmem:[#allocation5 + $0x1e8] sm:$0xff] }
 0x448   : > { %2496 = vmatmul.mubr.f32.gmra.mrb[176].mxu0 %v1916_v8  ;;  %v1918_v52 = vmax.f32 %v1828_v47, 0.0  ;;  %v3156_v8 = vld [vmem:[#allocation5 + $0x1d0] sm:$0xff] }
 0x449   : > { %v1919_v50 = vmax.f32 %v1830_v49, 0.0  ;;  %v1833_v51 = vpop.f32.mrb[116].mxu1  ;;  %v3161_v49 = vld [vmem:[#allocation5 + $0x1f8] sm:$0xff] }
 0x44a   : > { %v1834_v53 = vadd.f32 %v1833_v51, %v5937_v56  ;;  %v1835_v54 = vpop.f32.mrb[117].mxu1 }
 0x44b   : > { %v1836_v55 = vadd.f32 %v1835_v54, %v5940_v58  ;;  %2501 = vmatprep.mubr.f32.mxu0 %v1919_v50 }
 0x44c   : > { %2502 = vmatmul.mubr.f32.gmra.mrb[178].mxu0 %v1918_v52  ;;  %v1920_v62 = vmax.f32 %v1834_v53, 0.0  ;;  %v4769_v52 = vpack.c.bf16 %v3156_v8, %v3154_v46  ;;  %v3086_v46 = vld [vmem:[#allocation2 + $0xa08] sm:$0xff]  ;;  %v3088_v8 = vld [vmem:[#allocation2 + $0xa18] sm:$0xff] }
 0x44d   : > { %v1921_v57 = vmax.f32 %v1836_v55, 0.0  ;;  %v1839_v59 = vpop.f32.mrb[118].mxu1 }
 0x44e   : > { %v1840_v60 = vadd.f32 %v1839_v59, %v5937_v56  ;;  %v1841_v1 = vpop.f32.mrb[119].mxu1  ;;  %v3158_v59 = vld [vmem:[#allocation5 + $0x1e0] sm:$0xff] }
 0x44f   : > { %v1842_v2 = vadd.f32 %v1841_v1, %v5940_v58  ;;  %2507 = vmatprep.mubr.f32.mxu0 %v1921_v57  ;;  %v4771_v57 = vpack.c.bf16 %v3161_v49, %v3159_v48  ;;  %v3163_v1 = vld [vmem:[#allocation5 + $0x208] sm:$0xff] }
 0x450   : > { %2508 = vmatmul.mubr.f32.gmra.mrb[180].mxu0 %v1920_v62  ;;  %v1922_v5 = vmax.f32 %v1840_v60, 0.0  ;;  %v3160_v62 = vld [vmem:[#allocation5 + $0x1f0] sm:$0xff] }
 0x451   : > { %v1923_v3 = vmax.f32 %v1842_v2, 0.0  ;;  %v1845_v4 = vpop.f32.mrb[120].mxu1  ;;  %v3165_v2 = vld [vmem:[#allocation5 + $0x218] sm:$0xff] }
 0x452   : > { %v1846_v7 = vadd.f32 %v1845_v4, %v5937_v56  ;;  %v1847_v9 = vpop.f32.mrb[121].mxu1 }
 0x453   : > { %v1848_v10 = vadd.f32 %v1847_v9, %v5940_v58  ;;  %2513 = vmatprep.mubr.f32.mxu0 %v1923_v3 }
 0x454   : > { %2514 = vmatmul.mubr.f32.gmra.mrb[182].mxu0 %v1922_v5  ;;  %v1924_v13 = vmax.f32 %v1846_v7, 0.0  ;;  %v4773_v5 = vpack.c.bf16 %v3160_v62, %v3158_v59 }
 0x455   : > { %v1925_v11 = vmax.f32 %v1848_v10, 0.0  ;;  %v1851_v12 = vpop.f32.mrb[122].mxu1 }
 0x456   : > { %v1852_v14 = vadd.f32 %v1851_v12, %v5937_v56  ;;  %v1853_v15 = vpop.f32.mrb[123].mxu1  ;;  %v3162_v12 = vld [vmem:[#allocation5 + $0x200] sm:$0xff] }
 0x457   : > { %v1854_v16 = vadd.f32 %v1853_v15, %v5940_v58  ;;  %2519 = vmatprep.mubr.f32.mxu0 %v1925_v11  ;;  %v4775_v11 = vpack.c.bf16 %v3165_v2, %v3163_v1  ;;  %v3167_v15 = vld [vmem:[#allocation5 + $0x228] sm:$0xff] }
 0x458   : > { %2520 = vmatmul.mubr.f32.gmra.mrb[184].mxu0 %v1924_v13  ;;  %v1926_v19 = vmax.f32 %v1852_v14, 0.0  ;;  %v3164_v13 = vld [vmem:[#allocation5 + $0x210] sm:$0xff] }
 0x459   : > { %v1927_v17 = vmax.f32 %v1854_v16, 0.0  ;;  %v1857_v18 = vpop.f32.mrb[124].mxu1  ;;  %v3169_v16 = vld [vmem:[#allocation5 + $0x238] sm:$0xff] }
 0x45a   : > { %v1858_v20 = vadd.f32 %v1857_v18, %v5937_v56  ;;  %v1859_v21 = vpop.f32.mrb[125].mxu1 }
 0x45b   : > { %v1860_v22 = vadd.f32 %v1859_v21, %v5940_v58  ;;  %2525 = vmatprep.mubr.f32.mxu0 %v1927_v17 }
 0x45c   : > { %2526 = vmatmul.mubr.f32.gmra.mrb[186].mxu0 %v1926_v19  ;;  %v1928_v25 = vmax.f32 %v1858_v20, 0.0  ;;  %v4777_v19 = vpack.c.bf16 %v3164_v13, %v3162_v12 }
 0x45d   : > { %v1929_v23 = vmax.f32 %v1860_v22, 0.0  ;;  %v1863_v24 = vpop.f32.mrb[126].mxu1 }
 0x45e   : > { %v1864_v26 = vadd.f32 %v1863_v24, %v5937_v56  ;;  %v1865_v27 = vpop.f32.mrb[127].mxu1  ;;  %v3166_v24 = vld [vmem:[#allocation5 + $0x220] sm:$0xff] }
 0x45f   : > { %v1866_v28 = vadd.f32 %v1865_v27, %v5940_v58  ;;  %2531 = vmatprep.mubr.f32.mxu0 %v1929_v23  ;;  %v4779_v23 = vpack.c.bf16 %v3169_v16, %v3167_v15  ;;  %v3171_v27 = vld [vmem:[#allocation5 + $0x248] sm:$0xff] }
 0x460   : > { %2532 = vmatmul.mubr.f32.gmra.mrb[188].mxu0 %v1928_v25  ;;  %v1930_v30 = vmax.f32 %v1864_v26, 0.0  ;;  %v3168_v25 = vld [vmem:[#allocation5 + $0x230] sm:$0xff] }
 0x461   : > { %v1931_v29 = vmax.f32 %v1866_v28, 0.0  ;;  %v3173_v28 = vld [vmem:[#allocation5 + $0x258] sm:$0xff]  ;;  %v4781_v31 = vpack.c.bf16 %v3168_v25, %v3166_v24 }
 0x462   : > { %v4783_v36 = vpack.c.bf16 %v3173_v28, %v3171_v27 }
 0x463   : > { %2537 = vmatprep.mubr.f32.mxu0 %v1931_v29 }
 0x464   : > { %2538 = vmatmul.mubr.f32.gmra.mrb[190].mxu0 %v1930_v30 }
 0x4bb   : > { %v2353_v34 = vpop.f32.mrb[128].mxu0 }
 0x4bc   : > { %v2557_v35 = vadd.f32 %v6007_v32, %v2353_v34  ;;  %v2355_v56 = vpop.f32.mrb[129].mxu0 }
 0x4bd   : > { %v2558_v58 = vadd.f32 %v6010_v33, %v2355_v56 }
 0x4be   : > { %v2621_v42 = vmax.f32 %v2557_v35, 0.0 }
 0x4bf   : > { %v2622_v40 = vmax.f32 %v2558_v58, 0.0  ;;  %v2359_v41 = vpop.f32.mrb[130].mxu0  ;;  %v3172_v58 = vld [vmem:[#allocation5 + $0x250] sm:$0xff] }
 0x4c0   : > { %v2559_v44 = vadd.f32 %v6007_v32, %v2359_v41  ;;  %v2361_v6 = vpop.f32.mrb[131].mxu0  ;;  %v4785_v41 = vpack.c.bf16 %v3172_v58, %v3170_v37 }
 0x4c1   : > { %v2560_v47 = vadd.f32 %v6010_v33, %v2361_v6  ;;  %2827 = vmatprep.mubr.f32.mxu1 %v2622_v40 }
 0x4c2   : > { %2828 = vmatmul.mubr.f32.vlgmr.msra.gmra.mrb[128].mxu1 %v2621_v42  ;;  %v2623_v53 = vmax.f32 %v2559_v44, 0.0 }
 0x4c3   : > { %v2624_v50 = vmax.f32 %v2560_v47, 0.0  ;;  %4766 = vmatpush1.bf16.msra.mxu1 %v4765_v43  ;;  %v2365_v51 = vpop.f32.mrb[132].mxu0 }
 0x4c4   : > { %v2561_v54 = vadd.f32 %v6007_v32, %v2365_v51  ;;  %v2367_v55 = vpop.f32.mrb[133].mxu0  ;;  %4768 = vmatprep.subr.bf16.mxu1 %v4767_v45  ;;  %v3175_v45 = vld [vmem:[#allocation5 + $0x268] sm:$0x7] }
 0x4c5   : > { %v2562_v60 = vadd.f32 %v6010_v33, %v2367_v55  ;;  %2833 = vmatprep.mubr.f32.mxu1 %v2624_v50 }
 0x4c6   : > { %2834 = vmatmul.mubr.f32.gmra.mrb[130].mxu1 %v2623_v53  ;;  %v2625_v7 = vmax.f32 %v2561_v54, 0.0  ;;  %v4787_v53 = vpack.c.bf16 %v3088_v8, %v3086_v46 }
 0x4c7   : > { %v2626_v3 = vmax.f32 %v2562_v60, 0.0  ;;  %v2371_v4 = vpop.f32.mrb[134].mxu0  ;;  %4770 = vmatpush1.bf16.msra.mxu1 %v4769_v52  ;;  %v3174_v52 = vld [vmem:[#allocation5 + $0x260] sm:$0x7] }
 0x4c8   : > { %v2563_v9 = vadd.f32 %v6007_v32, %v2371_v4  ;;  %v2373_v10 = vpop.f32.mrb[135].mxu0  ;;  %4772 = vmatprep.subr.bf16.mxu1 %v4771_v57 }
 0x4c9   : > { %v2564_v14 = vadd.f32 %v6010_v33, %v2373_v10  ;;  %2839 = vmatprep.mubr.f32.mxu1 %v2626_v3 }
 0x4ca   : > { %2840 = vmatmul.mubr.f32.gmra.mrb[132].mxu1 %v2625_v7  ;;  %v2627_v20 = vmax.f32 %v2563_v9, 0.0 }
 0x4cb   : > { %v2628_v17 = vmax.f32 %v2564_v14, 0.0  ;;  %v2377_v18 = vpop.f32.mrb[136].mxu0  ;;  %4774 = vmatpush1.bf16.msra.mxu1 %v4773_v5 }
 0x4cc   : > { %v2565_v21 = vadd.f32 %v6007_v32, %v2377_v18  ;;  %v2379_v22 = vpop.f32.mrb[137].mxu0  ;;  %4776 = vmatprep.subr.bf16.mxu1 %v4775_v11 }
 0x4cd   : > { %v2566_v26 = vadd.f32 %v6010_v33, %v2379_v22  ;;  %2845 = vmatprep.mubr.f32.mxu1 %v2628_v17 }
 0x4ce   : > { %2846 = vmatmul.mubr.f32.gmra.mrb[134].mxu1 %v2627_v20  ;;  %v2629_v34 = vmax.f32 %v2565_v21, 0.0 }
 0x4cf   : > { %v2630_v29 = vmax.f32 %v2566_v26, 0.0  ;;  %v2383_v30 = vpop.f32.mrb[138].mxu0  ;;  %4778 = vmatpush1.bf16.msra.mxu1 %v4777_v19 }
 0x4d0   : > { %v2567_v35 = vadd.f32 %v6007_v32, %v2383_v30  ;;  %v2385_v56 = vpop.f32.mrb[139].mxu0  ;;  %4780 = vmatprep.subr.bf16.mxu1 %v4779_v23 }
 0x4d1   : > { %v2568_v38 = vadd.f32 %v6010_v33, %v2385_v56  ;;  %2851 = vmatprep.mubr.f32.mxu1 %v2630_v29 }
 0x4d2   : > { %2852 = vmatmul.mubr.f32.gmra.mrb[136].mxu1 %v2629_v34  ;;  %v2631_v43 = vmax.f32 %v2567_v35, 0.0 }
 0x4d3   : > { %v2632_v39 = vmax.f32 %v2568_v38, 0.0  ;;  %v2389_v40 = vpop.f32.mrb[140].mxu0  ;;  %4782 = vmatpush1.bf16.msra.mxu1 %v4781_v31 }
 0x4d4   : > { %v2569_v42 = vadd.f32 %v6007_v32, %v2389_v40  ;;  %v2391_v44 = vpop.f32.mrb[141].mxu0  ;;  %4784 = vmatprep.subr.bf16.mxu1 %v4783_v36 }
 0x4d5   : > { %v2570_v6 = vadd.f32 %v6010_v33, %v2391_v44  ;;  %2857 = vmatprep.mubr.f32.mxu1 %v2632_v39 }
 0x4d6   : > { %2858 = vmatmul.mubr.f32.gmra.mrb[138].mxu1 %v2631_v43  ;;  %v2633_v49 = vmax.f32 %v2569_v42, 0.0 }
 0x4d7   : > { %v2634_v47 = vmax.f32 %v2570_v6, 0.0  ;;  %v2395_v48 = vpop.f32.mrb[142].mxu0  ;;  %4786 = vmatpush1.bf16.msra.mxu1 %v4785_v41 }
 0x4d8   : > { %v2571_v50 = vadd.f32 %v6007_v32, %v2395_v48  ;;  %v2397_v51 = vpop.f32.mrb[143].mxu0  ;;  %4355 = vmatprep.subr.msk.mxu1 %vm408_vm0, %v3175_v45 }
 0x4d9   : > { %v2572_v54 = vadd.f32 %v6010_v33, %v2397_v51  ;;  %2863 = vmatprep.mubr.f32.mxu1 %v2634_v47 }
 0x4da   : > { %2864 = vmatmul.mubr.f32.gmra.mrb[140].mxu1 %v2633_v49  ;;  %v2635_v59 = vmax.f32 %v2571_v50, 0.0 }
 0x4db   : > { %v2636_v55 = vmax.f32 %v2572_v54, 0.0  ;;  %v2401_v57 = vpop.f32.mrb[144].mxu0  ;;  %4356 = vmatpush1.msk.msra.mxu1 %vm408_vm0, %v3174_v52 }
 0x4dc   : > { %v2573_v62 = vadd.f32 %v6007_v32, %v2401_v57  ;;  %v2403_v60 = vpop.f32.mrb[145].mxu0  ;;  %4788 = vmatprep.subr.bf16.mxu1 %v4787_v53 }
 0x4dd   : > { %v2574_v1 = vadd.f32 %v6010_v33, %v2403_v60  ;;  %2869 = vmatprep.mubr.f32.mxu1 %v2636_v55 }
 0x4de   : > { %2870 = vmatmul.mubr.f32.gmra.mrb[142].mxu1 %v2635_v59  ;;  %v2637_v4 = vmax.f32 %v2573_v62, 0.0 }
 0x4df   : > { %v2638_v2 = vmax.f32 %v2574_v1, 0.0  ;;  %v2407_v3 = vpop.f32.mrb[146].mxu0 }
 0x4e0   : > { %v2575_v5 = vadd.f32 %v6007_v32, %v2407_v3  ;;  %v2409_v7 = vpop.f32.mrb[147].mxu0 }
 0x4e1   : > { %v2576_v9 = vadd.f32 %v6010_v33, %v2409_v7  ;;  %2875 = vmatprep.mubr.f32.mxu1 %v2638_v2 }
 0x4e2   : > { %2876 = vmatmul.mubr.f32.gmra.mrb[144].mxu1 %v2637_v4  ;;  %v2639_v12 = vmax.f32 %v2575_v5, 0.0 }
 0x4e3   : > { %v2640_v10 = vmax.f32 %v2576_v9, 0.0  ;;  %v2413_v11 = vpop.f32.mrb[148].mxu0 }
 0x4e4   : > { %v2577_v13 = vadd.f32 %v6007_v32, %v2413_v11  ;;  %v2415_v14 = vpop.f32.mrb[149].mxu0 }
 0x4e5   : > { %v2578_v15 = vadd.f32 %v6010_v33, %v2415_v14  ;;  %2881 = vmatprep.mubr.f32.mxu1 %v2640_v10 }
 0x4e6   : > { %2882 = vmatmul.mubr.f32.gmra.mrb[146].mxu1 %v2639_v12  ;;  %v2641_v18 = vmax.f32 %v2577_v13, 0.0 }
 0x4e7   : > { %v2642_v16 = vmax.f32 %v2578_v15, 0.0  ;;  %v2419_v17 = vpop.f32.mrb[150].mxu0 }
 0x4e8   : > { %v2579_v19 = vadd.f32 %v6007_v32, %v2419_v17  ;;  %v2421_v20 = vpop.f32.mrb[151].mxu0 }
 0x4e9   : > { %v2580_v21 = vadd.f32 %v6010_v33, %v2421_v20  ;;  %2887 = vmatprep.mubr.f32.mxu1 %v2642_v16 }
 0x4ea   : > { %2888 = vmatmul.mubr.f32.gmra.mrb[148].mxu1 %v2641_v18  ;;  %v2643_v24 = vmax.f32 %v2579_v19, 0.0 }
 0x4eb   : > { %v2644_v22 = vmax.f32 %v2580_v21, 0.0  ;;  %v2425_v23 = vpop.f32.mrb[152].mxu0 }
 0x4ec   : > { %v2581_v25 = vadd.f32 %v6007_v32, %v2425_v23  ;;  %v2427_v26 = vpop.f32.mrb[153].mxu0 }
 0x4ed   : > { %v2582_v27 = vadd.f32 %v6010_v33, %v2427_v26  ;;  %2893 = vmatprep.mubr.f32.mxu1 %v2644_v22 }
 0x4ee   : > { %2894 = vmatmul.mubr.f32.gmra.mrb[150].mxu1 %v2643_v24  ;;  %v2645_v30 = vmax.f32 %v2581_v25, 0.0 }
 0x4ef   : > { %v2646_v28 = vmax.f32 %v2582_v27, 0.0  ;;  %v2431_v29 = vpop.f32.mrb[154].mxu0 }
 0x4f0   : > { %v2583_v31 = vadd.f32 %v6007_v32, %v2431_v29  ;;  %v2433_v34 = vpop.f32.mrb[155].mxu0 }
 0x4f1   : > { %v2584_v35 = vadd.f32 %v6010_v33, %v2433_v34  ;;  %2899 = vmatprep.mubr.f32.mxu1 %v2646_v28 }
 0x4f2   : > { %2900 = vmatmul.mubr.f32.gmra.mrb[152].mxu1 %v2645_v30  ;;  %v2647_v37 = vmax.f32 %v2583_v31, 0.0 }
 0x4f3   : > { %v2648_v56 = vmax.f32 %v2584_v35, 0.0  ;;  %v2437_v36 = vpop.f32.mrb[156].mxu0 }
 0x4f4   : > { %v2585_v58 = vadd.f32 %v6007_v32, %v2437_v36  ;;  %v2439_v38 = vpop.f32.mrb[157].mxu0 }
 0x4f5   : > { %v2586_v39 = vadd.f32 %v6010_v33, %v2439_v38  ;;  %2905 = vmatprep.mubr.f32.mxu1 %v2648_v56 }
 0x4f6   : > { %2906 = vmatmul.mubr.f32.gmra.mrb[154].mxu1 %v2647_v37  ;;  %v2649_v43 = vmax.f32 %v2585_v58, 0.0 }
 0x4f7   : > { %v2650_v40 = vmax.f32 %v2586_v39, 0.0  ;;  %v2443_v41 = vpop.f32.mrb[158].mxu0 }
 0x4f8   : > { %v2587_v42 = vadd.f32 %v6007_v32, %v2443_v41  ;;  %v2445_v44 = vpop.f32.mrb[159].mxu0 }
 0x4f9   : > { %v2588_v6 = vadd.f32 %v6010_v33, %v2445_v44  ;;  %2911 = vmatprep.mubr.f32.mxu1 %v2650_v40 }
 0x4fa   : > { %2912 = vmatmul.mubr.f32.gmra.mrb[156].mxu1 %v2649_v43  ;;  %v2651_v8 = vmax.f32 %v2587_v42, 0.0 }
 0x4fb   : > { %v2652_v45 = vmax.f32 %v2588_v6, 0.0  ;;  %v2449_v46 = vpop.f32.mrb[160].mxu0 }
 0x4fc   : > { %v2589_v47 = vadd.f32 %v6007_v32, %v2449_v46  ;;  %v2451_v48 = vpop.f32.mrb[161].mxu0 }
 0x4fd   : > { %v2590_v49 = vadd.f32 %v6010_v33, %v2451_v48  ;;  %2917 = vmatprep.mubr.f32.mxu1 %v2652_v45 }
 0x4fe   : > { %2918 = vmatmul.mubr.f32.gmra.mrb[158].mxu1 %v2651_v8  ;;  %v2653_v52 = vmax.f32 %v2589_v47, 0.0 }
 0x4ff   : > { %v2654_v50 = vmax.f32 %v2590_v49, 0.0  ;;  %v2455_v51 = vpop.f32.mrb[162].mxu0 }
 0x500   : > { %v2591_v53 = vadd.f32 %v6007_v32, %v2455_v51  ;;  %v2457_v54 = vpop.f32.mrb[163].mxu0 }
 0x501   : > { %v2592_v55 = vadd.f32 %v6010_v33, %v2457_v54  ;;  %2923 = vmatprep.mubr.f32.mxu1 %v2654_v50 }
 0x502   : > { %2924 = vmatmul.mubr.f32.gmra.mrb[160].mxu1 %v2653_v52  ;;  %v2655_v62 = vmax.f32 %v2591_v53, 0.0 }
 0x503   : > { %v2656_v57 = vmax.f32 %v2592_v55, 0.0  ;;  %v2461_v59 = vpop.f32.mrb[164].mxu0 }
 0x504   : > { %v2593_v60 = vadd.f32 %v6007_v32, %v2461_v59  ;;  %v2463_v1 = vpop.f32.mrb[165].mxu0 }
 0x505   : > { %v2594_v2 = vadd.f32 %v6010_v33, %v2463_v1  ;;  %2929 = vmatprep.mubr.f32.mxu1 %v2656_v57 }
 0x506   : > { %2930 = vmatmul.mubr.f32.gmra.mrb[162].mxu1 %v2655_v62  ;;  %v2657_v5 = vmax.f32 %v2593_v60, 0.0 }
 0x507   : > { %v2658_v3 = vmax.f32 %v2594_v2, 0.0  ;;  %v2467_v4 = vpop.f32.mrb[166].mxu0 }
 0x508   : > { %v2595_v7 = vadd.f32 %v6007_v32, %v2467_v4  ;;  %v2469_v9 = vpop.f32.mrb[167].mxu0 }
 0x509   : > { %v2596_v10 = vadd.f32 %v6010_v33, %v2469_v9  ;;  %2935 = vmatprep.mubr.f32.mxu1 %v2658_v3 }
 0x50a   : > { %2936 = vmatmul.mubr.f32.gmra.mrb[164].mxu1 %v2657_v5  ;;  %v2659_v13 = vmax.f32 %v2595_v7, 0.0 }
 0x50b   : > { %v2660_v11 = vmax.f32 %v2596_v10, 0.0  ;;  %v2473_v12 = vpop.f32.mrb[168].mxu0 }
 0x50c   : > { %v2597_v14 = vadd.f32 %v6007_v32, %v2473_v12  ;;  %v2475_v15 = vpop.f32.mrb[169].mxu0 }
 0x50d   : > { %v2598_v16 = vadd.f32 %v6010_v33, %v2475_v15  ;;  %2941 = vmatprep.mubr.f32.mxu1 %v2660_v11 }
 0x50e   : > { %2942 = vmatmul.mubr.f32.gmra.mrb[166].mxu1 %v2659_v13  ;;  %v2661_v19 = vmax.f32 %v2597_v14, 0.0 }
 0x50f   : > { %v2662_v17 = vmax.f32 %v2598_v16, 0.0  ;;  %v2479_v18 = vpop.f32.mrb[170].mxu0 }
 0x510   : > { %v2599_v20 = vadd.f32 %v6007_v32, %v2479_v18  ;;  %v2481_v21 = vpop.f32.mrb[171].mxu0 }
 0x511   : > { %v2600_v22 = vadd.f32 %v6010_v33, %v2481_v21  ;;  %2947 = vmatprep.mubr.f32.mxu1 %v2662_v17 }
 0x512   : > { %2948 = vmatmul.mubr.f32.gmra.mrb[168].mxu1 %v2661_v19  ;;  %v2663_v25 = vmax.f32 %v2599_v20, 0.0 }
 0x513   : > { %v2664_v23 = vmax.f32 %v2600_v22, 0.0  ;;  %v2485_v24 = vpop.f32.mrb[172].mxu0 }
 0x514   : > { %v2601_v26 = vadd.f32 %v6007_v32, %v2485_v24  ;;  %v2487_v27 = vpop.f32.mrb[173].mxu0 }
 0x515   : > { %v2602_v28 = vadd.f32 %v6010_v33, %v2487_v27  ;;  %2953 = vmatprep.mubr.f32.mxu1 %v2664_v23  ;;  %v3087_v27 = vld [vmem:[#allocation2 + $0xa10] sm:$0xff] }
 0x516   : > { %2954 = vmatmul.mubr.f32.gmra.mrb[170].mxu1 %v2663_v25  ;;  %v2665_v31 = vmax.f32 %v2601_v26, 0.0  ;;  %v3085_v26 = vld [vmem:[#allocation2 + $0xa00] sm:$0xff] }
 0x517   : > { %v2666_v29 = vmax.f32 %v2602_v28, 0.0  ;;  %v2491_v30 = vpop.f32.mrb[174].mxu0  ;;  %v3090_v28 = vld [vmem:[#allocation2 + $0xa28] sm:$0xff] }
 0x518   : > { %v2603_v34 = vadd.f32 %v6007_v32, %v2491_v30  ;;  %v2493_v35 = vpop.f32.mrb[175].mxu0  ;;  %v4789_v30 = vpack.c.bf16 %v3087_v27, %v3085_v26  ;;  %v3121_v27 = vld [vmem:[#allocation2 + $0xb20] sm:$0xff] }
 0x519   : > { %v2604_v56 = vadd.f32 %v6010_v33, %v2493_v35  ;;  %2959 = vmatprep.mubr.f32.mxu1 %v2666_v29  ;;  %v3092_v29 = vld [vmem:[#allocation2 + $0xa38] sm:$0xff]  ;;  %v3094_v35 = vld [vmem:[#allocation2 + $0xa48] sm:$0xff] }
 0x51a   : > { %2960 = vmatmul.mubr.f32.gmra.mrb[172].mxu1 %v2665_v31  ;;  %v2667_v58 = vmax.f32 %v2603_v34, 0.0  ;;  %v4791_v31 = vpack.c.bf16 %v3092_v29, %v3090_v28  ;;  %v3091_v34 = vld [vmem:[#allocation2 + $0xa30] sm:$0xff]  ;;  %v3126_v29 = vld [vmem:[#allocation2 + $0xb48] sm:$0xff] }
 0x51b   : > { %v2668_v36 = vmax.f32 %v2604_v56, 0.0  ;;  %v2497_v37 = vpop.f32.mrb[176].mxu0  ;;  %v5150_v56 = vld [vmem:[%s5525_s5] sm:$0xff]  ;;  %v3123_v28 = vld [vmem:[#allocation2 + $0xb30] sm:$0xff] }
 0x51c   : > { %v2605_v38 = vadd.f32 %v6007_v32, %v2497_v37  ;;  %v2499_v39 = vpop.f32.mrb[177].mxu0 }
 0x51d   : > { %v2606_v40 = vadd.f32 %v6010_v33, %v2499_v39  ;;  %2965 = vmatprep.mubr.f32.mxu1 %v2668_v36  ;;  %v3098_v39 = vld [vmem:[#allocation2 + $0xa68] sm:$0xff] }
 0x51e   : > { %2966 = vmatmul.mubr.f32.gmra.mrb[174].mxu1 %v2667_v58  ;;  %v2669_v42 = vmax.f32 %v2605_v38, 0.0  ;;  %v3093_v58 = vld [vmem:[#allocation2 + $0xa40] sm:$0xff]  ;;  %v3095_v38 = vld [vmem:[#allocation2 + $0xa50] sm:$0xff] }
 0x51f   : > { %v2670_v41 = vmax.f32 %v2606_v40, 0.0  ;;  %v2503_v43 = vpop.f32.mrb[178].mxu0  ;;  %v3100_v40 = vld [vmem:[#allocation2 + $0xa78] sm:$0xff] }
 0x520   : > { %v2607_v44 = vadd.f32 %v6007_v32, %v2503_v43  ;;  %v2505_v6 = vpop.f32.mrb[179].mxu0  ;;  %v4797_v43 = vpack.c.bf16 %v3095_v38, %v3093_v58 }
 0x521   : > { %v2608_v45 = vadd.f32 %v6010_v33, %v2505_v6  ;;  %2971 = vmatprep.mubr.f32.mxu1 %v2670_v41  ;;  %v5151_v41 = vld [vmem:[%s5525_s5 + $0x8] sm:$0xff]  ;;  %v3099_v6 = vld [vmem:[#allocation2 + $0xa70] sm:$0xff] }
 0x522   : > { %2972 = vmatmul.mubr.f32.gmra.mrb[176].mxu1 %v2669_v42  ;;  %v2671_v47 = vmax.f32 %v2607_v44, 0.0  ;;  %v4799_v42 = vpack.c.bf16 %v3100_v40, %v3098_v39  ;;  %v3097_v44 = vld [vmem:[#allocation2 + $0xa60] sm:$0xff]  ;;  %v3131_v40 = vld [vmem:[#allocation2 + $0xb70] sm:$0xff] }
 0x523   : > { %v2672_v46 = vmax.f32 %v2608_v45, 0.0  ;;  %v2509_v8 = vpop.f32.mrb[180].mxu0  ;;  %v3102_v45 = vld [vmem:[#allocation2 + $0xa88] sm:$0xff]  ;;  %v3129_v39 = vld [vmem:[#allocation2 + $0xb60] sm:$0xff] }
 0x524   : > { %v2609_v48 = vadd.f32 %v6007_v32, %v2509_v8  ;;  %v2511_v49 = vpop.f32.mrb[181].mxu0  ;;  %v5152_v8 = vld [vmem:[%s5525_s5 + $0x10] sm:$0xff] }
 0x525   : > { %v2610_v50 = vadd.f32 %v6010_v33, %v2511_v49  ;;  %2977 = vmatprep.mubr.f32.mxu1 %v2672_v46  ;;  %v3104_v46 = vld [vmem:[#allocation2 + $0xa98] sm:$0xff]  ;;  %v3101_v49 = vld [vmem:[#allocation2 + $0xa80] sm:$0xff] }
 0x526   : > { %2978 = vmatmul.mubr.f32.gmra.mrb[178].mxu1 %v2671_v47  ;;  %v2673_v53 = vmax.f32 %v2609_v48, 0.0  ;;  %v4801_v47 = vpack.c.bf16 %v3099_v6, %v3097_v44  ;;  %v4803_v48 = vpack.c.bf16 %v3104_v46, %v3102_v45  ;;  %v4833_v44 = vpack.c.bf16 %v3131_v40, %v3129_v39  ;;  %v3133_v45 = vld [vmem:[#allocation2 + $0xb80] sm:$0xff]  ;;  %v3135_v46 = vld [vmem:[#allocation2 + $0xb90] sm:$0xff] }
 0x527   : > { %v2674_v51 = vmax.f32 %v2610_v50, 0.0  ;;  %v2515_v52 = vpop.f32.mrb[182].mxu0  ;;  %v3103_v50 = vld [vmem:[#allocation2 + $0xa90] sm:$0xff] }
 0x528   : > { %v2611_v54 = vadd.f32 %v6007_v32, %v2515_v52  ;;  %v2517_v55 = vpop.f32.mrb[183].mxu0  ;;  %v3108_v52 = vld [vmem:[#allocation2 + $0xab8] sm:$0xff] }
 0x529   : > { %v2612_v57 = vadd.f32 %v6010_v33, %v2517_v55  ;;  %2983 = vmatprep.mubr.f32.mxu1 %v2674_v51  ;;  %v3106_v51 = vld [vmem:[#allocation2 + $0xaa8] sm:$0xff] }
 0x52a   : > { %2984 = vmatmul.mubr.f32.gmra.mrb[180].mxu1 %v2673_v53  ;;  %v2675_v60 = vmax.f32 %v2611_v54, 0.0  ;;  %v5153_v53 = vld [vmem:[%s5525_s5 + $0x18] sm:$0xff]  ;;  %v4805_v54 = vpack.c.bf16 %v3103_v50, %v3101_v49  ;;  %v4807_v55 = vpack.c.bf16 %v3108_v52, %v3106_v51  ;;  %v4837_v49 = vpack.c.bf16 %v3135_v46, %v3133_v45  ;;  %v3137_v51 = vld [vmem:[#allocation2 + $0xba0] sm:$0xff]  ;;  %v3139_v52 = vld [vmem:[#allocation2 + $0xbb0] sm:$0xff] }
 0x52b   : > { %v2676_v59 = vmax.f32 %v2612_v57, 0.0  ;;  %v2521_v62 = vpop.f32.mrb[184].mxu0  ;;  %v3105_v57 = vld [vmem:[#allocation2 + $0xaa0] sm:$0xff]  ;;  %v3847_v45 = vld [vmem:[#allocation2 + $0xc48] sm:$0xff]  ;;  %v3849_v46 = vld [vmem:[#allocation2 + $0xc58] sm:$0xff] }
 0x52c   : > { %v2613_v1 = vadd.f32 %v6007_v32, %v2521_v62  ;;  %v2523_v2 = vpop.f32.mrb[185].mxu0  ;;  %v3110_v62 = vld [vmem:[#allocation2 + $0xac8] sm:$0xff] }
 0x52d   : > { %v2614_v3 = vadd.f32 %v6010_v33, %v2523_v2  ;;  %2989 = vmatprep.mubr.f32.mxu1 %v2676_v59  ;;  %v3107_v59 = vld [vmem:[#allocation2 + $0xab0] sm:$0xff] }
 0x52e   : > { %2990 = vmatmul.mubr.f32.gmra.mrb[182].mxu1 %v2675_v60  ;;  %v2677_v7 = vmax.f32 %v2613_v1, 0.0  ;;  %v3112_v60 = vld [vmem:[#allocation2 + $0xad8] sm:$0xff]  ;;  %v5154_v1 = vld [vmem:[%s5525_s5 + $0x20] sm:$0xff]  ;;  %v4809_v2 = vpack.c.bf16 %v3107_v59, %v3105_v57  ;;  %v4841_v57 = vpack.c.bf16 %v3139_v52, %v3137_v51 }
 0x52f   : > { %v2678_v4 = vmax.f32 %v2614_v3, 0.0  ;;  %v2527_v5 = vpop.f32.mrb[186].mxu0  ;;  %v4811_v3 = vpack.c.bf16 %v3112_v60, %v3110_v62  ;;  %v3141_v62 = vld [vmem:[#allocation2 + $0xbc0] sm:$0xff]  ;;  %v3143_v60 = vld [vmem:[#allocation2 + $0xbd0] sm:$0xff]  ;;  %v5177_v52 = vld [vmem:[%s5525_s5 + $0xd8] sm:$0xff] }
 0x530   : > { %v2615_v9 = vadd.f32 %v6007_v32, %v2527_v5  ;;  %v2529_v10 = vpop.f32.mrb[187].mxu0  ;;  %v3111_v5 = vld [vmem:[#allocation2 + $0xad0] sm:$0xff] }
 0x531   : > { %v2616_v11 = vadd.f32 %v6010_v33, %v2529_v10  ;;  %2995 = vmatprep.mubr.f32.mxu1 %v2678_v4  ;;  %v3109_v4 = vld [vmem:[#allocation2 + $0xac0] sm:$0xff]  ;;  %v5155_v10 = vld [vmem:[%s5525_s5 + $0x28] sm:$0xff] }
 0x532   : > { %2996 = vmatmul.mubr.f32.gmra.mrb[184].mxu1 %v2677_v7  ;;  %v2679_v14 = vmax.f32 %v2615_v9, 0.0  ;;  %v3114_v7 = vld [vmem:[#allocation2 + $0xae8] sm:$0xff]  ;;  %v3116_v9 = vld [vmem:[#allocation2 + $0xaf8] sm:$0xff] }
 0x533   : > { %v2680_v12 = vmax.f32 %v2616_v11, 0.0  ;;  %v2533_v13 = vpop.f32.mrb[188].mxu0  ;;  %v4813_v11 = vpack.c.bf16 %v3111_v5, %v3109_v4  ;;  %v4845_v4 = vpack.c.bf16 %v3143_v60, %v3141_v62  ;;  %v3853_v62 = vld [vmem:[#allocation2 + $0xc78] sm:$0xff]  ;;  %v3850_v60 = vld [vmem:[#allocation2 + $0xc60] sm:$0xff] }
 0x534   : > { %v2617_v15 = vadd.f32 %v6007_v32, %v2533_v13  ;;  %v2535_v16 = vpop.f32.mrb[189].mxu0  ;;  %v3113_v13 = vld [vmem:[#allocation2 + $0xae0] sm:$0xff] }
 0x535   : > { %v2618_v17 = vadd.f32 %v6010_v33, %v2535_v16  ;;  %3001 = vmatprep.mubr.f32.mxu1 %v2680_v12  ;;  %v4815_v12 = vpack.c.bf16 %v3116_v9, %v3114_v7  ;;  %v3120_v16 = vld [vmem:[#allocation2 + $0xb18] sm:$0xff]  ;;  %v3145_v7 = vld [vmem:[#allocation2 + $0xbe0] sm:$0xff]  ;;  %v3147_v9 = vld [vmem:[#allocation2 + $0xbf0] sm:$0xff] }
 0x536   : > { %3002 = vmatmul.mubr.f32.gmra.mrb[186].mxu1 %v2679_v14  ;;  %v2681_v20 = vmax.f32 %v2617_v15, 0.0  ;;  %v3115_v14 = vld [vmem:[#allocation2 + $0xaf0] sm:$0xff]  ;;  %v3118_v15 = vld [vmem:[#allocation2 + $0xb08] sm:$0xff] }
 0x537   : > { %v2682_v18 = vmax.f32 %v2618_v17, 0.0  ;;  %v2539_v19 = vpop.f32.mrb[190].mxu0  ;;  %v5156_v17 = vld [vmem:[%s5525_s5 + $0x30] sm:$0xff] }
 0x538   : > { %v2619_v21 = vadd.f32 %v6007_v32, %v2539_v19  ;;  %v2541_v22 = vpop.f32.mrb[191].mxu0  ;;  %v3089_v32 = vld [vmem:[#allocation2 + $0xa20] sm:$0xff]  ;;  %v4819_v19 = vpack.c.bf16 %v3120_v16, %v3118_v15  ;;  %v5168_v15 = vld [vmem:[%s5525_s5 + $0x90] sm:$0xff]  ;;  %v5169_v16 = vld [vmem:[%s5525_s5 + $0x98] sm:$0xff] }
 0x539   : > { %v2620_v23 = vadd.f32 %v6010_v33, %v2541_v22  ;;  %3007 = vmatprep.mubr.f32.mxu1 %v2682_v18  ;;  %v3096_v33 = vld [vmem:[#allocation2 + $0xa58] sm:$0xff]  ;;  %v4793_v36 = vpack.c.bf16 %v3091_v34, %v3089_v32  ;;  %v4817_v18 = vpack.c.bf16 %v3115_v14, %v3113_v13  ;;  %v3122_v22 = vld [vmem:[#allocation2 + $0xb28] sm:$0xff]  ;;  %v4825_v32 = vpack.c.bf16 %v3123_v28, %v3121_v27  ;;  %v5166_v13 = vld [vmem:[%s5525_s5 + $0x80] sm:$0xff] }
 0x53a   : > { %3008 = vmatmul.mubr.f32.gmra.mrb[188].mxu1 %v2681_v20  ;;  %v2683_v25 = vmax.f32 %v2619_v21, 0.0  ;;  %v4795_v37 = vpack.c.bf16 %v3096_v33, %v3094_v35  ;;  %v3117_v20 = vld [vmem:[#allocation2 + $0xb00] sm:$0xff]  ;;  %v3119_v21 = vld [vmem:[#allocation2 + $0xb10] sm:$0xff]  ;;  %v5167_v14 = vld [vmem:[%s5525_s5 + $0x88] sm:$0xff] }
 0x53b   : > { %v2684_v24 = vmax.f32 %v2620_v23, 0.0  ;;  %v3124_v23 = vld [vmem:[#allocation2 + $0xb38] sm:$0xff]  ;;  %v3125_v35 = vld [vmem:[#allocation2 + $0xb40] sm:$0xff]  ;;  %v3127_v33 = vld [vmem:[#allocation2 + $0xb50] sm:$0xff] }
 0x53c   : > { %v4823_v26 = vpack.c.bf16 %v3124_v23, %v3122_v22  ;;  %v4829_v58 = vpack.c.bf16 %v3127_v33, %v3125_v35  ;;  %v5172_v23 = vld [vmem:[%s5525_s5 + $0xb0] sm:$0xff]  ;;  %v5174_v33 = vld [vmem:[%s5525_s5 + $0xc0] sm:$0xff] }
 0x53d   : > { %3013 = vmatprep.mubr.f32.mxu1 %v2684_v24  ;;  %v5157_v24 = vld [vmem:[%s5525_s5 + $0x38] sm:$0xff]  ;;  %v3840_v28 = vld [vmem:[#allocation2 + $0xc10] sm:$0xff] }
 0x53e   : > { %3014 = vmatmul.mubr.f32.gmra.mrb[190].mxu1 %v2683_v25  ;;  %v4821_v25 = vpack.c.bf16 %v3119_v21, %v3117_v20  ;;  %v5171_v20 = vld [vmem:[%s5525_s5 + $0xa8] sm:$0xff] }
 0x53f   : > { %3246 = vmatprep.mubr.f32.mxu1 %v5343_v0 }
 0x542   : > { %4357 = vmatmul.mubr.msk.f32.vlgmr.msra.gmra.mrb[192].mxu1 %vm311_vm1, %v5150_v56  ;;  %v3130_v56 = vld [vmem:[#allocation2 + $0xb68] sm:$0xff] }
 0x543   : > { %4790 = vmatpush1.bf16.msra.mxu1 %v4789_v30  ;;  %3252 = vmatprep.mubr.f32.mxu1 %v5343_v0  ;;  %v3128_v30 = vld [vmem:[#allocation2 + $0xb58] sm:$0xff] }
 0x544   : > { %4792 = vmatprep.subr.bf16.mxu1 %v4791_v31  ;;  %v5158_v31 = vld [vmem:[%s5525_s5 + $0x40] sm:$0xff]  ;;  %v4827_v34 = vpack.c.bf16 %v3128_v30, %v3126_v29 }
 0x546   : > { %4358 = vmatmul.mubr.msk.f32.gmra.mrb[194].mxu1 %vm311_vm1, %v5151_v41  ;;  %v3134_v41 = vld [vmem:[#allocation2 + $0xb88] sm:$0xff] }
 0x547   : > { %3258 = vmatprep.mubr.f32.mxu1 %v5343_v0  ;;  %4794 = vmatpush1.bf16.msra.mxu1 %v4793_v36  ;;  %v3132_v36 = vld [vmem:[#allocation2 + $0xb78] sm:$0xff] }
 0x548   : > { %4796 = vmatprep.subr.bf16.mxu1 %v4795_v37  ;;  %v5159_v37 = vld [vmem:[%s5525_s5 + $0x48] sm:$0xff]  ;;  %v4831_v38 = vpack.c.bf16 %v3132_v36, %v3130_v56  ;;  %v3845_v36 = vld [vmem:[#allocation2 + $0xc38] sm:$0xff] }
 0x549   : > { %v3843_v56 = vld [vmem:[#allocation2 + $0xc28] sm:$0xff] }
 0x54a   : > { %4359 = vmatmul.mubr.msk.f32.gmra.mrb[196].mxu1 %vm311_vm1, %v5152_v8  ;;  %v3138_v8 = vld [vmem:[#allocation2 + $0xba8] sm:$0xff] }
 0x54b   : > { %3264 = vmatprep.mubr.f32.mxu1 %v5343_v0  ;;  %4798 = vmatpush1.bf16.msra.mxu1 %v4797_v43  ;;  %v3136_v43 = vld [vmem:[#allocation2 + $0xb98] sm:$0xff] }
 0x54c   : > { %4800 = vmatprep.subr.bf16.mxu1 %v4799_v42  ;;  %v5160_v42 = vld [vmem:[%s5525_s5 + $0x50] sm:$0xff]  ;;  %v4835_v6 = vpack.c.bf16 %v3136_v43, %v3134_v41  ;;  %v5175_v43 = vld [vmem:[%s5525_s5 + $0xc8] sm:$0xff] }
 0x54e   : > { %4360 = vmatmul.mubr.msk.f32.gmra.mrb[198].mxu1 %vm311_vm1, %v5153_v53  ;;  %v3142_v53 = vld [vmem:[#allocation2 + $0xbc8] sm:$0xff] }
 0x54f   : > { %3270 = vmatprep.mubr.f32.mxu1 %v5343_v0  ;;  %4802 = vmatpush1.bf16.msra.mxu1 %v4801_v47  ;;  %v3140_v47 = vld [vmem:[#allocation2 + $0xbb8] sm:$0xff] }
 0x550   : > { %4804 = vmatprep.subr.bf16.mxu1 %v4803_v48  ;;  %v5161_v48 = vld [vmem:[%s5525_s5 + $0x58] sm:$0xff]  ;;  %v4839_v50 = vpack.c.bf16 %v3140_v47, %v3138_v8  ;;  %v3846_v8 = vld [vmem:[#allocation2 + $0xc40] sm:$0xff]  ;;  %v4859_v47 = vpack.c.bf16 %v3849_v46, %v3847_v45 }
 0x552   : > { %4361 = vmatmul.mubr.msk.f32.gmra.mrb[200].mxu1 %vm311_vm1, %v5154_v1  ;;  %v3146_v1 = vld [vmem:[#allocation2 + $0xbe8] sm:$0xff] }
 0x553   : > { %3276 = vmatprep.mubr.f32.mxu1 %v5343_v0  ;;  %4806 = vmatpush1.bf16.msra.mxu1 %v4805_v54  ;;  %v3144_v54 = vld [vmem:[#allocation2 + $0xbd8] sm:$0xff] }
 0x554   : > { %4808 = vmatprep.subr.bf16.mxu1 %v4807_v55  ;;  %v5162_v55 = vld [vmem:[%s5525_s5 + $0x60] sm:$0xff]  ;;  %v4843_v59 = vpack.c.bf16 %v3144_v54, %v3142_v53  ;;  %v2751_v54 = vld [vmem:[#allocation7 + $0x5] ss:$8 sm:$0x3] }
 0x556   : > { %4362 = vmatmul.mubr.msk.f32.gmra.mrb[202].mxu1 %vm311_vm1, %v5155_v10  ;;  %v5164_v10 = vld [vmem:[%s5525_s5 + $0x70] sm:$0xff] }
 0x557   : > { %3282 = vmatprep.mubr.f32.mxu1 %v5343_v0  ;;  %4810 = vmatpush1.bf16.msra.mxu1 %v4809_v2  ;;  %v3148_v2 = vld [vmem:[#allocation2 + $0xbf8] sm:$0xff] }
 0x558   : > { %4812 = vmatprep.subr.bf16.mxu1 %v4811_v3  ;;  %v5163_v3 = vld [vmem:[%s5525_s5 + $0x68] sm:$0xff]  ;;  %v4847_v5 = vpack.c.bf16 %v3148_v2, %v3146_v1  ;;  %v3852_v2 = vld [vmem:[#allocation2 + $0xc70] sm:$0xff] }
 0x55a   : > { %4363 = vmatmul.mubr.msk.f32.gmra.mrb[204].mxu1 %vm311_vm1, %v5156_v17  ;;  %v5170_v17 = vld [vmem:[%s5525_s5 + $0xa0] sm:$0xff] }
 0x55b   : > { %3288 = vmatprep.mubr.f32.mxu1 %v5343_v0  ;;  %4814 = vmatpush1.bf16.msra.mxu1 %v4813_v11  ;;  %v4849_v11 = vpack.c.bf16 %v3147_v9, %v3145_v7  ;;  %v5179_v9 = vld [vmem:[%s5525_s5 + $0xe8] sm:$0xff] }
 0x55c   : > { %4816 = vmatprep.subr.bf16.mxu1 %v4815_v12  ;;  %v5165_v12 = vld [vmem:[%s5525_s5 + $0x78] sm:$0xff] }
 0x55e   : > { %4364 = vmatmul.mubr.msk.f32.gmra.mrb[206].mxu1 %vm311_vm1, %v5157_v24  ;;  %v3839_v24 = vld [vmem:[#allocation2 + $0xc08] sm:$0xff] }
 0x55f   : > { %3294 = vmatprep.mubr.f32.mxu1 %v5343_v0  ;;  %4818 = vmatpush1.bf16.msra.mxu1 %v4817_v18 }
 0x560   : > { %4820 = vmatprep.subr.bf16.mxu1 %v4819_v19 }
 0x562   : > { %4365 = vmatmul.mubr.msk.f32.gmra.mrb[208].mxu1 %vm311_vm1, %v5158_v31 }
 0x563   : > { %3300 = vmatprep.mubr.f32.mxu1 %v5343_v0  ;;  %4822 = vmatpush1.bf16.msra.mxu1 %v4821_v25  ;;  %v3841_v25 = vld [vmem:[#allocation2 + $0xc18] sm:$0xff] }
 0x564   : > { %4824 = vmatprep.subr.bf16.mxu1 %v4823_v26  ;;  %v3838_v26 = vld [vmem:[#allocation2 + $0xc00] sm:$0xff]  ;;  %v4851_v27 = vpack.c.bf16 %v3841_v25, %v3839_v24  ;;  %v3856_v24 = vld [vmem:[#allocation2 + $0xc90] sm:$0xff] }
 0x565   : > { %v4853_v30 = vpack.c.bf16 %v3840_v28, %v3838_v26 }
 0x566   : > { %4366 = vmatmul.mubr.msk.f32.gmra.mrb[210].mxu1 %vm311_vm1, %v5159_v37  ;;  %4852 = vmatprep.subr.bf16.mxu0 %v4851_v27  ;;  %v3842_v37 = vld [vmem:[#allocation2 + $0xc20] sm:$0xff] }
 0x567   : > { %3306 = vmatprep.mubr.f32.mxu1 %v5343_v0  ;;  %4826 = vmatpush1.bf16.msra.mxu1 %v4825_v32  ;;  %v5173_v32 = vld [vmem:[%s5525_s5 + $0xb8] sm:$0xff] }
 0x568   : > { %4828 = vmatprep.subr.bf16.mxu1 %v4827_v34  ;;  %4854 = vmatpush1.bf16.msra.mxu0 %v4853_v30  ;;  %v5181_v30 = vld [vmem:[%s5525_s5 + $0xf8] sm:$0xff] }
 0x56a   : > { %4367 = vmatmul.mubr.msk.f32.gmra.mrb[212].mxu1 %vm311_vm1, %v5160_v42 }
 0x56b   : > { %3312 = vmatprep.mubr.f32.mxu1 %v5343_v0  ;;  %4830 = vmatpush1.bf16.msra.mxu1 %v4829_v58  ;;  %v4855_v58 = vpack.c.bf16 %v3845_v36, %v3843_v56  ;;  %v3860_v56 = vld [vmem:[#allocation2 + $0xcb0] sm:$0xff]  ;;  %v3863_v36 = vld [vmem:[#allocation2 + $0xcc8] sm:$0xff] }
 0x56c   : > { %4832 = vmatprep.subr.bf16.mxu1 %v4831_v38  ;;  %v3844_v38 = vld [vmem:[#allocation2 + $0xc30] sm:$0xff] }
 0x56d   : > { %v4857_v40 = vpack.c.bf16 %v3844_v38, %v3842_v37  ;;  %4856 = vmatprep.subr.bf16.mxu0 %v4855_v58  ;;  %v3865_v37 = vld [vmem:[#allocation2 + $0xcd8] sm:$0xff] }
 0x56e   : > { %4368 = vmatmul.mubr.msk.f32.gmra.mrb[214].mxu1 %vm311_vm1, %v5161_v48  ;;  %v3848_v48 = vld [vmem:[#allocation2 + $0xc50] sm:$0xff] }
 0x56f   : > { %3318 = vmatprep.mubr.f32.mxu1 %v5343_v0  ;;  %4834 = vmatpush1.bf16.msra.mxu1 %v4833_v44 }
 0x570   : > { %4836 = vmatprep.subr.bf16.mxu1 %v4835_v6  ;;  %4858 = vmatpush1.bf16.msra.mxu0 %v4857_v40  ;;  %v5176_v6 = vld [vmem:[%s5525_s5 + $0xd0] sm:$0xff]  ;;  %v4875_v40 = vpack.c.bf16 %v3865_v37, %v3863_v36  ;;  %v3879_v36 = vld [vmem:[#allocation2 + $0xd48] sm:$0xff]  ;;  %v3881_v37 = vld [vmem:[#allocation2 + $0xd58] sm:$0xff] }
 0x571   : > { %4860 = vmatprep.subr.bf16.mxu0 %v4859_v47  ;;  %v3867_v47 = vld [vmem:[#allocation2 + $0xce8] sm:$0xff] }
 0x572   : > { %4369 = vmatmul.mubr.msk.f32.gmra.mrb[216].mxu1 %vm311_vm1, %v5162_v55 }
 0x573   : > { %3324 = vmatprep.mubr.f32.mxu1 %v5343_v0  ;;  %4838 = vmatpush1.bf16.msra.mxu1 %v4837_v49 }
 0x574   : > { %4840 = vmatprep.subr.bf16.mxu1 %v4839_v50  ;;  %v4861_v50 = vpack.c.bf16 %v3848_v48, %v3846_v8  ;;  %v3869_v48 = vld [vmem:[#allocation2 + $0xcf8] sm:$0xff] }
 0x576   : > { %4370 = vmatmul.mubr.msk.f32.gmra.mrb[218].mxu1 %vm311_vm1, %v5163_v3  ;;  %4862 = vmatpush1.bf16.msra.mxu0 %v4861_v50  ;;  %v6199_v3 = vrot.slane %v2751_v54, %v5626_v63 }
 0x577   : > { %3330 = vmatprep.mubr.f32.mxu1 %v5343_v0  ;;  %4842 = vmatpush1.bf16.msra.mxu1 %v4841_v57  ;;  %v5178_v57 = vld [vmem:[%s5525_s5 + $0xe0] sm:$0xff] }
 0x578   : > { %4844 = vmatprep.subr.bf16.mxu1 %v4843_v59  ;;  %v3851_v59 = vld [vmem:[#allocation2 + $0xc68] sm:$0xff] }
 0x579   : > { %v4863_v1 = vpack.c.bf16 %v3853_v62, %v3851_v59  ;;  %v3866_v59 = vld [vmem:[#allocation2 + $0xce0] sm:$0xff]  ;;  %v3868_v62 = vld [vmem:[#allocation2 + $0xcf0] sm:$0xff] }
 0x57a   : > { %4371 = vmatmul.mubr.msk.f32.gmra.mrb[220].mxu1 %vm311_vm1, %v5164_v10  ;;  %v6209_v10 = vrot.slane %v2751_v54, %v5624_v61 }
 0x57b   : > { %3336 = vmatprep.mubr.f32.mxu1 %v5343_v0  ;;  %4846 = vmatpush1.bf16.msra.mxu1 %v4845_v4 }
 0x57c   : > { %4848 = vmatprep.subr.bf16.mxu1 %v4847_v5  ;;  %v4865_v5 = vpack.c.bf16 %v3852_v2, %v3850_v60  ;;  %4864 = vmatprep.subr.bf16.mxu0 %v4863_v1  ;;  %v3871_v2 = vld [vmem:[#allocation2 + $0xd08] sm:$0xff] }
 0x57e   : > { %4372 = vmatmul.mubr.msk.f32.gmra.mrb[222].mxu1 %vm311_vm1, %v5165_v12  ;;  %4866 = vmatpush1.bf16.msra.mxu0 %v4865_v5  ;;  %v3873_v5 = vld [vmem:[#allocation2 + $0xd18] sm:$0xff] }
 0x57f   : > { %3342 = vmatprep.mubr.f32.mxu1 %v5343_v0  ;;  %4850 = vmatpush1.bf16.msra.mxu1 %v4849_v11 }
 0x582   : > { %4373 = vmatmul.mubr.msk.f32.gmra.mrb[224].mxu1 %vm311_vm1, %v5166_v13 }
 0x583   : > { %3348 = vmatprep.mubr.f32.mxu1 %v5343_v0 }
 0x586   : > { %4374 = vmatmul.mubr.msk.f32.gmra.mrb[226].mxu1 %vm311_vm1, %v5167_v14  ;;  %v5180_v14 = vld [vmem:[%s5525_s5 + $0xf0] sm:$0xff] }
 0x587   : > { %3354 = vmatprep.mubr.f32.mxu1 %v5343_v0 }
 0x58a   : > { %4375 = vmatmul.mubr.msk.f32.gmra.mrb[228].mxu1 %vm311_vm1, %v5168_v15  ;;  %v3855_v15 = vld [vmem:[#allocation2 + $0xc88] sm:$0xff] }
 0x58b   : > { %3360 = vmatprep.mubr.f32.mxu1 %v5343_v0 }
 0x58e   : > { %4376 = vmatmul.mubr.msk.f32.gmra.mrb[230].mxu1 %vm311_vm1, %v5169_v16  ;;  %v3857_v16 = vld [vmem:[#allocation2 + $0xc98] sm:$0xff] }
 0x58f   : > { %3366 = vmatprep.mubr.f32.mxu1 %v5343_v0 }
 0x592   : > { %4377 = vmatmul.mubr.msk.f32.gmra.mrb[232].mxu1 %vm311_vm1, %v5170_v17  ;;  %v3854_v17 = vld [vmem:[#allocation2 + $0xc80] sm:$0xff] }
 0x593   : > { %3372 = vmatprep.mubr.f32.mxu1 %v5343_v0  ;;  %v4869_v27 = vpack.c.bf16 %v3856_v24, %v3854_v17  ;;  %v3872_v17 = vld [vmem:[#allocation2 + $0xd10] sm:$0xff]  ;;  %v3875_v24 = vld [vmem:[#allocation2 + $0xd28] sm:$0xff] }
 0x595   : > { %v6142_v18 = vpop.f32.mrb[128].mxu1 }
 0x596   : > { %v6144_v19 = vpop.f32.mrb[129].mxu1  ;;  %4378 = vmatmul.mubr.msk.f32.gmra.mrb[234].mxu1 %vm311_vm1, %v5171_v20  ;;  %v2830_v20 = vadd.f32 %v6142_v18, %v6209_v10 }
 0x597   : > { %3378 = vmatprep.mubr.f32.mxu1 %v5343_v0  ;;  %v2832_v11 = vadd.f32 %v6144_v19, %v6199_v3 }
 0x598   : > { %v3020_v58 = vmax.f32 %v2830_v20, 0.0 }
 0x599   : > { %v6149_v21 = vpop.f32.mrb[130].mxu1  ;;  %v3021_v25 = vmax.f32 %v2832_v11, 0.0  ;;  %v4881_v11 = vpack.c.bf16 %v3868_v62, %v3866_v59  ;;  %v3882_v59 = vld [vmem:[#allocation2 + $0xd60] sm:$0xff]  ;;  %v3884_v62 = vld [vmem:[#allocation2 + $0xd70] sm:$0xff] }
 0x59a   : > { %v6151_v22 = vpop.f32.mrb[131].mxu1  ;;  %4379 = vmatmul.mubr.msk.f32.gmra.mrb[236].mxu1 %vm311_vm1, %v5172_v23  ;;  %v4867_v23 = vpack.c.bf16 %v3857_v16, %v3855_v15  ;;  %v4883_v15 = vpack.c.bf16 %v3873_v5, %v3871_v2  ;;  %v3870_v16 = vld [vmem:[#allocation2 + $0xd00] sm:$0xff]  ;;  %v3887_v2 = vld [vmem:[#allocation2 + $0xd88] sm:$0xff]  ;;  %v3889_v5 = vld [vmem:[#allocation2 + $0xd98] sm:$0xff] }
 0x59b   : > { %3384 = vmatprep.mubr.f32.mxu1 %v5343_v0  ;;  %v2838_v19 = vadd.f32 %v6151_v22, %v6199_v3  ;;  %v2836_v22 = vadd.f32 %v6149_v21, %v6209_v10 }
 0x59c   : > { %4868 = vmatprep.subr.bf16.mxu0 %v4867_v23 }
 0x59d   : > { %v6156_v29 = vpop.f32.mrb[132].mxu1  ;;  %4870 = vmatpush1.bf16.msra.mxu0 %v4869_v27  ;;  %v3023_v45 = vmax.f32 %v2838_v19, 0.0  ;;  %v3022_v21 = vmax.f32 %v2836_v22, 0.0  ;;  %v4885_v27 = vpack.c.bf16 %v3872_v17, %v3870_v16  ;;  %v3886_v16 = vld [vmem:[#allocation2 + $0xd80] sm:$0xff]  ;;  %v3888_v17 = vld [vmem:[#allocation2 + $0xd90] sm:$0xff] }
 0x59e   : > { %v6158_v31 = vpop.f32.mrb[133].mxu1  ;;  %4380 = vmatmul.mubr.msk.f32.gmra.mrb[238].mxu1 %vm311_vm1, %v5173_v32  ;;  %v3861_v32 = vld [vmem:[#allocation2 + $0xcb8] sm:$0xff]  ;;  %v2842_v54 = vadd.f32 %v6156_v29, %v6209_v10 }
 0x59f   : > { %3390 = vmatprep.mubr.f32.mxu1 %v5343_v0  ;;  %v2844_v46 = vadd.f32 %v6158_v31, %v6199_v3 }
 0x5a1   : > { %v6163_v34 = vpop.f32.mrb[134].mxu1  ;;  %v3025_v31 = vmax.f32 %v2844_v46, 0.0 }
 0x5a2   : > { %v6165_v35 = vpop.f32.mrb[135].mxu1  ;;  %4381 = vmatmul.mubr.msk.f32.gmra.mrb[240].mxu1 %vm311_vm1, %v5174_v33  ;;  %v3858_v33 = vld [vmem:[#allocation2 + $0xca0] sm:$0xff]  ;;  %v2848_v29 = vadd.f32 %v6163_v34, %v6209_v10 }
 0x5a3   : > { %3396 = vmatprep.mubr.f32.mxu1 %v5343_v0  ;;  %v4873_v38 = vpack.c.bf16 %v3860_v56, %v3858_v33  ;;  %v2850_v60 = vadd.f32 %v6165_v35, %v6199_v3  ;;  %v3876_v33 = vld [vmem:[#allocation2 + $0xd30] sm:$0xff] }
 0x5a5   : > { %v6170_v39 = vpop.f32.mrb[136].mxu1  ;;  %v3027_v20 = vmax.f32 %v2850_v60, 0.0 }
 0x5a6   : > { %v6172_v41 = vpop.f32.mrb[137].mxu1  ;;  %4382 = vmatmul.mubr.msk.f32.gmra.mrb[242].mxu1 %vm311_vm1, %v5175_v43  ;;  %v3862_v43 = vld [vmem:[#allocation2 + $0xcc0] sm:$0xff]  ;;  %v2854_v34 = vadd.f32 %v6170_v39, %v6209_v10 }
 0x5a7   : > { %3402 = vmatprep.mubr.f32.mxu1 %v5343_v0  ;;  %v2856_v35 = vadd.f32 %v6172_v41, %v6199_v3 }
 0x5a9   : > { %v6177_v42 = vpop.f32.mrb[138].mxu1 }
 0x5aa   : > { %v6179_v44 = vpop.f32.mrb[139].mxu1  ;;  %4383 = vmatmul.mubr.msk.f32.gmra.mrb[244].mxu1 %vm311_vm1, %v5176_v6  ;;  %v3864_v6 = vld [vmem:[#allocation2 + $0xcd0] sm:$0xff]  ;;  %v2860_v39 = vadd.f32 %v6177_v42, %v6209_v10 }
 0x5ab   : > { %3408 = vmatprep.mubr.f32.mxu1 %v5343_v0  ;;  %v2862_v41 = vadd.f32 %v6179_v44, %v6199_v3 }
 0x5ad   : > { %v6184_v49 = vpop.f32.mrb[140].mxu1 }
 0x5ae   : > { %v6186_v51 = vpop.f32.mrb[141].mxu1  ;;  %4384 = vmatmul.mubr.msk.f32.gmra.mrb[246].mxu1 %vm311_vm1, %v5177_v52  ;;  %v4877_v52 = vpack.c.bf16 %v3864_v6, %v3862_v43  ;;  %v3878_v43 = vld [vmem:[#allocation2 + $0xd40] sm:$0xff]  ;;  %v3880_v6 = vld [vmem:[#allocation2 + $0xd50] sm:$0xff]  ;;  %v2866_v42 = vadd.f32 %v6184_v49, %v6209_v10 }
 0x5af   : > { %3414 = vmatprep.mubr.f32.mxu1 %v5343_v0  ;;  %v2868_v44 = vadd.f32 %v6186_v51, %v6199_v3 }
 0x5b1   : > { %v6191_v53 = vpop.f32.mrb[142].mxu1 }
 0x5b2   : > { %v6193_v55 = vpop.f32.mrb[143].mxu1  ;;  %4385 = vmatmul.mubr.msk.f32.gmra.mrb[248].mxu1 %vm311_vm1, %v5178_v57  ;;  %v4879_v57 = vpack.c.bf16 %v3869_v48, %v3867_v47  ;;  %v3883_v47 = vld [vmem:[#allocation2 + $0xd68] sm:$0xff]  ;;  %v3885_v48 = vld [vmem:[#allocation2 + $0xd78] sm:$0xff]  ;;  %v2872_v49 = vadd.f32 %v6191_v53, %v6209_v10 }
 0x5b3   : > { %3420 = vmatprep.mubr.f32.mxu1 %v5343_v0  ;;  %v2874_v51 = vadd.f32 %v6193_v55, %v6199_v3 }
 0x5b5   : > { %v6201_v4 = vpop.f32.mrb[144].mxu1 }
 0x5b6   : > { %v6203_v7 = vpop.f32.mrb[145].mxu1  ;;  %4386 = vmatmul.mubr.msk.f32.gmra.mrb[250].mxu1 %vm311_vm1, %v5179_v9  ;;  %v2878_v53 = vadd.f32 %v6201_v4, %v6209_v10 }
 0x5b7   : > { %3426 = vmatprep.mubr.f32.mxu1 %v5343_v0  ;;  %v2880_v55 = vadd.f32 %v6203_v7, %v6199_v3 }
 0x5b9   : > { %v6213_v12 = vpop.f32.mrb[146].mxu1 }
 0x5ba   : > { %v6215_v13 = vpop.f32.mrb[147].mxu1  ;;  %4387 = vmatmul.mubr.msk.f32.gmra.mrb[252].mxu1 %vm311_vm1, %v5180_v14  ;;  %v3024_v14 = vmax.f32 %v2842_v54, 0.0  ;;  %v3030_v54 = vmax.f32 %v2860_v39, 0.0  ;;  %v3036_v39 = vmax.f32 %v2878_v53, 0.0  ;;  %v2884_v4 = vadd.f32 %v6213_v12, %v6209_v10 }
 0x5bb   : > { %3432 = vmatprep.mubr.f32.mxu1 %v5343_v0  ;;  %v3859_v0 = vld [vmem:[#allocation2 + $0xca8] sm:$0xff]  ;;  %v2886_v7 = vadd.f32 %v6215_v13, %v6199_v3 }
 0x5bc   : > { %v4871_v18 = vpack.c.bf16 %v3861_v32, %v3859_v0  ;;  %v3874_v32 = vld [vmem:[#allocation2 + $0xd20] sm:$0xff] }
 0x5bd   : > { %v6224_v26 = vpop.f32.mrb[148].mxu1  ;;  %v4889_v22 = vpack.c.bf16 %v3876_v33, %v3874_v32  ;;  %v3890_v32 = vld [vmem:[#allocation2 + $0xda0] sm:$0xff]  ;;  %v3892_v33 = vld [vmem:[#allocation2 + $0xdb0] sm:$0xff] }
 0x5be   : > { %v6226_v28 = vpop.f32.mrb[149].mxu1  ;;  %4388 = vmatmul.mubr.msk.f32.gmra.mrb[254].mxu1 %vm311_vm1, %v5181_v30  ;;  %4872 = vmatprep.subr.bf16.mxu0 %v4871_v18  ;;  %v3026_v30 = vmax.f32 %v2848_v29, 0.0  ;;  %v3029_v18 = vmax.f32 %v2856_v35, 0.0  ;;  %v3032_v29 = vmax.f32 %v2866_v42, 0.0  ;;  %v3038_v42 = vmax.f32 %v2884_v4, 0.0 }
 0x5bf   : > { %3503 = vmatprep.mubr.f32.mxu1 %v3021_v25  ;;  %4874 = vmatpush1.bf16.msra.mxu0 %v4873_v38  ;;  %v3877_v25 = vld [vmem:[#allocation2 + $0xd38] sm:$0xff]  ;;  %v3028_v38 = vmax.f32 %v2854_v34, 0.0  ;;  %v3034_v34 = vmax.f32 %v2872_v49, 0.0  ;;  %v2892_v13 = vadd.f32 %v6226_v28, %v6199_v3  ;;  %v2890_v12 = vadd.f32 %v6224_v26, %v6209_v10 }
 0x5c0   : > { %4876 = vmatprep.subr.bf16.mxu0 %v4875_v40  ;;  %v4887_v0 = vpack.c.bf16 %v3877_v25, %v3875_v24  ;;  %v4891_v40 = vpack.c.bf16 %v3881_v37, %v3879_v36  ;;  %v3891_v24 = vld [vmem:[#allocation2 + $0xda8] sm:$0xff]  ;;  %v3893_v25 = vld [vmem:[#allocation2 + $0xdb8] sm:$0xff] }
 0x5c1   : > { %v6234_v8 = vpop.f32.mrb[150].mxu1  ;;  %v3895_v36 = vld [vmem:[#allocation2 + $0xdc8] sm:$0xff]  ;;  %v3897_v37 = vld [vmem:[#allocation2 + $0xdd8] sm:$0xff] }
 0x5c2   : > { %v6236_v50 = vpop.f32.mrb[151].mxu1  ;;  %3504 = vmatmul.mubr.f32.vlgmr.msra.gmra.mrb[192].mxu1 %v3020_v58  ;;  %v2896_v26 = vadd.f32 %v6234_v8, %v6209_v10 }
 0x5c3   : > { %3509 = vmatprep.mubr.f32.mxu1 %v3023_v45  ;;  %4878 = vmatpush1.bf16.msra.mxu0 %v4877_v52  ;;  %v3031_v45 = vmax.f32 %v2862_v41, 0.0  ;;  %v2898_v28 = vadd.f32 %v6236_v50, %v6199_v3 }
 0x5c4   : > { %4880 = vmatprep.subr.bf16.mxu0 %v4879_v57  ;;  %v4895_v57 = vpack.c.bf16 %v3885_v48, %v3883_v47  ;;  %v3899_v47 = vld [vmem:[#allocation2 + $0xde8] sm:$0xff]  ;;  %v3901_v48 = vld [vmem:[#allocation2 + $0xdf8] sm:$0xff] }
 0x5c5   : > { %v6242_v1 = vpop.f32.mrb[152].mxu1 }
 0x5c6   : > { %v6244_v9 = vpop.f32.mrb[153].mxu1  ;;  %3510 = vmatmul.mubr.f32.gmra.mrb[194].mxu1 %v3022_v21  ;;  %v4893_v21 = vpack.c.bf16 %v3880_v6, %v3878_v43  ;;  %v3894_v43 = vld [vmem:[#allocation2 + $0xdc0] sm:$0xff]  ;;  %v3896_v6 = vld [vmem:[#allocation2 + $0xdd0] sm:$0xff] }
 0x5c7   : > { %3515 = vmatprep.mubr.f32.mxu1 %v3025_v31  ;;  %4882 = vmatpush1.bf16.msra.mxu0 %v4881_v11  ;;  %v3033_v31 = vmax.f32 %v2868_v44, 0.0  ;;  %v2904_v49 = vadd.f32 %v6244_v9, %v6199_v3 }
 0x5c8   : > { %4884 = vmatprep.subr.bf16.mxu0 %v4883_v15  ;;  %v4899_v15 = vpack.c.bf16 %v3889_v5, %v3887_v2 }
 0x5c9   : > { %v6250_v23 = vpop.f32.mrb[154].mxu1 }
 0x5ca   : > { %v6252_v19 = vpop.f32.mrb[155].mxu1  ;;  %3516 = vmatmul.mubr.f32.gmra.mrb[196].mxu1 %v3024_v14  ;;  %v4897_v14 = vpack.c.bf16 %v3884_v62, %v3882_v59  ;;  %v3898_v59 = vld [vmem:[#allocation2 + $0xde0] sm:$0xff]  ;;  %v3900_v62 = vld [vmem:[#allocation2 + $0xdf0] sm:$0xff] }
 0x5cb   : > { %3521 = vmatprep.mubr.f32.mxu1 %v3027_v20  ;;  %4886 = vmatpush1.bf16.msra.mxu0 %v4885_v27  ;;  %v3035_v20 = vmax.f32 %v2874_v51, 0.0  ;;  %v4913_v5 = vpack.c.bf16 %v3900_v62, %v3898_v59  ;;  %v2910_v8 = vadd.f32 %v6252_v19, %v6199_v3 }
 0x5cc   : > { %4888 = vmatprep.subr.bf16.mxu0 %v4887_v0  ;;  %v4903_v0 = vpack.c.bf16 %v3893_v25, %v3891_v24  ;;  %v2908_v25 = vadd.f32 %v6250_v23, %v6209_v10 }
 0x5cd   : > { %v6258_v56 = vpop.f32.mrb[156].mxu1 }
 0x5ce   : > { %v6260_v58 = vpop.f32.mrb[157].mxu1  ;;  %3522 = vmatmul.mubr.f32.gmra.mrb[198].mxu1 %v3026_v30  ;;  %v4901_v30 = vpack.c.bf16 %v3888_v17, %v3886_v16  ;;  %v3042_v16 = vmax.f32 %v2896_v26, 0.0  ;;  %v2902_v17 = vadd.f32 %v6242_v1, %v6209_v10  ;;  %v3046_v19 = vmax.f32 %v2908_v25, 0.0 }
 0x5cf   : > { %3527 = vmatprep.mubr.f32.mxu1 %v3029_v18  ;;  %4890 = vmatpush1.bf16.msra.mxu0 %v4889_v22  ;;  %v3037_v18 = vmax.f32 %v2880_v55, 0.0 }
 0x5d0   : > { %4892 = vmatprep.subr.bf16.mxu0 %v4891_v40  ;;  %v4907_v40 = vpack.c.bf16 %v3897_v37, %v3895_v36  ;;  %v3044_v9 = vmax.f32 %v2902_v17, 0.0 }
 0x5d1   : > { %v6266_v46 = vpop.f32.mrb[158].mxu1 }
 0x5d2   : > { %v6268_v52 = vpop.f32.mrb[159].mxu1  ;;  %3528 = vmatmul.mubr.f32.gmra.mrb[200].mxu1 %v3028_v38  ;;  %v4905_v38 = vpack.c.bf16 %v3892_v33, %v3890_v32 }
 0x5d3   : > { %3533 = vmatprep.mubr.f32.mxu1 %v3031_v45  ;;  %4894 = vmatpush1.bf16.msra.mxu0 %v4893_v21  ;;  %v3039_v45 = vmax.f32 %v2886_v7, 0.0  ;;  %v2922_v33 = vadd.f32 %v6268_v52, %v6199_v3  ;;  %v2920_v7 = vadd.f32 %v6266_v46, %v6209_v10 }
 0x5d4   : > { %4896 = vmatprep.subr.bf16.mxu0 %v4895_v57  ;;  %v4911_v57 = vpack.c.bf16 %v3901_v48, %v3899_v47 }
 0x5d5   : > { %v6274_v60 = vpop.f32.mrb[160].mxu1  ;;  %v3051_v36 = vmax.f32 %v2922_v33, 0.0  ;;  %v3050_v52 = vmax.f32 %v2920_v7, 0.0 }
 0x5d6   : > { %v6276_v11 = vpop.f32.mrb[161].mxu1  ;;  %3534 = vmatmul.mubr.f32.gmra.mrb[202].mxu1 %v3030_v54  ;;  %v4909_v54 = vpack.c.bf16 %v3896_v6, %v3894_v43 }
 0x5d7   : > { %3539 = vmatprep.mubr.f32.mxu1 %v3033_v31  ;;  %4898 = vmatpush1.bf16.msra.mxu0 %v4897_v14  ;;  %v3041_v31 = vmax.f32 %v2892_v13, 0.0  ;;  %v3040_v14 = vmax.f32 %v2890_v12, 0.0  ;;  %v2928_v37 = vadd.f32 %v6276_v11, %v6199_v3 }
 0x5d8   : > { %4900 = vmatprep.subr.bf16.mxu0 %v4899_v15 }
 0x5d9   : > { %v6282_v35 = vpop.f32.mrb[162].mxu1  ;;  %v3053_v4 = vmax.f32 %v2928_v37, 0.0 }
 0x5da   : > { %v6284_v27 = vpop.f32.mrb[163].mxu1  ;;  %3540 = vmatmul.mubr.f32.gmra.mrb[204].mxu1 %v3032_v29  ;;  %v3043_v29 = vmax.f32 %v2898_v28, 0.0  ;;  %v2932_v6 = vadd.f32 %v6282_v35, %v6209_v10 }
 0x5db   : > { %3545 = vmatprep.mubr.f32.mxu1 %v3035_v20  ;;  %4902 = vmatpush1.bf16.msra.mxu0 %v4901_v30  ;;  %v3045_v20 = vmax.f32 %v2904_v49, 0.0  ;;  %v3047_v30 = vmax.f32 %v2910_v8, 0.0 }
 0x5dc   : > { %4904 = vmatprep.subr.bf16.mxu0 %v4903_v0  ;;  %v2914_v0 = vadd.f32 %v6258_v56, %v6209_v10 }
 0x5dd   : > { %v6290_v41 = vpop.f32.mrb[164].mxu1 }
 0x5de   : > { %v6292_v22 = vpop.f32.mrb[165].mxu1  ;;  %3546 = vmatmul.mubr.f32.gmra.mrb[206].mxu1 %v3034_v34  ;;  %v2916_v34 = vadd.f32 %v6260_v58, %v6199_v3  ;;  %v3048_v58 = vmax.f32 %v2914_v0, 0.0  ;;  %v2938_v48 = vadd.f32 %v6290_v41, %v6209_v10 }
 0x5df   : > { %3551 = vmatprep.mubr.f32.mxu1 %v3037_v18  ;;  %4906 = vmatpush1.bf16.msra.mxu0 %v4905_v38  ;;  %v2940_v13 = vadd.f32 %v6292_v22, %v6199_v3 }
 0x5e0   : > { %4908 = vmatprep.subr.bf16.mxu0 %v4907_v40  ;;  %v3049_v32 = vmax.f32 %v2916_v34, 0.0  ;;  %v2934_v40 = vadd.f32 %v6284_v27, %v6199_v3  ;;  %v3054_v27 = vmax.f32 %v2932_v6, 0.0 }
 0x5e1   : > { %v6298_v44 = vpop.f32.mrb[166].mxu1 }
 0x5e2   : > { %v6300_v21 = vpop.f32.mrb[167].mxu1  ;;  %3552 = vmatmul.mubr.f32.gmra.mrb[208].mxu1 %v3036_v39  ;;  %v2926_v39 = vadd.f32 %v6274_v60, %v6209_v10  ;;  %v2944_v22 = vadd.f32 %v6298_v44, %v6209_v10 }
 0x5e3   : > { %3557 = vmatprep.mubr.f32.mxu1 %v3039_v45  ;;  %4910 = vmatpush1.bf16.msra.mxu0 %v4909_v54  ;;  %v3055_v45 = vmax.f32 %v2934_v40, 0.0  ;;  %v3057_v54 = vmax.f32 %v2940_v13, 0.0 }
 0x5e4   : > { %4912 = vmatprep.subr.bf16.mxu0 %v4911_v57  ;;  %v3052_v11 = vmax.f32 %v2926_v39, 0.0  ;;  %v3056_v57 = vmax.f32 %v2938_v48, 0.0  ;;  %v3058_v28 = vmax.f32 %v2944_v22, 0.0 }
 0x5e5   : > { %v6306_v51 = vpop.f32.mrb[168].mxu1 }
 0x5e6   : > { %v6308_v2 = vpop.f32.mrb[169].mxu1  ;;  %3558 = vmatmul.mubr.f32.gmra.mrb[210].mxu1 %v3038_v42  ;;  %v2946_v42 = vadd.f32 %v6300_v21, %v6199_v3  ;;  %v2950_v21 = vadd.f32 %v6306_v51, %v6209_v10 }
 0x5e7   : > { %3563 = vmatprep.mubr.f32.mxu1 %v3041_v31  ;;  %4914 = vmatpush1.bf16.msra.mxu0 %v4913_v5  ;;  %v2952_v62 = vadd.f32 %v6308_v2, %v6199_v3 }
 0x5e8   : > { %v3059_v59 = vmax.f32 %v2946_v42, 0.0  ;;  %v3060_v44 = vmax.f32 %v2950_v21, 0.0 }
 0x5e9   : > { %v6314_v15 = vpop.f32.mrb[170].mxu1  ;;  %v3061_v5 = vmax.f32 %v2952_v62, 0.0 }
 0x5ea   : > { %v6316_v50 = vpop.f32.mrb[171].mxu1  ;;  %3564 = vmatmul.mubr.f32.gmra.mrb[212].mxu1 %v3040_v14  ;;  %v2956_v2 = vadd.f32 %v6314_v15, %v6209_v10 }
 0x5eb   : > { %3569 = vmatprep.mubr.f32.mxu1 %v3043_v29  ;;  %v2958_v14 = vadd.f32 %v6316_v50, %v6199_v3 }
 0x5ec   : > { %v3062_v51 = vmax.f32 %v2956_v2, 0.0 }
 0x5ed   : > { %v6322_v55 = vpop.f32.mrb[172].mxu1  ;;  %v3063_v49 = vmax.f32 %v2958_v14, 0.0 }
 0x5ee   : > { %v6324_v24 = vpop.f32.mrb[173].mxu1  ;;  %3570 = vmatmul.mubr.f32.gmra.mrb[214].mxu1 %v3042_v16  ;;  %v2962_v50 = vadd.f32 %v6322_v55, %v6209_v10 }
 0x5ef   : > { %3575 = vmatprep.mubr.f32.mxu1 %v3045_v20  ;;  %v2964_v16 = vadd.f32 %v6324_v24, %v6199_v3 }
 0x5f0   : > { %v3064_v25 = vmax.f32 %v2962_v50, 0.0 }
 0x5f1   : > { %v6330_v53 = vpop.f32.mrb[174].mxu1  ;;  %v3065_v8 = vmax.f32 %v2964_v16, 0.0 }
 0x5f2   : > { %v6332_v1 = vpop.f32.mrb[175].mxu1  ;;  %3576 = vmatmul.mubr.f32.gmra.mrb[216].mxu1 %v3044_v9  ;;  %v2968_v15 = vadd.f32 %v6330_v53, %v6209_v10 }
 0x5f3   : > { %3581 = vmatprep.mubr.f32.mxu1 %v3047_v30  ;;  %v2970_v9 = vadd.f32 %v6332_v1, %v6199_v3 }
 0x5f4   : > { %v3066_v34 = vmax.f32 %v2968_v15, 0.0 }
 0x5f5   : > { %v6338_v18 = vpop.f32.mrb[176].mxu1  ;;  %v3067_v30 = vmax.f32 %v2970_v9, 0.0 }
 0x5f6   : > { %v6340_v23 = vpop.f32.mrb[177].mxu1  ;;  %3582 = vmatmul.mubr.f32.gmra.mrb[218].mxu1 %v3046_v19  ;;  %v2974_v55 = vadd.f32 %v6338_v18, %v6209_v10 }
 0x5f7   : > { %3587 = vmatprep.mubr.f32.mxu1 %v3049_v32  ;;  %v2976_v24 = vadd.f32 %v6340_v23, %v6199_v3 }
 0x5f8   : > { %v3068_v0 = vmax.f32 %v2974_v55, 0.0 }
 0x5f9   : > { %v6346_v38 = vpop.f32.mrb[178].mxu1  ;;  %v3069_v19 = vmax.f32 %v2976_v24, 0.0 }
 0x5fa   : > { %v6348_v56 = vpop.f32.mrb[179].mxu1  ;;  %3588 = vmatmul.mubr.f32.gmra.mrb[220].mxu1 %v3048_v58  ;;  %v2980_v53 = vadd.f32 %v6346_v38, %v6209_v10 }
 0x5fb   : > { %3593 = vmatprep.mubr.f32.mxu1 %v3051_v36  ;;  %v2982_v1 = vadd.f32 %v6348_v56, %v6199_v3 }
 0x5fc   : > { %v3070_v23 = vmax.f32 %v2980_v53, 0.0 }
 0x5fd   : > { %v6354_v43 = vpop.f32.mrb[180].mxu1  ;;  %v3071_v32 = vmax.f32 %v2982_v1, 0.0 }
 0x5fe   : > { %v6356_v46 = vpop.f32.mrb[181].mxu1  ;;  %3594 = vmatmul.mubr.f32.gmra.mrb[222].mxu1 %v3050_v52  ;;  %v2986_v18 = vadd.f32 %v6354_v43, %v6209_v10 }
 0x5ff   : > { %3599 = vmatprep.mubr.f32.mxu1 %v3053_v4  ;;  %v2988_v33 = vadd.f32 %v6356_v46, %v6199_v3 }
 0x600   : > { %v3072_v36 = vmax.f32 %v2986_v18, 0.0 }
 0x601   : > { %v6362_v47 = vpop.f32.mrb[182].mxu1  ;;  %v3073_v58 = vmax.f32 %v2988_v33, 0.0 }
 0x602   : > { %v2993_v60 = vpop.f32.mrb[183].mxu1  ;;  %3600 = vmatmul.mubr.f32.gmra.mrb[224].mxu1 %v3052_v11  ;;  %v2992_v37 = vadd.f32 %v6362_v47, %v6209_v10 }
 0x603   : > { %3605 = vmatprep.mubr.f32.mxu1 %v3055_v45  ;;  %v2994_v7 = vadd.f32 %v2993_v60, %v6199_v3 }
 0x604   : > { %v3074_v52 = vmax.f32 %v2992_v37, 0.0 }
 0x605   : > { %v6368_v12 = vpop.f32.mrb[184].mxu1  ;;  %v3075_v38 = vmax.f32 %v2994_v7, 0.0 }
 0x606   : > { %v2999_v35 = vpop.f32.mrb[185].mxu1  ;;  %3606 = vmatmul.mubr.f32.gmra.mrb[226].mxu1 %v3054_v27  ;;  %v2998_v39 = vadd.f32 %v6368_v12, %v6209_v10  ;;  %v3697_v12 = vld [vmem:[#allocation7 + $0x6] ss:$8 sm:$0x3] }
 0x607   : > { %3611 = vmatprep.mubr.f32.mxu1 %v3057_v54  ;;  %v3000_v56 = vadd.f32 %v2999_v35, %v6199_v3  ;;  %v6416_v35 = vrot.slane %v3697_v12, %v5624_v61 }
 0x608   : > { %v3076_v43 = vmax.f32 %v2998_v39, 0.0 }
 0x609   : > { %v6374_v31 = vpop.f32.mrb[186].mxu1  ;;  %v3077_v4 = vmax.f32 %v3000_v56, 0.0 }
 0x60a   : > { %v3005_v41 = vpop.f32.mrb[187].mxu1  ;;  %3612 = vmatmul.mubr.f32.gmra.mrb[228].mxu1 %v3056_v57  ;;  %v3004_v46 = vadd.f32 %v6374_v31, %v6209_v10  ;;  %v6419_v57 = vrot.slane %v3697_v12, %v5626_v63 }
 0x60b   : > { %3617 = vmatprep.mubr.f32.mxu1 %v3059_v59  ;;  %v3006_v40 = vadd.f32 %v3005_v41, %v6199_v3 }
 0x60c   : > { %v3078_v45 = vmax.f32 %v3004_v46, 0.0 }
 0x60d   : > { %v3009_v26 = vpop.f32.mrb[188].mxu1  ;;  %v3079_v11 = vmax.f32 %v3006_v40, 0.0 }
 0x60e   : > { %v3011_v29 = vpop.f32.mrb[189].mxu1  ;;  %3618 = vmatmul.mubr.f32.gmra.mrb[230].mxu1 %v3058_v28  ;;  %v3010_v13 = vadd.f32 %v3009_v26, %v6209_v10 }
 0x60f   : > { %3623 = vmatprep.mubr.f32.mxu1 %v3061_v5  ;;  %v3012_v6 = vadd.f32 %v3011_v29, %v6199_v3 }
 0x610   : > { %v3080_v27 = vmax.f32 %v3010_v13, 0.0 }
 0x611   : > { %v3015_v17 = vpop.f32.mrb[190].mxu1  ;;  %v3081_v47 = vmax.f32 %v3012_v6, 0.0 }
 0x612   : > { %v3017_v20 = vpop.f32.mrb[191].mxu1  ;;  %3624 = vmatmul.mubr.f32.gmra.mrb[232].mxu1 %v3060_v44  ;;  %v3016_v48 = vadd.f32 %v3015_v17, %v6209_v10 }
 0x613   : > { %3629 = vmatprep.mubr.f32.mxu1 %v3063_v49  ;;  %v3018_v60 = vadd.f32 %v3017_v20, %v6199_v3 }
 0x614   : > { %v3082_v42 = vmax.f32 %v3016_v48, 0.0 }
 0x615   : > { %v3083_v54 = vmax.f32 %v3018_v60, 0.0 }
 0x616   : > { %3630 = vmatmul.mubr.f32.gmra.mrb[234].mxu1 %v3062_v51 }
 0x617   : > { %3635 = vmatprep.mubr.f32.mxu1 %v3065_v8 }
 0x61a   : > { %3636 = vmatmul.mubr.f32.gmra.mrb[236].mxu1 %v3064_v25 }
 0x61b   : > { %3641 = vmatprep.mubr.f32.mxu1 %v3067_v30 }
 0x61e   : > { %3642 = vmatmul.mubr.f32.gmra.mrb[238].mxu1 %v3066_v34 }
 0x61f   : > { %3647 = vmatprep.mubr.f32.mxu1 %v3069_v19 }
 0x622   : > { %3648 = vmatmul.mubr.f32.gmra.mrb[240].mxu1 %v3068_v0 }
 0x623   : > { %3653 = vmatprep.mubr.f32.mxu1 %v3071_v32 }
 0x626   : > { %3654 = vmatmul.mubr.f32.gmra.mrb[242].mxu1 %v3070_v23 }
 0x627   : > { %3659 = vmatprep.mubr.f32.mxu1 %v3073_v58 }
 0x62a   : > { %3660 = vmatmul.mubr.f32.gmra.mrb[244].mxu1 %v3072_v36 }
 0x62b   : > { %3665 = vmatprep.mubr.f32.mxu1 %v3075_v38 }
 0x62e   : > { %3666 = vmatmul.mubr.f32.gmra.mrb[246].mxu1 %v3074_v52 }
 0x62f   : > { %3671 = vmatprep.mubr.f32.mxu1 %v3077_v4 }
 0x632   : > { %3672 = vmatmul.mubr.f32.gmra.mrb[248].mxu1 %v3076_v43 }
 0x633   : > { %3677 = vmatprep.mubr.f32.mxu1 %v3079_v11 }
 0x636   : > { %3678 = vmatmul.mubr.f32.gmra.mrb[250].mxu1 %v3078_v45 }
 0x637   : > { %3683 = vmatprep.mubr.f32.mxu1 %v3081_v47 }
 0x63a   : > { %3684 = vmatmul.mubr.f32.gmra.mrb[252].mxu1 %v3080_v27 }
 0x63b   : > { %3689 = vmatprep.mubr.f32.mxu1 %v3083_v54 }
 0x63e   : > { %3690 = vmatmul.mubr.f32.gmra.mrb[254].mxu1 %v3082_v42 }
 0x695   : > { %v3505_v22 = vpop.f32.mrb[192].mxu1 }
 0x696   : > { %v3709_v3 = vadd.f32 %v6416_v35, %v3505_v22  ;;  %v3507_v59 = vpop.f32.mrb[193].mxu1 }
 0x697   : > { %v3710_v62 = vadd.f32 %v6419_v57, %v3507_v59 }
 0x698   : > { %v3773_v41 = vmax.f32 %v3709_v3, 0.0 }
 0x699   : > { %v3774_v31 = vmax.f32 %v3710_v62, 0.0  ;;  %v3511_v10 = vpop.f32.mrb[194].mxu1 }
 0x69a   : > { %v3711_v28 = vadd.f32 %v6416_v35, %v3511_v10  ;;  %v3513_v21 = vpop.f32.mrb[195].mxu1 }
 0x69b   : > { %v3712_v5 = vadd.f32 %v6419_v57, %v3513_v21  ;;  %3974 = vmatprep.mubr.f32.mxu0 %v3774_v31 }
 0x69c   : > { %3975 = vmatmul.mubr.f32.vlgmr.msra.gmra.mrb[192].mxu0 %v3773_v41  ;;  %v3775_v63 = vmax.f32 %v3711_v28, 0.0 }
 0x69d   : > { %v3776_v14 = vmax.f32 %v3712_v5, 0.0  ;;  %v3517_v26 = vpop.f32.mrb[196].mxu1 }
 0x69e   : > { %v3713_v29 = vadd.f32 %v6416_v35, %v3517_v26  ;;  %v3519_v44 = vpop.f32.mrb[197].mxu1 }
 0x69f   : > { %v3714_v2 = vadd.f32 %v6419_v57, %v3519_v44  ;;  %3979 = vmatprep.mubr.f32.mxu0 %v3776_v14 }
 0x6a0   : > { %3980 = vmatmul.mubr.f32.gmra.mrb[194].mxu0 %v3775_v63  ;;  %v3777_v17 = vmax.f32 %v3713_v29, 0.0 }
 0x6a1   : > { %v3778_v49 = vmax.f32 %v3714_v2, 0.0  ;;  %v3523_v16 = vpop.f32.mrb[198].mxu1 }
 0x6a2   : > { %v3715_v20 = vadd.f32 %v6416_v35, %v3523_v16  ;;  %v3525_v51 = vpop.f32.mrb[199].mxu1 }
 0x6a3   : > { %v3716_v50 = vadd.f32 %v6419_v57, %v3525_v51  ;;  %3984 = vmatprep.mubr.f32.mxu0 %v3778_v49 }
 0x6a4   : > { %3985 = vmatmul.mubr.f32.gmra.mrb[196].mxu0 %v3777_v17  ;;  %v3779_v25 = vmax.f32 %v3715_v20, 0.0 }
 0x6a5   : > { %v3780_v8 = vmax.f32 %v3716_v50, 0.0  ;;  %v3529_v9 = vpop.f32.mrb[200].mxu1 }
 0x6a6   : > { %v3717_v15 = vadd.f32 %v6416_v35, %v3529_v9  ;;  %v3531_v30 = vpop.f32.mrb[201].mxu1 }
 0x6a7   : > { %v3718_v24 = vadd.f32 %v6419_v57, %v3531_v30  ;;  %3989 = vmatprep.mubr.f32.mxu0 %v3780_v8 }
 0x6a8   : > { %3990 = vmatmul.mubr.f32.gmra.mrb[198].mxu0 %v3779_v25  ;;  %v3781_v19 = vmax.f32 %v3717_v15, 0.0 }
 0x6a9   : > { %v3782_v34 = vmax.f32 %v3718_v24, 0.0  ;;  %v3535_v55 = vpop.f32.mrb[202].mxu1 }
 0x6aa   : > { %v3719_v1 = vadd.f32 %v6416_v35, %v3535_v55  ;;  %v3537_v0 = vpop.f32.mrb[203].mxu1 }
 0x6ab   : > { %v3720_v53 = vadd.f32 %v6419_v57, %v3537_v0  ;;  %3994 = vmatprep.mubr.f32.mxu0 %v3782_v34 }
 0x6ac   : > { %3995 = vmatmul.mubr.f32.gmra.mrb[200].mxu0 %v3781_v19  ;;  %v3783_v23 = vmax.f32 %v3719_v1, 0.0 }
 0x6ad   : > { %v3784_v32 = vmax.f32 %v3720_v53, 0.0  ;;  %v3541_v33 = vpop.f32.mrb[204].mxu1 }
 0x6ae   : > { %v3721_v18 = vadd.f32 %v6416_v35, %v3541_v33  ;;  %v3543_v58 = vpop.f32.mrb[205].mxu1 }
 0x6af   : > { %v3722_v7 = vadd.f32 %v6419_v57, %v3543_v58  ;;  %3999 = vmatprep.mubr.f32.mxu0 %v3784_v32 }
 0x6b0   : > { %4000 = vmatmul.mubr.f32.gmra.mrb[202].mxu0 %v3783_v23  ;;  %v3785_v38 = vmax.f32 %v3721_v18, 0.0 }
 0x6b1   : > { %v3786_v36 = vmax.f32 %v3722_v7, 0.0  ;;  %v3547_v37 = vpop.f32.mrb[206].mxu1 }
 0x6b2   : > { %v3723_v56 = vadd.f32 %v6416_v35, %v3547_v37  ;;  %v3549_v52 = vpop.f32.mrb[207].mxu1 }
 0x6b3   : > { %v3724_v39 = vadd.f32 %v6419_v57, %v3549_v52  ;;  %4004 = vmatprep.mubr.f32.mxu0 %v3786_v36 }
 0x6b4   : > { %4005 = vmatmul.mubr.f32.gmra.mrb[204].mxu0 %v3785_v38  ;;  %v3787_v43 = vmax.f32 %v3723_v56, 0.0 }
 0x6b5   : > { %v3788_v4 = vmax.f32 %v3724_v39, 0.0  ;;  %v3553_v40 = vpop.f32.mrb[208].mxu1 }
 0x6b6   : > { %v3725_v46 = vadd.f32 %v6416_v35, %v3553_v40  ;;  %v3555_v11 = vpop.f32.mrb[209].mxu1 }
 0x6b7   : > { %v3726_v6 = vadd.f32 %v6419_v57, %v3555_v11  ;;  %4009 = vmatprep.mubr.f32.mxu0 %v3788_v4 }
 0x6b8   : > { %4010 = vmatmul.mubr.f32.gmra.mrb[206].mxu0 %v3787_v43  ;;  %v3789_v47 = vmax.f32 %v3725_v46, 0.0 }
 0x6b9   : > { %v3790_v45 = vmax.f32 %v3726_v6, 0.0  ;;  %v3559_v13 = vpop.f32.mrb[210].mxu1 }
 0x6ba   : > { %v3727_v60 = vadd.f32 %v6416_v35, %v3559_v13  ;;  %v3561_v27 = vpop.f32.mrb[211].mxu1 }
 0x6bb   : > { %v3728_v48 = vadd.f32 %v6419_v57, %v3561_v27  ;;  %4014 = vmatprep.mubr.f32.mxu0 %v3790_v45 }
 0x6bc   : > { %4015 = vmatmul.mubr.f32.gmra.mrb[208].mxu0 %v3789_v47  ;;  %v3791_v12 = vmax.f32 %v3727_v60, 0.0 }
 0x6bd   : > { %v3792_v54 = vmax.f32 %v3728_v48, 0.0  ;;  %v3565_v42 = vpop.f32.mrb[212].mxu1 }
 0x6be   : > { %v3729_v22 = vadd.f32 %v6416_v35, %v3565_v42  ;;  %v3567_v3 = vpop.f32.mrb[213].mxu1 }
 0x6bf   : > { %v3730_v59 = vadd.f32 %v6419_v57, %v3567_v3  ;;  %4019 = vmatprep.mubr.f32.mxu0 %v3792_v54 }
 0x6c0   : > { %4020 = vmatmul.mubr.f32.gmra.mrb[210].mxu0 %v3791_v12  ;;  %v3793_v10 = vmax.f32 %v3729_v22, 0.0 }
 0x6c1   : > { %v3794_v62 = vmax.f32 %v3730_v59, 0.0  ;;  %v3571_v31 = vpop.f32.mrb[214].mxu1 }
 0x6c2   : > { %v3731_v41 = vadd.f32 %v6416_v35, %v3571_v31  ;;  %v3573_v28 = vpop.f32.mrb[215].mxu1 }
 0x6c3   : > { %v3732_v21 = vadd.f32 %v6419_v57, %v3573_v28  ;;  %4024 = vmatprep.mubr.f32.mxu0 %v3794_v62 }
 0x6c4   : > { %4025 = vmatmul.mubr.f32.gmra.mrb[212].mxu0 %v3793_v10  ;;  %v3795_v26 = vmax.f32 %v3731_v41, 0.0 }
 0x6c5   : > { %v3796_v5 = vmax.f32 %v3732_v21, 0.0  ;;  %v3577_v14 = vpop.f32.mrb[216].mxu1 }
 0x6c6   : > { %v3733_v63 = vadd.f32 %v6416_v35, %v3577_v14  ;;  %v3579_v29 = vpop.f32.mrb[217].mxu1 }
 0x6c7   : > { %v3734_v44 = vadd.f32 %v6419_v57, %v3579_v29  ;;  %4029 = vmatprep.mubr.f32.mxu0 %v3796_v5 }
 0x6c8   : > { %4030 = vmatmul.mubr.f32.gmra.mrb[214].mxu0 %v3795_v26  ;;  %v3797_v16 = vmax.f32 %v3733_v63, 0.0 }
 0x6c9   : > { %v3798_v2 = vmax.f32 %v3734_v44, 0.0  ;;  %v3583_v49 = vpop.f32.mrb[218].mxu1 }
 0x6ca   : > { %v3735_v17 = vadd.f32 %v6416_v35, %v3583_v49  ;;  %v3585_v20 = vpop.f32.mrb[219].mxu1 }
 0x6cb   : > { %v3736_v51 = vadd.f32 %v6419_v57, %v3585_v20  ;;  %4034 = vmatprep.mubr.f32.mxu0 %v3798_v2 }
 0x6cc   : > { %4035 = vmatmul.mubr.f32.gmra.mrb[216].mxu0 %v3797_v16  ;;  %v3799_v9 = vmax.f32 %v3735_v17, 0.0 }
 0x6cd   : > { %v3800_v50 = vmax.f32 %v3736_v51, 0.0  ;;  %v3589_v8 = vpop.f32.mrb[220].mxu1 }
 0x6ce   : > { %v3737_v25 = vadd.f32 %v6416_v35, %v3589_v8  ;;  %v3591_v15 = vpop.f32.mrb[221].mxu1 }
 0x6cf   : > { %v3738_v30 = vadd.f32 %v6419_v57, %v3591_v15  ;;  %4039 = vmatprep.mubr.f32.mxu0 %v3800_v50 }
 0x6d0   : > { %4040 = vmatmul.mubr.f32.gmra.mrb[218].mxu0 %v3799_v9  ;;  %v3801_v55 = vmax.f32 %v3737_v25, 0.0 }
 0x6d1   : > { %v3802_v24 = vmax.f32 %v3738_v30, 0.0  ;;  %v3595_v34 = vpop.f32.mrb[222].mxu1 }
 0x6d2   : > { %v3739_v19 = vadd.f32 %v6416_v35, %v3595_v34  ;;  %v3597_v1 = vpop.f32.mrb[223].mxu1 }
 0x6d3   : > { %v3740_v0 = vadd.f32 %v6419_v57, %v3597_v1  ;;  %4044 = vmatprep.mubr.f32.mxu0 %v3802_v24 }
 0x6d4   : > { %4045 = vmatmul.mubr.f32.gmra.mrb[220].mxu0 %v3801_v55  ;;  %v3803_v33 = vmax.f32 %v3739_v19, 0.0 }
 0x6d5   : > { %v3804_v53 = vmax.f32 %v3740_v0, 0.0  ;;  %v3601_v32 = vpop.f32.mrb[224].mxu1 }
 0x6d6   : > { %v3741_v23 = vadd.f32 %v6416_v35, %v3601_v32  ;;  %v3603_v18 = vpop.f32.mrb[225].mxu1 }
 0x6d7   : > { %v3742_v58 = vadd.f32 %v6419_v57, %v3603_v18  ;;  %4049 = vmatprep.mubr.f32.mxu0 %v3804_v53 }
 0x6d8   : > { %4050 = vmatmul.mubr.f32.gmra.mrb[222].mxu0 %v3803_v33  ;;  %v3805_v37 = vmax.f32 %v3741_v23, 0.0 }
 0x6d9   : > { %v3806_v7 = vmax.f32 %v3742_v58, 0.0  ;;  %v3607_v36 = vpop.f32.mrb[226].mxu1 }
 0x6da   : > { %v3743_v38 = vadd.f32 %v6416_v35, %v3607_v36  ;;  %v3609_v56 = vpop.f32.mrb[227].mxu1 }
 0x6db   : > { %v3744_v52 = vadd.f32 %v6419_v57, %v3609_v56  ;;  %4054 = vmatprep.mubr.f32.mxu0 %v3806_v7 }
 0x6dc   : > { %4055 = vmatmul.mubr.f32.gmra.mrb[224].mxu0 %v3805_v37  ;;  %v3807_v40 = vmax.f32 %v3743_v38, 0.0 }
 0x6dd   : > { %v3808_v39 = vmax.f32 %v3744_v52, 0.0  ;;  %v3613_v4 = vpop.f32.mrb[228].mxu1 }
 0x6de   : > { %v3745_v43 = vadd.f32 %v6416_v35, %v3613_v4  ;;  %v3615_v46 = vpop.f32.mrb[229].mxu1 }
 0x6df   : > { %v3746_v11 = vadd.f32 %v6419_v57, %v3615_v46  ;;  %4059 = vmatprep.mubr.f32.mxu0 %v3808_v39 }
 0x6e0   : > { %4060 = vmatmul.mubr.f32.gmra.mrb[226].mxu0 %v3807_v40  ;;  %v3809_v13 = vmax.f32 %v3745_v43, 0.0 }
 0x6e1   : > { %v3810_v6 = vmax.f32 %v3746_v11, 0.0  ;;  %v3619_v45 = vpop.f32.mrb[230].mxu1 }
 0x6e2   : > { %v3747_v47 = vadd.f32 %v6416_v35, %v3619_v45  ;;  %v3621_v60 = vpop.f32.mrb[231].mxu1 }
 0x6e3   : > { %v3748_v27 = vadd.f32 %v6419_v57, %v3621_v60  ;;  %4064 = vmatprep.mubr.f32.mxu0 %v3810_v6 }
 0x6e4   : > { %4065 = vmatmul.mubr.f32.gmra.mrb[228].mxu0 %v3809_v13  ;;  %v3811_v42 = vmax.f32 %v3747_v47, 0.0 }
 0x6e5   : > { %v3812_v48 = vmax.f32 %v3748_v27, 0.0  ;;  %v3625_v54 = vpop.f32.mrb[232].mxu1 }
 0x6e6   : > { %v3749_v12 = vadd.f32 %v6416_v35, %v3625_v54  ;;  %v3627_v22 = vpop.f32.mrb[233].mxu1 }
 0x6e7   : > { %v3750_v3 = vadd.f32 %v6419_v57, %v3627_v22  ;;  %4069 = vmatprep.mubr.f32.mxu0 %v3812_v48 }
 0x6e8   : > { %4070 = vmatmul.mubr.f32.gmra.mrb[230].mxu0 %v3811_v42  ;;  %v3813_v31 = vmax.f32 %v3749_v12, 0.0 }
 0x6e9   : > { %v3814_v59 = vmax.f32 %v3750_v3, 0.0  ;;  %v3631_v62 = vpop.f32.mrb[234].mxu1 }
 0x6ea   : > { %v3751_v10 = vadd.f32 %v6416_v35, %v3631_v62  ;;  %v3633_v41 = vpop.f32.mrb[235].mxu1 }
 0x6eb   : > { %v3752_v28 = vadd.f32 %v6419_v57, %v3633_v41  ;;  %4074 = vmatprep.mubr.f32.mxu0 %v3814_v59 }
 0x6ec   : > { %4075 = vmatmul.mubr.f32.gmra.mrb[232].mxu0 %v3813_v31  ;;  %v3815_v14 = vmax.f32 %v3751_v10, 0.0 }
 0x6ed   : > { %v3816_v21 = vmax.f32 %v3752_v28, 0.0  ;;  %v3637_v5 = vpop.f32.mrb[236].mxu1 }
 0x6ee   : > { %v3753_v26 = vadd.f32 %v6416_v35, %v3637_v5  ;;  %v3639_v63 = vpop.f32.mrb[237].mxu1  ;;  %v3903_v5 = vld [vmem:[#allocation7 + $0x7] ss:$8 sm:$0x3] }
 0x6ef   : > { %v3754_v29 = vadd.f32 %v6419_v57, %v3639_v63  ;;  %4079 = vmatprep.mubr.f32.mxu0 %v3816_v21 }
 0x6f0   : > { %4080 = vmatmul.mubr.f32.gmra.mrb[234].mxu0 %v3815_v14  ;;  %v3817_v49 = vmax.f32 %v3753_v26, 0.0  ;;  %v6489_v14 = vrot.slane %v3903_v5, %v5624_v61 }
 0x6f1   : > { %v3818_v44 = vmax.f32 %v3754_v29, 0.0  ;;  %v3643_v2 = vpop.f32.mrb[238].mxu1 }
 0x6f2   : > { %v3755_v16 = vadd.f32 %v6416_v35, %v3643_v2  ;;  %v3645_v17 = vpop.f32.mrb[239].mxu1 }
 0x6f3   : > { %v3756_v20 = vadd.f32 %v6419_v57, %v3645_v17  ;;  %4084 = vmatprep.mubr.f32.mxu0 %v3818_v44 }
 0x6f4   : > { %4085 = vmatmul.mubr.f32.gmra.mrb[236].mxu0 %v3817_v49  ;;  %v3819_v8 = vmax.f32 %v3755_v16, 0.0 }
 0x6f5   : > { %v3820_v51 = vmax.f32 %v3756_v20, 0.0  ;;  %v3649_v50 = vpop.f32.mrb[240].mxu1 }
 0x6f6   : > { %v3757_v9 = vadd.f32 %v6416_v35, %v3649_v50  ;;  %v3651_v25 = vpop.f32.mrb[241].mxu1 }
 0x6f7   : > { %v3758_v15 = vadd.f32 %v6419_v57, %v3651_v25  ;;  %4089 = vmatprep.mubr.f32.mxu0 %v3820_v51 }
 0x6f8   : > { %4090 = vmatmul.mubr.f32.gmra.mrb[238].mxu0 %v3819_v8  ;;  %v3821_v34 = vmax.f32 %v3757_v9, 0.0 }
 0x6f9   : > { %v3822_v30 = vmax.f32 %v3758_v15, 0.0  ;;  %v3655_v24 = vpop.f32.mrb[242].mxu1 }
 0x6fa   : > { %v3759_v55 = vadd.f32 %v6416_v35, %v3655_v24  ;;  %v3657_v19 = vpop.f32.mrb[243].mxu1 }
 0x6fb   : > { %v3760_v1 = vadd.f32 %v6419_v57, %v3657_v19  ;;  %4094 = vmatprep.mubr.f32.mxu0 %v3822_v30 }
 0x6fc   : > { %4095 = vmatmul.mubr.f32.gmra.mrb[240].mxu0 %v3821_v34  ;;  %v3823_v32 = vmax.f32 %v3759_v55, 0.0 }
 0x6fd   : > { %v3824_v0 = vmax.f32 %v3760_v1, 0.0  ;;  %v3661_v53 = vpop.f32.mrb[244].mxu1 }
 0x6fe   : > { %v3761_v33 = vadd.f32 %v6416_v35, %v3661_v53  ;;  %v3663_v23 = vpop.f32.mrb[245].mxu1 }
 0x6ff   : > { %v3762_v18 = vadd.f32 %v6419_v57, %v3663_v23  ;;  %4099 = vmatprep.mubr.f32.mxu0 %v3824_v0 }
 0x700   : > { %4100 = vmatmul.mubr.f32.gmra.mrb[242].mxu0 %v3823_v32  ;;  %v3825_v36 = vmax.f32 %v3761_v33, 0.0 }
 0x701   : > { %v3826_v58 = vmax.f32 %v3762_v18, 0.0  ;;  %v3667_v7 = vpop.f32.mrb[246].mxu1 }
 0x702   : > { %v3763_v37 = vadd.f32 %v6416_v35, %v3667_v7  ;;  %v3669_v38 = vpop.f32.mrb[247].mxu1 }
 0x703   : > { %v3764_v56 = vadd.f32 %v6419_v57, %v3669_v38  ;;  %4104 = vmatprep.mubr.f32.mxu0 %v3826_v58 }
 0x704   : > { %4105 = vmatmul.mubr.f32.gmra.mrb[244].mxu0 %v3825_v36  ;;  %v3827_v4 = vmax.f32 %v3763_v37, 0.0 }
 0x705   : > { %v3828_v52 = vmax.f32 %v3764_v56, 0.0  ;;  %v3673_v39 = vpop.f32.mrb[248].mxu1 }
 0x706   : > { %v3765_v40 = vadd.f32 %v6416_v35, %v3673_v39  ;;  %v3675_v43 = vpop.f32.mrb[249].mxu1 }
 0x707   : > { %v3766_v46 = vadd.f32 %v6419_v57, %v3675_v43  ;;  %4109 = vmatprep.mubr.f32.mxu0 %v3828_v52 }
 0x708   : > { %4110 = vmatmul.mubr.f32.gmra.mrb[246].mxu0 %v3827_v4  ;;  %v3829_v45 = vmax.f32 %v3765_v40, 0.0 }
 0x709   : > { %v3830_v11 = vmax.f32 %v3766_v46, 0.0  ;;  %v3679_v6 = vpop.f32.mrb[250].mxu1 }
 0x70a   : > { %v3767_v13 = vadd.f32 %v6416_v35, %v3679_v6  ;;  %v3681_v47 = vpop.f32.mrb[251].mxu1 }
 0x70b   : > { %v3768_v60 = vadd.f32 %v6419_v57, %v3681_v47  ;;  %4114 = vmatprep.mubr.f32.mxu0 %v3830_v11 }
 0x70c   : > { %4115 = vmatmul.mubr.f32.gmra.mrb[248].mxu0 %v3829_v45  ;;  %v3831_v54 = vmax.f32 %v3767_v13, 0.0 }
 0x70d   : > { %v3832_v27 = vmax.f32 %v3768_v60, 0.0  ;;  %v3685_v48 = vpop.f32.mrb[252].mxu1 }
 0x70e   : > { %v3769_v42 = vadd.f32 %v6416_v35, %v3685_v48  ;;  %v3687_v12 = vpop.f32.mrb[253].mxu1 }
 0x70f   : > { %v3770_v22 = vadd.f32 %v6419_v57, %v3687_v12  ;;  %4119 = vmatprep.mubr.f32.mxu0 %v3832_v27 }
 0x710   : > { %4120 = vmatmul.mubr.f32.gmra.mrb[250].mxu0 %v3831_v54  ;;  %v3833_v62 = vmax.f32 %v3769_v42, 0.0 }
 0x711   : > { %v3834_v3 = vmax.f32 %v3770_v22, 0.0  ;;  %v3691_v59 = vpop.f32.mrb[254].mxu1 }
 0x712   : > { %v3771_v31 = vadd.f32 %v6416_v35, %v3691_v59  ;;  %v3693_v10 = vpop.f32.mrb[255].mxu1 }
 0x713   : > { %v3772_v41 = vadd.f32 %v6419_v57, %v3693_v10  ;;  %4124 = vmatprep.mubr.f32.mxu0 %v3834_v3 }
 0x714   : > { %4125 = vmatmul.mubr.f32.gmra.mrb[252].mxu0 %v3833_v62  ;;  %v3835_v21 = vmax.f32 %v3771_v31, 0.0 }
 0x715   : > { %v3836_v28 = vmax.f32 %v3772_v41, 0.0 }
 0x717   : > { %4129 = vmatprep.mubr.f32.mxu0 %v3836_v28 }
 0x718   : > { %4130 = vmatmul.mubr.f32.gmra.mrb[254].mxu0 %v3835_v21 }
 0x76f   : > { %v3976_v26 = vpop.f32.mrb[192].mxu0 }
 0x770   : > { %v3977_v63 = vadd.f32 %v3976_v26, %v6489_v14  ;;  %v3978_v35 = vpop.f32.mrb[193].mxu0 }
 0x772   : > { %4135 = vst [vmem:[%s6492_s10] sm:$0xff] %v3977_v63 }
 0x773   : > { %v3981_v57 = vpop.f32.mrb[194].mxu0 }
 0x774   : > { %v3982_v29 = vadd.f32 %v3981_v57, %v6489_v14  ;;  %v3983_v44 = vpop.f32.mrb[195].mxu0 }
 0x776   : > { %4136 = vst [vmem:[%s6492_s10 + $0x8] sm:$0xff] %v3982_v29 }
 0x777   : > { %v3986_v61 = vpop.f32.mrb[196].mxu0 }
 0x778   : > { %v3987_v2 = vadd.f32 %v3986_v61, %v6489_v14  ;;  %v3988_v49 = vpop.f32.mrb[197].mxu0 }
 0x77a   : > { %4137 = vst [vmem:[%s6492_s10 + $0x10] sm:$0xff] %v3987_v2 }
 0x77b   : > { %v3991_v16 = vpop.f32.mrb[198].mxu0 }
 0x77c   : > { %v3992_v17 = vadd.f32 %v3991_v16, %v6489_v14  ;;  %v3993_v20 = vpop.f32.mrb[199].mxu0 }
 0x77e   : > { %4138 = vst [vmem:[%s6492_s10 + $0x18] sm:$0xff] %v3992_v17 }
 0x77f   : > { %v3996_v51 = vpop.f32.mrb[200].mxu0 }
 0x780   : > { %v3997_v50 = vadd.f32 %v3996_v51, %v6489_v14  ;;  %v3998_v8 = vpop.f32.mrb[201].mxu0 }
 0x782   : > { %4139 = vst [vmem:[%s6492_s10 + $0x20] sm:$0xff] %v3997_v50 }
 0x783   : > { %v4001_v9 = vpop.f32.mrb[202].mxu0 }
 0x784   : > { %v4002_v25 = vadd.f32 %v4001_v9, %v6489_v14  ;;  %v4003_v15 = vpop.f32.mrb[203].mxu0 }
 0x786   : > { %4140 = vst [vmem:[%s6492_s10 + $0x28] sm:$0xff] %v4002_v25 }
 0x787   : > { %v4006_v30 = vpop.f32.mrb[204].mxu0 }
 0x788   : > { %v4007_v24 = vadd.f32 %v4006_v30, %v6489_v14  ;;  %v4008_v34 = vpop.f32.mrb[205].mxu0 }
 0x78a   : > { %4141 = vst [vmem:[%s6492_s10 + $0x30] sm:$0xff] %v4007_v24 }
 0x78b   : > { %v4011_v55 = vpop.f32.mrb[206].mxu0 }
 0x78c   : > { %v4012_v19 = vadd.f32 %v4011_v55, %v6489_v14  ;;  %v4013_v1 = vpop.f32.mrb[207].mxu0 }
 0x78e   : > { %4142 = vst [vmem:[%s6492_s10 + $0x38] sm:$0xff] %v4012_v19 }
 0x78f   : > { %v4016_v0 = vpop.f32.mrb[208].mxu0 }
 0x790   : > { %v4017_v53 = vadd.f32 %v4016_v0, %v6489_v14  ;;  %v4018_v32 = vpop.f32.mrb[209].mxu0 }
 0x792   : > { %4143 = vst [vmem:[%s6492_s10 + $0x40] sm:$0xff] %v4017_v53 }
 0x793   : > { %v4021_v33 = vpop.f32.mrb[210].mxu0 }
 0x794   : > { %v4022_v23 = vadd.f32 %v4021_v33, %v6489_v14  ;;  %v4023_v18 = vpop.f32.mrb[211].mxu0 }
 0x796   : > { %4144 = vst [vmem:[%s6492_s10 + $0x48] sm:$0xff] %v4022_v23 }
 0x797   : > { %v4026_v58 = vpop.f32.mrb[212].mxu0 }
 0x798   : > { %v4027_v7 = vadd.f32 %v4026_v58, %v6489_v14  ;;  %v4028_v36 = vpop.f32.mrb[213].mxu0 }
 0x79a   : > { %4145 = vst [vmem:[%s6492_s10 + $0x50] sm:$0xff] %v4027_v7 }
 0x79b   : > { %v4031_v37 = vpop.f32.mrb[214].mxu0 }
 0x79c   : > { %v4032_v38 = vadd.f32 %v4031_v37, %v6489_v14  ;;  %v4033_v56 = vpop.f32.mrb[215].mxu0 }
 0x79e   : > { %4146 = vst [vmem:[%s6492_s10 + $0x58] sm:$0xff] %v4032_v38 }
 0x79f   : > { %v4036_v52 = vpop.f32.mrb[216].mxu0 }
 0x7a0   : > { %v4037_v39 = vadd.f32 %v4036_v52, %v6489_v14  ;;  %v4038_v4 = vpop.f32.mrb[217].mxu0 }
 0x7a2   : > { %4147 = vst [vmem:[%s6492_s10 + $0x60] sm:$0xff] %v4037_v39 }
 0x7a3   : > { %v4041_v40 = vpop.f32.mrb[218].mxu0 }
 0x7a4   : > { %v4042_v43 = vadd.f32 %v4041_v40, %v6489_v14  ;;  %v4043_v46 = vpop.f32.mrb[219].mxu0 }
 0x7a6   : > { %4148 = vst [vmem:[%s6492_s10 + $0x68] sm:$0xff] %v4042_v43 }
 0x7a7   : > { %v4046_v11 = vpop.f32.mrb[220].mxu0 }
 0x7a8   : > { %v4047_v6 = vadd.f32 %v4046_v11, %v6489_v14  ;;  %v4048_v45 = vpop.f32.mrb[221].mxu0 }
 0x7aa   : > { %4149 = vst [vmem:[%s6492_s10 + $0x70] sm:$0xff] %v4047_v6 }
 0x7ab   : > { %v4051_v13 = vpop.f32.mrb[222].mxu0 }
 0x7ac   : > { %v4052_v47 = vadd.f32 %v4051_v13, %v6489_v14  ;;  %v4053_v60 = vpop.f32.mrb[223].mxu0 }
 0x7ae   : > { %4150 = vst [vmem:[%s6492_s10 + $0x78] sm:$0xff] %v4052_v47 }
 0x7af   : > { %v4056_v27 = vpop.f32.mrb[224].mxu0 }
 0x7b0   : > { %v4057_v48 = vadd.f32 %v4056_v27, %v6489_v14  ;;  %v4058_v54 = vpop.f32.mrb[225].mxu0 }
 0x7b2   : > { %4151 = vst [vmem:[%s6492_s10 + $0x80] sm:$0xff] %v4057_v48 }
 0x7b3   : > { %v4061_v42 = vpop.f32.mrb[226].mxu0 }
 0x7b4   : > { %v4062_v12 = vadd.f32 %v4061_v42, %v6489_v14  ;;  %v4063_v22 = vpop.f32.mrb[227].mxu0 }
 0x7b6   : > { %4152 = vst [vmem:[%s6492_s10 + $0x88] sm:$0xff] %v4062_v12 }
 0x7b7   : > { %v4066_v3 = vpop.f32.mrb[228].mxu0 }
 0x7b8   : > { %v4067_v59 = vadd.f32 %v4066_v3, %v6489_v14  ;;  %v4068_v62 = vpop.f32.mrb[229].mxu0 }
 0x7ba   : > { %4153 = vst [vmem:[%s6492_s10 + $0x90] sm:$0xff] %v4067_v59 }
 0x7bb   : > { %v4071_v31 = vpop.f32.mrb[230].mxu0 }
 0x7bc   : > { %v4072_v10 = vadd.f32 %v4071_v31, %v6489_v14  ;;  %v4073_v41 = vpop.f32.mrb[231].mxu0 }
 0x7be   : > { %4154 = vst [vmem:[%s6492_s10 + $0x98] sm:$0xff] %v4072_v10 }
 0x7bf   : > { %v4076_v28 = vpop.f32.mrb[232].mxu0 }
 0x7c0   : > { %v4077_v21 = vadd.f32 %v4076_v28, %v6489_v14  ;;  %v4078_v5 = vpop.f32.mrb[233].mxu0 }
 0x7c2   : > { %4155 = vst [vmem:[%s6492_s10 + $0xa0] sm:$0xff] %v4077_v21 }
 0x7c3   : > { %v4081_v26 = vpop.f32.mrb[234].mxu0 }
 0x7c4   : > { %v4082_v63 = vadd.f32 %v4081_v26, %v6489_v14  ;;  %v4083_v35 = vpop.f32.mrb[235].mxu0 }
 0x7c6   : > { %4156 = vst [vmem:[%s6492_s10 + $0xa8] sm:$0xff] %v4082_v63 }
 0x7c7   : > { %v4086_v57 = vpop.f32.mrb[236].mxu0 }
 0x7c8   : > { %v4087_v29 = vadd.f32 %v4086_v57, %v6489_v14  ;;  %v4088_v44 = vpop.f32.mrb[237].mxu0 }
 0x7ca   : > { %4157 = vst [vmem:[%s6492_s10 + $0xb0] sm:$0xff] %v4087_v29 }
 0x7cb   : > { %v4091_v61 = vpop.f32.mrb[238].mxu0 }
 0x7cc   : > { %v4092_v2 = vadd.f32 %v4091_v61, %v6489_v14  ;;  %v4093_v49 = vpop.f32.mrb[239].mxu0 }
 0x7ce   : > { %4158 = vst [vmem:[%s6492_s10 + $0xb8] sm:$0xff] %v4092_v2 }
 0x7cf   : > { %v4096_v16 = vpop.f32.mrb[240].mxu0 }
 0x7d0   : > { %v4097_v17 = vadd.f32 %v4096_v16, %v6489_v14  ;;  %v4098_v20 = vpop.f32.mrb[241].mxu0 }
 0x7d2   : > { %4159 = vst [vmem:[%s6492_s10 + $0xc0] sm:$0xff] %v4097_v17 }
 0x7d3   : > { %v4101_v51 = vpop.f32.mrb[242].mxu0 }
 0x7d4   : > { %v4102_v50 = vadd.f32 %v4101_v51, %v6489_v14  ;;  %v4103_v8 = vpop.f32.mrb[243].mxu0 }
 0x7d6   : > { %4160 = vst [vmem:[%s6492_s10 + $0xc8] sm:$0xff] %v4102_v50 }
 0x7d7   : > { %v4106_v9 = vpop.f32.mrb[244].mxu0 }
 0x7d8   : > { %v4107_v25 = vadd.f32 %v4106_v9, %v6489_v14  ;;  %v4108_v15 = vpop.f32.mrb[245].mxu0 }
 0x7da   : > { %4161 = vst [vmem:[%s6492_s10 + $0xd0] sm:$0xff] %v4107_v25 }
 0x7db   : > { %v4111_v30 = vpop.f32.mrb[246].mxu0 }
 0x7dc   : > { %v4112_v24 = vadd.f32 %v4111_v30, %v6489_v14  ;;  %v4113_v34 = vpop.f32.mrb[247].mxu0 }
 0x7de   : > { %4162 = vst [vmem:[%s6492_s10 + $0xd8] sm:$0xff] %v4112_v24 }
 0x7df   : > { %v4116_v55 = vpop.f32.mrb[248].mxu0 }
 0x7e0   : > { %v4117_v19 = vadd.f32 %v4116_v55, %v6489_v14  ;;  %v4118_v1 = vpop.f32.mrb[249].mxu0 }
 0x7e2   : > { %4163 = vst [vmem:[%s6492_s10 + $0xe0] sm:$0xff] %v4117_v19 }
 0x7e3   : > { %v4121_v0 = vpop.f32.mrb[250].mxu0 }
 0x7e4   : > { %v4122_v53 = vadd.f32 %v4121_v0, %v6489_v14  ;;  %v4123_v32 = vpop.f32.mrb[251].mxu0 }
 0x7e6   : > { %4164 = vst [vmem:[%s6492_s10 + $0xe8] sm:$0xff] %v4122_v53 }
 0x7e7   : > { %v4126_v33 = vpop.f32.mrb[252].mxu0 }
 0x7e8   : > { %v4127_v23 = vadd.f32 %v4126_v33, %v6489_v14  ;;  %v4128_v18 = vpop.f32.mrb[253].mxu0 }
 0x7ea   : > { %4165 = vst [vmem:[%s6492_s10 + $0xf0] sm:$0xff] %v4127_v23 }
 0x7eb   : > { %v4131_v58 = vpop.f32.mrb[254].mxu0 }
 0x7ec   : > { %v4132_v7 = vadd.f32 %v4131_v58, %v6489_v14  ;;  %v4133_v36 = vpop.f32.mrb[255].mxu0 }
 0x7ee   : > { %4166 = vst [vmem:[%s6492_s10 + $0xf8] sm:$0xff] %v4132_v7 }
 0x7ef   : > { %5279 = shalt.err (!%p5276_p9)
}
 0x7f0   : > { %s5280_s27 = scalar_lea.hbm %s6560_s22, 4096  ;;  %s5284_s14 = scalar_lea.hbm %s6613_s4, 8192 }
 0x7f1   : > { %p5281_p2 = scmp.ne.s32.totalorder %s6560_s22, %s5280_s27  ;;  %p5285_p4 = scmp.lt.u32.totalorder %s6560_s22, %s6613_s4 }
 0x7f2   : > { %p5286_p5 = scmp.lt.u32.totalorder %s5284_s14, %s5280_s27  ;;  %p5288_p12 = scmp.lt.u32.totalorder %s5280_s27, %s6560_s22 }
 0x7f3   : > { %p5282_p3 = pnand %p5281_p2, %p6627_p7 }
 0x7f4   : > { %p5287_p10 = por %p5286_p5, %p5285_p4 }
 0x7f5   : > { %p5283_p0 = pneg %p5282_p3 }
 0x7f6   : > { %p5289_p8 = por %p5288_p12, %p5287_p10 }
 0x7f8   : > { %p5290_p11 = pnand %p5289_p8, %p5283_p0 }
 0x7fa   : > { %5293 = shalt.err (!%p5290_p11)
}
 0x7fb   : > { %s5345_s9 = smov 128   ;;  %s5346_s10 = smov 8  }
 0x7fc   : > { %5055 = dma.vmem_to_hbm [thread:$0]  (%p6627_p7), %s6562_s12, 4096, %s6560_s22, %s6568_s23, %s5345_s9, %s5345_s9, %s5346_s10  }
 0x7fd PF: > { %p5077_p13 = scmp.ge.s32.totalorder %s5336_s18, 2  ;;  %s4196_s11 = sand.u32 1, %s5324_s15  }
 0x7fe   : > { %p6628_p1 = scmp.ne.s32.totalorder %s6618_s26, 0  ;;  %s4197_s13 = scalar_lea.sflag [#allocation4], %s4196_s11 }
 0x800   : > { %p5068_p6 = pnand %p5077_p13, %p6628_p1 }
 0x802   : > { %5319 = dma.done.wait (!%p5068_p6), %s4197_s13, 4096  }
 0x803   : > { %5321 = vsyncadd (!%p5068_p6), %s4197_s13, 4294963200  ;;  %p16_p9 = scmp.ge.s32.totalorder %s5397_s21, 4   ;;  %s6629_s15 = smov %s5328_s16 }
 0x804   : > { %s6630_s16 = smov %s5332_s17  ;;  %s6631_s17 = smov %s5408_s24 }
 0x805   : > { %s6632_s18 = smov %s5397_s21  ;;  %18 = sbr.rel (!%p16_p9) target bundleno = 5 (0x5), region = 99 }
 0x80c   :  { %4202 = vsyncpa [#allocation3], 1 }
 0x80d   :  { %4204 = vsyncpa [#allocation3 + $0x1], 1 }
 0x80e   :  { %4205 = vsyncpa [#allocation6], 1 }
 0x80f   :  { %4206 = vsyncpa [#allocation4], 1 }
 0x810   :  { %4208 = vsyncpa [#allocation4 + $0x1], 1 }

</bundles_post_ra>
